<compile_context>
chip_gen: v5e
topology: v5e:2x2
jax: 0.10.0
libtpu: 0.0.40
codegen_flags: <defaults>
</compile_context>

<pallas_src>
import numpy as np
import jax
import jax.numpy as jnp
from jax.experimental import pallas as pl
from jax.experimental.pallas import tpu as pltpu

C = 64                      # channel count fixed by the module (Conv3d(64, 64, ...))
KD = KH = KW = 3
NTAPS = KD * KH * KW        # 27
K_RAW = NTAPS * C           # 1728
K_PAD = 1792                # 7*256 / 14*128: full MXU passes on v5e/v6e/v7x


def _disentangle3_kernel(x_ref, w1_ref, b1_ref, w2_ref, b2_ref, o_ref):
    # x_ref : (K_PAD, TD*H*W)  bf16  im2col block: (tap,Cin) on sublanes, spatial on lanes
    # w1_ref: (C, K_PAD)       bf16  3x3x3 conv weights, (Cout, tap*Cin)
    # b1_ref: (C, 1)           f32
    # w2_ref: (C, C)           bf16  1x1x1 conv weights, (Cout, Cin)
    # b2_ref: (C, 1)           f32
    # o_ref : (C, TD*H*W)      f32   lane-dense output block, already NCDHW-ordered
    y1 = jnp.dot(w1_ref[...], x_ref[...], preferred_element_type=jnp.float32)
    y1 = jnp.maximum(y1 + b1_ref[...], 0.0)                 # ReLU after 3x3x3 conv
    y2 = jnp.dot(w2_ref[...], y1.astype(w2_ref.dtype),
                 preferred_element_type=jnp.float32)
    y2 = jnp.maximum(y2 + b2_ref[...], 0.0)                 # ReLU after 1x1x1 conv
    o_ref[...] = y2.astype(o_ref.dtype)


def disentangle3_forward(x_ncdhw, w1_oidhw, b1, w2_oi, b2):
    """Conv3d(64,64,3,pad=1) -> ReLU -> Conv3d(64,64,1) -> ReLU.

    x_ncdhw : (N, 64, D, H, W) float32, PyTorch layout. Returns the same layout.
    w1_oidhw: (64, 64, 3, 3, 3)   b1: (64,)   w2_oi: (64, 64)   b2: (64,)
    """
    N, Cin, D, H, W = x_ncdhw.shape
    assert Cin == C
    HW = H * W
    S = D * HW

    # ---- spatial tiling: lane-dense blocks of TD*H*W positions (multiple of 128) ----
    TD = D                               # fallback: one block covers all of D (always legal)
    for cand in range(1, D):
        if D % cand == 0 and (cand * HW) % 128 == 0 and cand * HW <= 256:
            TD = cand
    T = D // TD
    SB = TD * HW                         # spatial positions per block

    # ---- im2col (fused by XLA): fold 27 taps + 64 input channels into one deep-K dim ----
    xb = x_ncdhw.astype(jnp.bfloat16)
    xp = jnp.pad(xb, ((0, 0), (0, 0), (1, 1), (1, 1), (1, 1)))      # conv padding=1
    taps = [xp[:, :, kd:kd + D, kh:kh + H, kw:kw + W]
            for kd in range(KD) for kh in range(KH) for kw in range(KW)]
    xcol = jnp.stack(taps, axis=1).reshape(N, K_RAW, S)             # (N, 1728, D*H*W)
    xcol = jnp.pad(xcol, ((0, 0), (0, K_PAD - K_RAW), (0, 0)))      # K: 1728 -> 1792

    # ---- weights in (Cout, tap*Cin) layout, bf16 for the MXU ----
    w1t = jnp.transpose(w1_oidhw, (0, 2, 3, 4, 1)).reshape(C, K_RAW)
    w1t = jnp.pad(w1t, ((0, 0), (0, K_PAD - K_RAW))).astype(jnp.bfloat16)
    w2t = w2_oi.astype(jnp.bfloat16)                                 # (Cout, Cin) as-is
    b1c = b1.reshape(C, 1).astype(jnp.float32)
    b2c = b2.reshape(C, 1).astype(jnp.float32)

    out = pl.pallas_call(
        _disentangle3_kernel,
        out_shape=jax.ShapeDtypeStruct((N, C, S), jnp.float32),
        grid_spec=pltpu.PrefetchScalarGridSpec(
            num_scalar_prefetch=0,
            grid=(N, T),
            in_specs=[
                pl.BlockSpec((None, K_PAD, SB), lambda n, t: (n, 0, t)),
                pl.BlockSpec((C, K_PAD), lambda n, t: (0, 0)),
                pl.BlockSpec((C, 1), lambda n, t: (0, 0)),
                pl.BlockSpec((C, C), lambda n, t: (0, 0)),
                pl.BlockSpec((C, 1), lambda n, t: (0, 0)),
            ],
            out_specs=pl.BlockSpec((None, C, SB), lambda n, t: (n, 0, t)),
        ),
        compiler_params=pltpu.CompilerParams(
            dimension_semantics=("parallel", "parallel"),
            vmem_limit_bytes=32 * 1024 * 1024),
    )(xcol, w1t, b1c, w2t, b2c)

    # Output is already channel-major / spatial-flat -> metadata-only reshape to NCDHW.
    return out.reshape(N, C, D, H, W)


if __name__ == "__main__":
    key = jax.random.PRNGKey(0)
    k1, k2, k3, k4, k5 = jax.random.split(key, 5)

    # Small shapes consistent with the module: batch=2, channels=64 (fixed), volume 8x8x8.
    N, D, H, W = 2, 8, 8, 8
    x = jax.random.normal(k1, (N, C, D, H, W), jnp.float32)

    # Deterministic synthetic parameters (PyTorch Conv3d weight layout: OIDHW).
    w1_oidhw = jax.random.normal(k2, (C, C, KD, KH, KW), jnp.float32) * 0.05
    b1 = jax.random.normal(k3, (C,), jnp.float32) * 0.05
    w2_oi = jax.random.normal(k4, (C, C), jnp.float32) * 0.05
    b2 = jax.random.normal(k5, (C,), jnp.float32) * 0.05

    fwd = jax.jit(disentangle3_forward)
    out = jax.block_until_ready(fwd(x, w1_oidhw, b1, w2_oi, b2))

    # Pure-JAX f32 reference (PyTorch nn.Sequential semantics).
    y = jax.lax.conv_general_dilated(
        x, w1_oidhw, window_strides=(1, 1, 1),
        padding=[(1, 1), (1, 1), (1, 1)],
        dimension_numbers=("NCDHW", "OIDHW", "NCDHW"),
        precision=jax.lax.Precision.HIGHEST)
    y = jax.nn.relu(y + b1.reshape(1, C, 1, 1, 1))
    y = jnp.einsum("ncdhw,oc->nodhw", y, w2_oi,
                   precision=jax.lax.Precision.HIGHEST) + b2.reshape(1, C, 1, 1, 1)
    y = jax.nn.relu(y)

    assert out.shape == y.shape == (N, C, D, H, W)
    # Tolerance sized for bf16 MXU operands with f32 accumulation (per perf review).
    np.testing.assert_allclose(np.asarray(out), np.asarray(y), rtol=2e-2, atol=2e-2)
    print("KERNEL_OK")
</pallas_src>

<mosaic_0001>
module attributes {stable_mosaic.version = 11 : i64} {
  func.func @_disentangle3_kernel(%arg0: i32, %arg1: i32, %arg2: memref<1x1792x256xbf16, #tpu.memory_space<vmem>>, %arg3: memref<64x1792xbf16, #tpu.memory_space<vmem>>, %arg4: memref<64x1xf32, #tpu.memory_space<vmem>>, %arg5: memref<64x64xbf16, #tpu.memory_space<vmem>>, %arg6: memref<64x1xf32, #tpu.memory_space<vmem>>, %arg7: memref<1x64x256xf32, #tpu.memory_space<vmem>>) attributes {dimension_semantics = [#tpu.dimension_semantics<parallel>, #tpu.dimension_semantics<parallel>], iteration_bounds = array<i64: 2, 2>, scalar_prefetch = 0 : i64, scratch_operands = 0 : i64, tpu.core_type = #tpu.core_type<tc>, window_params = [{transform_indices = @transform_0, window_bounds = array<i64: 1, 1792, 256>}, {pipeline_mode = #tpu.pipeline_mode<synchronous>, transform_indices = @transform_1, window_bounds = array<i64: 64, 1792>}, {pipeline_mode = #tpu.pipeline_mode<synchronous>, transform_indices = @transform_2, window_bounds = array<i64: 64, 1>}, {pipeline_mode = #tpu.pipeline_mode<synchronous>, transform_indices = @transform_3, window_bounds = array<i64: 64, 64>}, {pipeline_mode = #tpu.pipeline_mode<synchronous>, transform_indices = @transform_4, window_bounds = array<i64: 64, 1>}, {transform_indices = @transform_5, window_bounds = array<i64: 1, 64, 256>}]} {
    %c0 = arith.constant 0 : index
    %c0_0 = arith.constant 0 : index
    %0 = vector.load %arg3[%c0, %c0_0] : memref<64x1792xbf16, #tpu.memory_space<vmem>>, vector<64x1792xbf16>
    %c0_1 = arith.constant 0 : index
    %c0_2 = arith.constant 0 : index
    %c0_3 = arith.constant 0 : index
    %1 = vector.load %arg2[%c0_1, %c0_2, %c0_3] : memref<1x1792x256xbf16, #tpu.memory_space<vmem>>, vector<1x1792x256xbf16>
    %2 = vector.shape_cast %1 : vector<1x1792x256xbf16> to vector<1792x256xbf16>
    %cst = arith.constant dense<0.000000e+00> : vector<64x256xf32>
    %3 = tpu.matmul %0, %2, %cst {dimension_numbers = #tpu.dot_dimension_numbers<[1], [0], [0], [1], [0, 0, 1, 1], [], []>} : vector<64x1792xbf16>, vector<1792x256xbf16>, vector<64x256xf32> -> vector<64x256xf32>
    %c0_4 = arith.constant 0 : index
    %c0_5 = arith.constant 0 : index
    %4 = vector.load %arg4[%c0_4, %c0_5] : memref<64x1xf32, #tpu.memory_space<vmem>>, vector<64x1xf32>
    %5 = vector.broadcast %4 : vector<64x1xf32> to vector<64x256xf32>
    %6 = arith.addf %3, %5 : vector<64x256xf32>
    %cst_6 = arith.constant 0.000000e+00 : f32
    %7 = vector.broadcast %cst_6 : f32 to vector<64x256xf32>
    %8 = arith.maximumf %6, %7 : vector<64x256xf32>
    %c0_7 = arith.constant 0 : index
    %c0_8 = arith.constant 0 : index
    %9 = vector.load %arg5[%c0_7, %c0_8] : memref<64x64xbf16, #tpu.memory_space<vmem>>, vector<64x64xbf16>
    %10 = arith.truncf %8 : vector<64x256xf32> to vector<64x256xbf16>
    %cst_9 = arith.constant dense<0.000000e+00> : vector<64x256xf32>
    %11 = tpu.matmul %9, %10, %cst_9 {dimension_numbers = #tpu.dot_dimension_numbers<[1], [0], [0], [1], [0, 0, 1, 1], [], []>} : vector<64x64xbf16>, vector<64x256xbf16>, vector<64x256xf32> -> vector<64x256xf32>
    %c0_10 = arith.constant 0 : index
    %c0_11 = arith.constant 0 : index
    %12 = vector.load %arg6[%c0_10, %c0_11] : memref<64x1xf32, #tpu.memory_space<vmem>>, vector<64x1xf32>
    %13 = vector.broadcast %12 : vector<64x1xf32> to vector<64x256xf32>
    %14 = arith.addf %11, %13 : vector<64x256xf32>
    %cst_12 = arith.constant 0.000000e+00 : f32
    %15 = vector.broadcast %cst_12 : f32 to vector<64x256xf32>
    %16 = arith.maximumf %14, %15 : vector<64x256xf32>
    %c0_13 = arith.constant 0 : index
    %c0_14 = arith.constant 0 : index
    %c0_15 = arith.constant 0 : index
    %17 = vector.load %arg7[%c0_13, %c0_14, %c0_15] : memref<1x64x256xf32, #tpu.memory_space<vmem>>, vector<1x64x256xf32>
    %18 = vector.shape_cast %17 : vector<1x64x256xf32> to vector<64x256xf32>
    %19 = vector.shape_cast %16 : vector<64x256xf32> to vector<1x64x256xf32>
    tpu.vector_store %arg7[%c0_13, %c0_14, %c0_15], %19 {strides = array<i32>} : memref<1x64x256xf32, #tpu.memory_space<vmem>>, vector<1x64x256xf32>,
    return
  }
  func.func @transform_0(%arg0: i32, %arg1: i32) -> (i32, i32, i32) {
    %c0_i32 = arith.constant 0 : i32
    %c0_i32_0 = arith.constant 0 : i32
    return %arg0, %c0_i32, %arg1 : i32, i32, i32
  }
  func.func @transform_1(%arg0: i32, %arg1: i32) -> (i32, i32) {
    %c0_i32 = arith.constant 0 : i32
    %c0_i32_0 = arith.constant 0 : i32
    %c0_i32_1 = arith.constant 0 : i32
    return %c0_i32, %c0_i32_0 : i32, i32
  }
  func.func @transform_2(%arg0: i32, %arg1: i32) -> (i32, i32) {
    %c0_i32 = arith.constant 0 : i32
    %c0_i32_0 = arith.constant 0 : i32
    %c0_i32_1 = arith.constant 0 : i32
    return %c0_i32, %c0_i32_0 : i32, i32
  }
  func.func @transform_3(%arg0: i32, %arg1: i32) -> (i32, i32) {
    %c0_i32 = arith.constant 0 : i32
    %c0_i32_0 = arith.constant 0 : i32
    %c0_i32_1 = arith.constant 0 : i32
    return %c0_i32, %c0_i32_0 : i32, i32
  }
  func.func @transform_4(%arg0: i32, %arg1: i32) -> (i32, i32) {
    %c0_i32 = arith.constant 0 : i32
    %c0_i32_0 = arith.constant 0 : i32
    %c0_i32_1 = arith.constant 0 : i32
    return %c0_i32, %c0_i32_0 : i32, i32
  }
  func.func @transform_5(%arg0: i32, %arg1: i32) -> (i32, i32, i32) {
    %c0_i32 = arith.constant 0 : i32
    %c0_i32_0 = arith.constant 0 : i32
    return %arg0, %c0_i32, %arg1 : i32, i32, i32
  }
}

</mosaic_0001>

<bundles_post_ra>
// kernel: disentangle3_forward.1
= control target key start
LH: loop header
LB: loop body
LE: loop exit
PB: predicated region body
PF: predicated region fallthrough
CT: control target
= control target key end

     0   :  { %s5652_s18 = smov 0   ;;  %s5654_s19 = smov 0   ;;  %s7547_s0 = inlined_call_operand.vmem [shape: bf16[2,1792,512], index: 0, kind: input, shape index: {}]   ;;  %s7548_s1 = inlined_call_operand.vmem [shape: bf16[64,1792], index: 1, kind: input, shape index: {}]   ;;  %s7549_s2 = inlined_call_operand.vmem [shape: f32[64,1], index: 2, kind: input, shape index: {}]   ;;  %s7550_s3 = inlined_call_operand.vmem [shape: bf16[64,64], index: 3, kind: input, shape index: {}]   ;;  %s7551_s4 = inlined_call_operand.vmem [shape: f32[64,1], index: 4, kind: input, shape index: {}]   ;;  %s7552_s5 = inlined_call_operand.vmem [shape: f32[2,64,512], index: 5, kind: output, shape index: {}]  }
   0x1   :  { %s5656_s20 = smov 0   ;;  %s5658_s21 = smov 0  }
   0x2   :  { %s5660_s22 = smov 0   ;;  %s5662_s23 = smov 0  }
   0x3   :  { %s5664_s24 = smov 0  }
   0x4 LB: > { %s24_s25 = sadd.s32 1, %s5611_s22  ;;  %s27_s26 = sadd.s32 1, %s5615_s23  ;;  %s5619_s24 = sphi %s5664_s24, %s15_s24   ;;  %s5615_s23 = sphi %s5662_s23, %s7640_s23   ;;  %s5611_s22 = sphi %s5660_s22, %s7639_s22   ;;  %s5607_s21 = sphi %s5658_s21, %s7638_s21   ;;  %s5603_s20 = sphi %s5656_s20, %s7637_s20   ;;  %s5599_s19 = sphi %s5654_s19, %s7636_s19   ;;  %s5595_s18 = sphi %s5652_s18, %s7635_s18  }
   0x5   : > { %p25_p0 = scmp.ge.s32.totalorder %s24_s25, 2  ;;  %s4044_s27 = sadd.s32 4294967295, %s5619_s24  }
   0x6   : > { %p43_p1 = scmp.ne.s32.totalorder %s5599_s19, %s5595_s18  ;;  %p44_p2 = scmp.eq.s32.totalorder %s5619_s24, 0 }
   0x7   : > { %s7642_s25 = smov (%p25_p0, %s24_s25), 0  ;;  %s7644_s26 = smov (!%p25_p0, %s27_s26), %s5615_s23 }
   0x8   : > { %p29_p3 = scmp.ge.s32.totalorder %s7644_s26, 2  ;;  %p159_p4 = scmp.eq.s32.totalorder %s4044_s27, 3 }
   0x9   : > { %s32_s28 = ssub.s32 %s5611_s22, %s7642_s25  ;;  %p45_p5 = por %p44_p2, %p43_p1 }
   0xa   : > { %s7646_s26 = smov (%p29_p3, %s7644_s26), 0  ;;  %p5700_p6 = por %p159_p4, %p43_p1 }
   0xb   : > { %s31_s30 = ssub.s32 %s5615_s23, %s7646_s26  ;;  %s36_s7 = sadd.s32 1, %s5599_s19 }
   0xc   : > { %s33_s6 = sor.u32 %s32_s28, %s31_s30  ;;  %p4047_p8 = scmp.ge.s32.totalorder %s5619_s24, 4 }
   0xd   : > { %p34_p7 = scmp.eq.s32.totalorder %s33_s6, 0 }
   0xe   : > { %193 = sbr.rel (%p4047_p8) target bundleno = 251 (0xfb), region = 32 }
   0xf   : > { %s5708_s8 = scalar_select %p34_p7, %s5599_s19, %s36_s7  }
  0x13   : > { %196 = sbr.rel (!%p45_p5) target bundleno = 251 (0xfb), region = 36  ;;  %s198_s9 = sand.u32 (%p45_p5), 1, %s5599_s19  }
  0x14   : > { %s5502_s10 = smul.u32 (%p45_p5), 1792, %s198_s9  ;;  %s4048_s11 = sshll.u32 (%p45_p5), %s5611_s22, 1 }
  0x15   : > { %s5503_s12 = smul.u32 (%p45_p5), 896, %s5615_s23 }
  0x16   : > { %s5722_s27 = scalar_lea.vmem (%p45_p5), [#allocation2], %s5502_s10 }
  0x17   : > { %s203_s13 = sadd.s32 (%p45_p5), %s5503_s12, %s4048_s11 }
  0x18   : > { %s4049_s14 = sshll.u32 %s203_s13, 2 }
  0x19   : > { %s5717_s17 = scalar_lea.vmem %s7547_s0, %s4049_s14 }
  0x1a   : > { %v680_v0 = vld [vmem:[%s5717_s17] sm:$0xff]  ;;  %v682_v1 = vld [vmem:[%s5717_s17 + $0x10] sm:$0xff] }
  0x1b   : > { %v684_v2 = vld [vmem:[%s5717_s17 + $0x20] sm:$0xff]  ;;  %681 = vst [vmem:[%s5722_s27] sm:$0xff] %v680_v0  ;;  %v686_v3 = vld [vmem:[%s5717_s17 + $0x30] sm:$0xff] }
  0x1c   : > { %683 = vst [vmem:[%s5722_s27 + $0x8] sm:$0xff] %v682_v1  ;;  %v688_v4 = vld [vmem:[%s5717_s17 + $0x40] sm:$0xff]  ;;  %v690_v5 = vld [vmem:[%s5717_s17 + $0x50] sm:$0xff] }
  0x1d   : > { %685 = vst [vmem:[%s5722_s27 + $0x10] sm:$0xff] %v684_v2  ;;  %v692_v6 = vld [vmem:[%s5717_s17 + $0x60] sm:$0xff]  ;;  %v694_v7 = vld [vmem:[%s5717_s17 + $0x70] sm:$0xff] }
  0x1e   : > { %687 = vst [vmem:[%s5722_s27 + $0x18] sm:$0xff] %v686_v3  ;;  %v696_v8 = vld [vmem:[%s5717_s17 + $0x80] sm:$0xff]  ;;  %v698_v9 = vld [vmem:[%s5717_s17 + $0x90] sm:$0xff] }
  0x1f   : > { %689 = vst [vmem:[%s5722_s27 + $0x20] sm:$0xff] %v688_v4  ;;  %v700_v10 = vld [vmem:[%s5717_s17 + $0xa0] sm:$0xff]  ;;  %v702_v11 = vld [vmem:[%s5717_s17 + $0xb0] sm:$0xff] }
  0x20   : > { %691 = vst [vmem:[%s5722_s27 + $0x28] sm:$0xff] %v690_v5  ;;  %v704_v12 = vld [vmem:[%s5717_s17 + $0xc0] sm:$0xff]  ;;  %v706_v13 = vld [vmem:[%s5717_s17 + $0xd0] sm:$0xff] }
  0x21   : > { %693 = vst [vmem:[%s5722_s27 + $0x30] sm:$0xff] %v692_v6  ;;  %v708_v14 = vld [vmem:[%s5717_s17 + $0xe0] sm:$0xff]  ;;  %v710_v15 = vld [vmem:[%s5717_s17 + $0xf0] sm:$0xff] }
  0x22   : > { %695 = vst [vmem:[%s5722_s27 + $0x38] sm:$0xff] %v694_v7  ;;  %v712_v16 = vld [vmem:[%s5717_s17 + $0x100] sm:$0xff]  ;;  %v714_v17 = vld [vmem:[%s5717_s17 + $0x110] sm:$0xff] }
  0x23   : > { %697 = vst [vmem:[%s5722_s27 + $0x40] sm:$0xff] %v696_v8  ;;  %v716_v18 = vld [vmem:[%s5717_s17 + $0x120] sm:$0xff]  ;;  %v718_v19 = vld [vmem:[%s5717_s17 + $0x130] sm:$0xff] }
  0x24   : > { %699 = vst [vmem:[%s5722_s27 + $0x48] sm:$0xff] %v698_v9  ;;  %v720_v20 = vld [vmem:[%s5717_s17 + $0x140] sm:$0xff]  ;;  %v722_v21 = vld [vmem:[%s5717_s17 + $0x150] sm:$0xff] }
  0x25   : > { %701 = vst [vmem:[%s5722_s27 + $0x50] sm:$0xff] %v700_v10  ;;  %v724_v22 = vld [vmem:[%s5717_s17 + $0x160] sm:$0xff]  ;;  %v726_v23 = vld [vmem:[%s5717_s17 + $0x170] sm:$0xff] }
  0x26   : > { %703 = vst [vmem:[%s5722_s27 + $0x58] sm:$0xff] %v702_v11  ;;  %v728_v24 = vld [vmem:[%s5717_s17 + $0x180] sm:$0xff]  ;;  %v730_v25 = vld [vmem:[%s5717_s17 + $0x190] sm:$0xff] }
  0x27   : > { %705 = vst [vmem:[%s5722_s27 + $0x60] sm:$0xff] %v704_v12  ;;  %v732_v26 = vld [vmem:[%s5717_s17 + $0x1a0] sm:$0xff]  ;;  %v734_v27 = vld [vmem:[%s5717_s17 + $0x1b0] sm:$0xff] }
  0x28   : > { %707 = vst [vmem:[%s5722_s27 + $0x68] sm:$0xff] %v706_v13  ;;  %v736_v28 = vld [vmem:[%s5717_s17 + $0x1c0] sm:$0xff]  ;;  %v738_v29 = vld [vmem:[%s5717_s17 + $0x1d0] sm:$0xff] }
  0x29   : > { %709 = vst [vmem:[%s5722_s27 + $0x70] sm:$0xff] %v708_v14  ;;  %v740_v30 = vld [vmem:[%s5717_s17 + $0x1e0] sm:$0xff]  ;;  %v742_v31 = vld [vmem:[%s5717_s17 + $0x1f0] sm:$0xff] }
  0x2a   : > { %711 = vst [vmem:[%s5722_s27 + $0x78] sm:$0xff] %v710_v15  ;;  %v744_v32 = vld [vmem:[%s5717_s17 + $0x200] sm:$0xff]  ;;  %v746_v33 = vld [vmem:[%s5717_s17 + $0x210] sm:$0xff] }
  0x2b   : > { %713 = vst [vmem:[%s5722_s27 + $0x80] sm:$0xff] %v712_v16  ;;  %v748_v34 = vld [vmem:[%s5717_s17 + $0x220] sm:$0xff]  ;;  %v750_v35 = vld [vmem:[%s5717_s17 + $0x230] sm:$0xff] }
  0x2c   : > { %715 = vst [vmem:[%s5722_s27 + $0x88] sm:$0xff] %v714_v17  ;;  %v752_v36 = vld [vmem:[%s5717_s17 + $0x240] sm:$0xff]  ;;  %v754_v37 = vld [vmem:[%s5717_s17 + $0x250] sm:$0xff] }
  0x2d   : > { %717 = vst [vmem:[%s5722_s27 + $0x90] sm:$0xff] %v716_v18  ;;  %v756_v38 = vld [vmem:[%s5717_s17 + $0x260] sm:$0xff]  ;;  %v758_v39 = vld [vmem:[%s5717_s17 + $0x270] sm:$0xff] }
  0x2e   : > { %719 = vst [vmem:[%s5722_s27 + $0x98] sm:$0xff] %v718_v19  ;;  %v760_v40 = vld [vmem:[%s5717_s17 + $0x280] sm:$0xff]  ;;  %v762_v41 = vld [vmem:[%s5717_s17 + $0x290] sm:$0xff] }
  0x2f   : > { %721 = vst [vmem:[%s5722_s27 + $0xa0] sm:$0xff] %v720_v20  ;;  %v764_v42 = vld [vmem:[%s5717_s17 + $0x2a0] sm:$0xff]  ;;  %v766_v43 = vld [vmem:[%s5717_s17 + $0x2b0] sm:$0xff] }
  0x30   : > { %723 = vst [vmem:[%s5722_s27 + $0xa8] sm:$0xff] %v722_v21  ;;  %v768_v44 = vld [vmem:[%s5717_s17 + $0x2c0] sm:$0xff]  ;;  %v770_v45 = vld [vmem:[%s5717_s17 + $0x2d0] sm:$0xff] }
  0x31   : > { %725 = vst [vmem:[%s5722_s27 + $0xb0] sm:$0xff] %v724_v22  ;;  %v772_v46 = vld [vmem:[%s5717_s17 + $0x2e0] sm:$0xff]  ;;  %v774_v47 = vld [vmem:[%s5717_s17 + $0x2f0] sm:$0xff] }
  0x32   : > { %727 = vst [vmem:[%s5722_s27 + $0xb8] sm:$0xff] %v726_v23  ;;  %v776_v48 = vld [vmem:[%s5717_s17 + $0x300] sm:$0xff]  ;;  %v778_v49 = vld [vmem:[%s5717_s17 + $0x310] sm:$0xff] }
  0x33   : > { %729 = vst [vmem:[%s5722_s27 + $0xc0] sm:$0xff] %v728_v24  ;;  %v780_v50 = vld [vmem:[%s5717_s17 + $0x320] sm:$0xff]  ;;  %v782_v51 = vld [vmem:[%s5717_s17 + $0x330] sm:$0xff] }
  0x34   : > { %731 = vst [vmem:[%s5722_s27 + $0xc8] sm:$0xff] %v730_v25  ;;  %v784_v52 = vld [vmem:[%s5717_s17 + $0x340] sm:$0xff]  ;;  %v786_v53 = vld [vmem:[%s5717_s17 + $0x350] sm:$0xff] }
  0x35   : > { %733 = vst [vmem:[%s5722_s27 + $0xd0] sm:$0xff] %v732_v26  ;;  %v788_v54 = vld [vmem:[%s5717_s17 + $0x360] sm:$0xff]  ;;  %v790_v55 = vld [vmem:[%s5717_s17 + $0x370] sm:$0xff] }
  0x36   : > { %735 = vst [vmem:[%s5722_s27 + $0xd8] sm:$0xff] %v734_v27  ;;  %v792_v56 = vld [vmem:[%s5717_s17 + $0x380] sm:$0xff]  ;;  %v794_v57 = vld [vmem:[%s5717_s17 + $0x390] sm:$0xff] }
  0x37   : > { %737 = vst [vmem:[%s5722_s27 + $0xe0] sm:$0xff] %v736_v28  ;;  %v796_v58 = vld [vmem:[%s5717_s17 + $0x3a0] sm:$0xff]  ;;  %v798_v59 = vld [vmem:[%s5717_s17 + $0x3b0] sm:$0xff] }
  0x38   : > { %739 = vst [vmem:[%s5722_s27 + $0xe8] sm:$0xff] %v738_v29  ;;  %v800_v60 = vld [vmem:[%s5717_s17 + $0x3c0] sm:$0xff]  ;;  %v802_v61 = vld [vmem:[%s5717_s17 + $0x3d0] sm:$0xff] }
  0x39   : > { %741 = vst [vmem:[%s5722_s27 + $0xf0] sm:$0xff] %v740_v30  ;;  %v804_v62 = vld [vmem:[%s5717_s17 + $0x3e0] sm:$0xff]  ;;  %v806_v63 = vld [vmem:[%s5717_s17 + $0x3f0] sm:$0xff] }
  0x3a   : > { %743 = vst [vmem:[%s5722_s27 + $0xf8] sm:$0xff] %v742_v31  ;;  %v808_v0 = vld [vmem:[%s5717_s17 + $0x400] sm:$0xff]  ;;  %v810_v1 = vld [vmem:[%s5717_s17 + $0x410] sm:$0xff] }
  0x3b   : > { %745 = vst [vmem:[%s5722_s27 + $0x100] sm:$0xff] %v744_v32  ;;  %v812_v2 = vld [vmem:[%s5717_s17 + $0x420] sm:$0xff]  ;;  %v814_v3 = vld [vmem:[%s5717_s17 + $0x430] sm:$0xff] }
  0x3c   : > { %747 = vst [vmem:[%s5722_s27 + $0x108] sm:$0xff] %v746_v33  ;;  %v816_v4 = vld [vmem:[%s5717_s17 + $0x440] sm:$0xff]  ;;  %v818_v5 = vld [vmem:[%s5717_s17 + $0x450] sm:$0xff] }
  0x3d   : > { %749 = vst [vmem:[%s5722_s27 + $0x110] sm:$0xff] %v748_v34  ;;  %v820_v6 = vld [vmem:[%s5717_s17 + $0x460] sm:$0xff]  ;;  %v822_v7 = vld [vmem:[%s5717_s17 + $0x470] sm:$0xff] }
  0x3e   : > { %751 = vst [vmem:[%s5722_s27 + $0x118] sm:$0xff] %v750_v35  ;;  %v824_v8 = vld [vmem:[%s5717_s17 + $0x480] sm:$0xff]  ;;  %v826_v9 = vld [vmem:[%s5717_s17 + $0x490] sm:$0xff] }
  0x3f   : > { %753 = vst [vmem:[%s5722_s27 + $0x120] sm:$0xff] %v752_v36  ;;  %v828_v10 = vld [vmem:[%s5717_s17 + $0x4a0] sm:$0xff]  ;;  %v830_v11 = vld [vmem:[%s5717_s17 + $0x4b0] sm:$0xff] }
  0x40   : > { %755 = vst [vmem:[%s5722_s27 + $0x128] sm:$0xff] %v754_v37  ;;  %v832_v12 = vld [vmem:[%s5717_s17 + $0x4c0] sm:$0xff]  ;;  %v834_v13 = vld [vmem:[%s5717_s17 + $0x4d0] sm:$0xff] }
  0x41   : > { %757 = vst [vmem:[%s5722_s27 + $0x130] sm:$0xff] %v756_v38  ;;  %v836_v14 = vld [vmem:[%s5717_s17 + $0x4e0] sm:$0xff]  ;;  %v838_v15 = vld [vmem:[%s5717_s17 + $0x4f0] sm:$0xff] }
  0x42   : > { %759 = vst [vmem:[%s5722_s27 + $0x138] sm:$0xff] %v758_v39  ;;  %v840_v16 = vld [vmem:[%s5717_s17 + $0x500] sm:$0xff]  ;;  %v842_v17 = vld [vmem:[%s5717_s17 + $0x510] sm:$0xff] }
  0x43   : > { %761 = vst [vmem:[%s5722_s27 + $0x140] sm:$0xff] %v760_v40  ;;  %v844_v18 = vld [vmem:[%s5717_s17 + $0x520] sm:$0xff]  ;;  %v846_v19 = vld [vmem:[%s5717_s17 + $0x530] sm:$0xff] }
  0x44   : > { %763 = vst [vmem:[%s5722_s27 + $0x148] sm:$0xff] %v762_v41  ;;  %v848_v20 = vld [vmem:[%s5717_s17 + $0x540] sm:$0xff]  ;;  %v850_v21 = vld [vmem:[%s5717_s17 + $0x550] sm:$0xff] }
  0x45   : > { %765 = vst [vmem:[%s5722_s27 + $0x150] sm:$0xff] %v764_v42  ;;  %v852_v22 = vld [vmem:[%s5717_s17 + $0x560] sm:$0xff]  ;;  %v854_v23 = vld [vmem:[%s5717_s17 + $0x570] sm:$0xff] }
  0x46   : > { %767 = vst [vmem:[%s5722_s27 + $0x158] sm:$0xff] %v766_v43  ;;  %v856_v24 = vld [vmem:[%s5717_s17 + $0x580] sm:$0xff]  ;;  %v858_v25 = vld [vmem:[%s5717_s17 + $0x590] sm:$0xff] }
  0x47   : > { %769 = vst [vmem:[%s5722_s27 + $0x160] sm:$0xff] %v768_v44  ;;  %v860_v26 = vld [vmem:[%s5717_s17 + $0x5a0] sm:$0xff]  ;;  %v862_v27 = vld [vmem:[%s5717_s17 + $0x5b0] sm:$0xff] }
  0x48   : > { %771 = vst [vmem:[%s5722_s27 + $0x168] sm:$0xff] %v770_v45  ;;  %v864_v28 = vld [vmem:[%s5717_s17 + $0x5c0] sm:$0xff]  ;;  %v866_v29 = vld [vmem:[%s5717_s17 + $0x5d0] sm:$0xff] }
  0x49   : > { %773 = vst [vmem:[%s5722_s27 + $0x170] sm:$0xff] %v772_v46  ;;  %v868_v30 = vld [vmem:[%s5717_s17 + $0x5e0] sm:$0xff]  ;;  %v870_v31 = vld [vmem:[%s5717_s17 + $0x5f0] sm:$0xff] }
  0x4a   : > { %775 = vst [vmem:[%s5722_s27 + $0x178] sm:$0xff] %v774_v47  ;;  %v872_v32 = vld [vmem:[%s5717_s17 + $0x600] sm:$0xff]  ;;  %v874_v33 = vld [vmem:[%s5717_s17 + $0x610] sm:$0xff] }
  0x4b   : > { %777 = vst [vmem:[%s5722_s27 + $0x180] sm:$0xff] %v776_v48  ;;  %v876_v34 = vld [vmem:[%s5717_s17 + $0x620] sm:$0xff]  ;;  %v878_v35 = vld [vmem:[%s5717_s17 + $0x630] sm:$0xff] }
  0x4c   : > { %779 = vst [vmem:[%s5722_s27 + $0x188] sm:$0xff] %v778_v49  ;;  %v880_v36 = vld [vmem:[%s5717_s17 + $0x640] sm:$0xff]  ;;  %v882_v37 = vld [vmem:[%s5717_s17 + $0x650] sm:$0xff] }
  0x4d   : > { %781 = vst [vmem:[%s5722_s27 + $0x190] sm:$0xff] %v780_v50  ;;  %v884_v38 = vld [vmem:[%s5717_s17 + $0x660] sm:$0xff]  ;;  %v886_v39 = vld [vmem:[%s5717_s17 + $0x670] sm:$0xff] }
  0x4e   : > { %783 = vst [vmem:[%s5722_s27 + $0x198] sm:$0xff] %v782_v51  ;;  %v888_v40 = vld [vmem:[%s5717_s17 + $0x680] sm:$0xff]  ;;  %v890_v41 = vld [vmem:[%s5717_s17 + $0x690] sm:$0xff] }
  0x4f   : > { %785 = vst [vmem:[%s5722_s27 + $0x1a0] sm:$0xff] %v784_v52  ;;  %v892_v42 = vld [vmem:[%s5717_s17 + $0x6a0] sm:$0xff]  ;;  %v894_v43 = vld [vmem:[%s5717_s17 + $0x6b0] sm:$0xff] }
  0x50   : > { %787 = vst [vmem:[%s5722_s27 + $0x1a8] sm:$0xff] %v786_v53  ;;  %v896_v44 = vld [vmem:[%s5717_s17 + $0x6c0] sm:$0xff]  ;;  %v898_v45 = vld [vmem:[%s5717_s17 + $0x6d0] sm:$0xff] }
  0x51   : > { %789 = vst [vmem:[%s5722_s27 + $0x1b0] sm:$0xff] %v788_v54  ;;  %v900_v46 = vld [vmem:[%s5717_s17 + $0x6e0] sm:$0xff]  ;;  %v902_v47 = vld [vmem:[%s5717_s17 + $0x6f0] sm:$0xff] }
  0x52   : > { %791 = vst [vmem:[%s5722_s27 + $0x1b8] sm:$0xff] %v790_v55  ;;  %v904_v48 = vld [vmem:[%s5717_s17 + $0x700] sm:$0xff]  ;;  %v906_v49 = vld [vmem:[%s5717_s17 + $0x710] sm:$0xff] }
  0x53   : > { %793 = vst [vmem:[%s5722_s27 + $0x1c0] sm:$0xff] %v792_v56  ;;  %v908_v50 = vld [vmem:[%s5717_s17 + $0x720] sm:$0xff]  ;;  %v910_v51 = vld [vmem:[%s5717_s17 + $0x730] sm:$0xff] }
  0x54   : > { %795 = vst [vmem:[%s5722_s27 + $0x1c8] sm:$0xff] %v794_v57  ;;  %v912_v52 = vld [vmem:[%s5717_s17 + $0x740] sm:$0xff]  ;;  %v914_v53 = vld [vmem:[%s5717_s17 + $0x750] sm:$0xff] }
  0x55   : > { %797 = vst [vmem:[%s5722_s27 + $0x1d0] sm:$0xff] %v796_v58  ;;  %v916_v54 = vld [vmem:[%s5717_s17 + $0x760] sm:$0xff]  ;;  %v918_v55 = vld [vmem:[%s5717_s17 + $0x770] sm:$0xff] }
  0x56   : > { %799 = vst [vmem:[%s5722_s27 + $0x1d8] sm:$0xff] %v798_v59  ;;  %v920_v56 = vld [vmem:[%s5717_s17 + $0x780] sm:$0xff]  ;;  %v922_v57 = vld [vmem:[%s5717_s17 + $0x790] sm:$0xff] }
  0x57   : > { %801 = vst [vmem:[%s5722_s27 + $0x1e0] sm:$0xff] %v800_v60  ;;  %v924_v58 = vld [vmem:[%s5717_s17 + $0x7a0] sm:$0xff]  ;;  %v926_v59 = vld [vmem:[%s5717_s17 + $0x7b0] sm:$0xff] }
  0x58   : > { %803 = vst [vmem:[%s5722_s27 + $0x1e8] sm:$0xff] %v802_v61  ;;  %v928_v60 = vld [vmem:[%s5717_s17 + $0x7c0] sm:$0xff]  ;;  %v930_v61 = vld [vmem:[%s5717_s17 + $0x7d0] sm:$0xff] }
  0x59   : > { %805 = vst [vmem:[%s5722_s27 + $0x1f0] sm:$0xff] %v804_v62  ;;  %v932_v62 = vld [vmem:[%s5717_s17 + $0x7e0] sm:$0xff] }
  0x5a   : > { %807 = vst [vmem:[%s5722_s27 + $0x1f8] sm:$0xff] %v806_v63  ;;  %v934_v63 = vld [vmem:[%s5717_s17 + $0x7f0] sm:$0xff] }
  0x5b   : > { %809 = vst [vmem:[%s5722_s27 + $0x200] sm:$0xff] %v808_v0  ;;  %v936_v0 = vld [vmem:[%s5717_s17 + $0x800] sm:$0xff] }
  0x5c   : > { %811 = vst [vmem:[%s5722_s27 + $0x208] sm:$0xff] %v810_v1  ;;  %v938_v1 = vld [vmem:[%s5717_s17 + $0x810] sm:$0xff] }
  0x5d   : > { %813 = vst [vmem:[%s5722_s27 + $0x210] sm:$0xff] %v812_v2  ;;  %v940_v2 = vld [vmem:[%s5717_s17 + $0x820] sm:$0xff] }
  0x5e   : > { %815 = vst [vmem:[%s5722_s27 + $0x218] sm:$0xff] %v814_v3  ;;  %v942_v3 = vld [vmem:[%s5717_s17 + $0x830] sm:$0xff] }
  0x5f   : > { %817 = vst [vmem:[%s5722_s27 + $0x220] sm:$0xff] %v816_v4  ;;  %v944_v4 = vld [vmem:[%s5717_s17 + $0x840] sm:$0xff] }
  0x60   : > { %819 = vst [vmem:[%s5722_s27 + $0x228] sm:$0xff] %v818_v5  ;;  %v946_v5 = vld [vmem:[%s5717_s17 + $0x850] sm:$0xff] }
  0x61   : > { %821 = vst [vmem:[%s5722_s27 + $0x230] sm:$0xff] %v820_v6  ;;  %v948_v6 = vld [vmem:[%s5717_s17 + $0x860] sm:$0xff] }
  0x62   : > { %823 = vst [vmem:[%s5722_s27 + $0x238] sm:$0xff] %v822_v7  ;;  %v950_v7 = vld [vmem:[%s5717_s17 + $0x870] sm:$0xff] }
  0x63   : > { %825 = vst [vmem:[%s5722_s27 + $0x240] sm:$0xff] %v824_v8  ;;  %v952_v8 = vld [vmem:[%s5717_s17 + $0x880] sm:$0xff] }
  0x64   : > { %827 = vst [vmem:[%s5722_s27 + $0x248] sm:$0xff] %v826_v9  ;;  %v954_v9 = vld [vmem:[%s5717_s17 + $0x890] sm:$0xff] }
  0x65   : > { %829 = vst [vmem:[%s5722_s27 + $0x250] sm:$0xff] %v828_v10  ;;  %v956_v10 = vld [vmem:[%s5717_s17 + $0x8a0] sm:$0xff] }
  0x66   : > { %831 = vst [vmem:[%s5722_s27 + $0x258] sm:$0xff] %v830_v11  ;;  %v958_v11 = vld [vmem:[%s5717_s17 + $0x8b0] sm:$0xff] }
  0x67   : > { %833 = vst [vmem:[%s5722_s27 + $0x260] sm:$0xff] %v832_v12  ;;  %v960_v12 = vld [vmem:[%s5717_s17 + $0x8c0] sm:$0xff] }
  0x68   : > { %835 = vst [vmem:[%s5722_s27 + $0x268] sm:$0xff] %v834_v13  ;;  %v962_v13 = vld [vmem:[%s5717_s17 + $0x8d0] sm:$0xff] }
  0x69   : > { %837 = vst [vmem:[%s5722_s27 + $0x270] sm:$0xff] %v836_v14  ;;  %v964_v14 = vld [vmem:[%s5717_s17 + $0x8e0] sm:$0xff] }
  0x6a   : > { %839 = vst [vmem:[%s5722_s27 + $0x278] sm:$0xff] %v838_v15  ;;  %v966_v15 = vld [vmem:[%s5717_s17 + $0x8f0] sm:$0xff] }
  0x6b   : > { %841 = vst [vmem:[%s5722_s27 + $0x280] sm:$0xff] %v840_v16  ;;  %v968_v16 = vld [vmem:[%s5717_s17 + $0x900] sm:$0xff] }
  0x6c   : > { %843 = vst [vmem:[%s5722_s27 + $0x288] sm:$0xff] %v842_v17  ;;  %v970_v17 = vld [vmem:[%s5717_s17 + $0x910] sm:$0xff] }
  0x6d   : > { %845 = vst [vmem:[%s5722_s27 + $0x290] sm:$0xff] %v844_v18  ;;  %v972_v18 = vld [vmem:[%s5717_s17 + $0x920] sm:$0xff] }
  0x6e   : > { %847 = vst [vmem:[%s5722_s27 + $0x298] sm:$0xff] %v846_v19  ;;  %v974_v19 = vld [vmem:[%s5717_s17 + $0x930] sm:$0xff] }
  0x6f   : > { %849 = vst [vmem:[%s5722_s27 + $0x2a0] sm:$0xff] %v848_v20  ;;  %v976_v20 = vld [vmem:[%s5717_s17 + $0x940] sm:$0xff] }
  0x70   : > { %851 = vst [vmem:[%s5722_s27 + $0x2a8] sm:$0xff] %v850_v21  ;;  %v978_v21 = vld [vmem:[%s5717_s17 + $0x950] sm:$0xff] }
  0x71   : > { %853 = vst [vmem:[%s5722_s27 + $0x2b0] sm:$0xff] %v852_v22  ;;  %v980_v22 = vld [vmem:[%s5717_s17 + $0x960] sm:$0xff] }
  0x72   : > { %855 = vst [vmem:[%s5722_s27 + $0x2b8] sm:$0xff] %v854_v23  ;;  %v982_v23 = vld [vmem:[%s5717_s17 + $0x970] sm:$0xff] }
  0x73   : > { %857 = vst [vmem:[%s5722_s27 + $0x2c0] sm:$0xff] %v856_v24  ;;  %v984_v24 = vld [vmem:[%s5717_s17 + $0x980] sm:$0xff] }
  0x74   : > { %859 = vst [vmem:[%s5722_s27 + $0x2c8] sm:$0xff] %v858_v25  ;;  %v986_v25 = vld [vmem:[%s5717_s17 + $0x990] sm:$0xff] }
  0x75   : > { %861 = vst [vmem:[%s5722_s27 + $0x2d0] sm:$0xff] %v860_v26  ;;  %v988_v26 = vld [vmem:[%s5717_s17 + $0x9a0] sm:$0xff] }
  0x76   : > { %863 = vst [vmem:[%s5722_s27 + $0x2d8] sm:$0xff] %v862_v27  ;;  %v990_v27 = vld [vmem:[%s5717_s17 + $0x9b0] sm:$0xff] }
  0x77   : > { %865 = vst [vmem:[%s5722_s27 + $0x2e0] sm:$0xff] %v864_v28  ;;  %v992_v28 = vld [vmem:[%s5717_s17 + $0x9c0] sm:$0xff] }
  0x78   : > { %867 = vst [vmem:[%s5722_s27 + $0x2e8] sm:$0xff] %v866_v29  ;;  %v994_v29 = vld [vmem:[%s5717_s17 + $0x9d0] sm:$0xff] }
  0x79   : > { %869 = vst [vmem:[%s5722_s27 + $0x2f0] sm:$0xff] %v868_v30  ;;  %v996_v30 = vld [vmem:[%s5717_s17 + $0x9e0] sm:$0xff] }
  0x7a   : > { %871 = vst [vmem:[%s5722_s27 + $0x2f8] sm:$0xff] %v870_v31  ;;  %v998_v31 = vld [vmem:[%s5717_s17 + $0x9f0] sm:$0xff] }
  0x7b   : > { %873 = vst [vmem:[%s5722_s27 + $0x300] sm:$0xff] %v872_v32  ;;  %v1000_v32 = vld [vmem:[%s5717_s17 + $0xa00] sm:$0xff] }
  0x7c   : > { %875 = vst [vmem:[%s5722_s27 + $0x308] sm:$0xff] %v874_v33  ;;  %v1002_v33 = vld [vmem:[%s5717_s17 + $0xa10] sm:$0xff] }
  0x7d   : > { %877 = vst [vmem:[%s5722_s27 + $0x310] sm:$0xff] %v876_v34  ;;  %v1004_v34 = vld [vmem:[%s5717_s17 + $0xa20] sm:$0xff] }
  0x7e   : > { %879 = vst [vmem:[%s5722_s27 + $0x318] sm:$0xff] %v878_v35  ;;  %v1006_v35 = vld [vmem:[%s5717_s17 + $0xa30] sm:$0xff] }
  0x7f   : > { %881 = vst [vmem:[%s5722_s27 + $0x320] sm:$0xff] %v880_v36  ;;  %v1008_v36 = vld [vmem:[%s5717_s17 + $0xa40] sm:$0xff] }
  0x80   : > { %883 = vst [vmem:[%s5722_s27 + $0x328] sm:$0xff] %v882_v37  ;;  %v1010_v37 = vld [vmem:[%s5717_s17 + $0xa50] sm:$0xff] }
  0x81   : > { %885 = vst [vmem:[%s5722_s27 + $0x330] sm:$0xff] %v884_v38  ;;  %v1012_v38 = vld [vmem:[%s5717_s17 + $0xa60] sm:$0xff] }
  0x82   : > { %887 = vst [vmem:[%s5722_s27 + $0x338] sm:$0xff] %v886_v39  ;;  %v1014_v39 = vld [vmem:[%s5717_s17 + $0xa70] sm:$0xff] }
  0x83   : > { %889 = vst [vmem:[%s5722_s27 + $0x340] sm:$0xff] %v888_v40  ;;  %v1016_v40 = vld [vmem:[%s5717_s17 + $0xa80] sm:$0xff] }
  0x84   : > { %891 = vst [vmem:[%s5722_s27 + $0x348] sm:$0xff] %v890_v41  ;;  %v1018_v41 = vld [vmem:[%s5717_s17 + $0xa90] sm:$0xff] }
  0x85   : > { %893 = vst [vmem:[%s5722_s27 + $0x350] sm:$0xff] %v892_v42  ;;  %v1020_v42 = vld [vmem:[%s5717_s17 + $0xaa0] sm:$0xff] }
  0x86   : > { %895 = vst [vmem:[%s5722_s27 + $0x358] sm:$0xff] %v894_v43  ;;  %v1022_v43 = vld [vmem:[%s5717_s17 + $0xab0] sm:$0xff] }
  0x87   : > { %897 = vst [vmem:[%s5722_s27 + $0x360] sm:$0xff] %v896_v44  ;;  %v1024_v44 = vld [vmem:[%s5717_s17 + $0xac0] sm:$0xff] }
  0x88   : > { %899 = vst [vmem:[%s5722_s27 + $0x368] sm:$0xff] %v898_v45  ;;  %v1026_v45 = vld [vmem:[%s5717_s17 + $0xad0] sm:$0xff] }
  0x89   : > { %901 = vst [vmem:[%s5722_s27 + $0x370] sm:$0xff] %v900_v46  ;;  %v1028_v46 = vld [vmem:[%s5717_s17 + $0xae0] sm:$0xff] }
  0x8a   : > { %903 = vst [vmem:[%s5722_s27 + $0x378] sm:$0xff] %v902_v47  ;;  %v1030_v47 = vld [vmem:[%s5717_s17 + $0xaf0] sm:$0xff] }
  0x8b   : > { %905 = vst [vmem:[%s5722_s27 + $0x380] sm:$0xff] %v904_v48  ;;  %v1032_v48 = vld [vmem:[%s5717_s17 + $0xb00] sm:$0xff] }
  0x8c   : > { %907 = vst [vmem:[%s5722_s27 + $0x388] sm:$0xff] %v906_v49  ;;  %v1034_v49 = vld [vmem:[%s5717_s17 + $0xb10] sm:$0xff] }
  0x8d   : > { %909 = vst [vmem:[%s5722_s27 + $0x390] sm:$0xff] %v908_v50  ;;  %v1036_v50 = vld [vmem:[%s5717_s17 + $0xb20] sm:$0xff] }
  0x8e   : > { %911 = vst [vmem:[%s5722_s27 + $0x398] sm:$0xff] %v910_v51  ;;  %v1038_v51 = vld [vmem:[%s5717_s17 + $0xb30] sm:$0xff] }
  0x8f   : > { %913 = vst [vmem:[%s5722_s27 + $0x3a0] sm:$0xff] %v912_v52  ;;  %v1040_v52 = vld [vmem:[%s5717_s17 + $0xb40] sm:$0xff] }
  0x90   : > { %915 = vst [vmem:[%s5722_s27 + $0x3a8] sm:$0xff] %v914_v53  ;;  %v1042_v53 = vld [vmem:[%s5717_s17 + $0xb50] sm:$0xff] }
  0x91   : > { %917 = vst [vmem:[%s5722_s27 + $0x3b0] sm:$0xff] %v916_v54  ;;  %v1044_v54 = vld [vmem:[%s5717_s17 + $0xb60] sm:$0xff] }
  0x92   : > { %919 = vst [vmem:[%s5722_s27 + $0x3b8] sm:$0xff] %v918_v55  ;;  %v1046_v55 = vld [vmem:[%s5717_s17 + $0xb70] sm:$0xff] }
  0x93   : > { %921 = vst [vmem:[%s5722_s27 + $0x3c0] sm:$0xff] %v920_v56  ;;  %v1048_v56 = vld [vmem:[%s5717_s17 + $0xb80] sm:$0xff] }
  0x94   : > { %923 = vst [vmem:[%s5722_s27 + $0x3c8] sm:$0xff] %v922_v57  ;;  %v1050_v57 = vld [vmem:[%s5717_s17 + $0xb90] sm:$0xff] }
  0x95   : > { %925 = vst [vmem:[%s5722_s27 + $0x3d0] sm:$0xff] %v924_v58  ;;  %v1052_v58 = vld [vmem:[%s5717_s17 + $0xba0] sm:$0xff] }
  0x96   : > { %927 = vst [vmem:[%s5722_s27 + $0x3d8] sm:$0xff] %v926_v59  ;;  %v1054_v59 = vld [vmem:[%s5717_s17 + $0xbb0] sm:$0xff] }
  0x97   : > { %929 = vst [vmem:[%s5722_s27 + $0x3e0] sm:$0xff] %v928_v60  ;;  %v1056_v60 = vld [vmem:[%s5717_s17 + $0xbc0] sm:$0xff] }
  0x98   : > { %931 = vst [vmem:[%s5722_s27 + $0x3e8] sm:$0xff] %v930_v61  ;;  %v1058_v61 = vld [vmem:[%s5717_s17 + $0xbd0] sm:$0xff] }
  0x99   : > { %933 = vst [vmem:[%s5722_s27 + $0x3f0] sm:$0xff] %v932_v62  ;;  %v1060_v62 = vld [vmem:[%s5717_s17 + $0xbe0] sm:$0xff] }
  0x9a   : > { %935 = vst [vmem:[%s5722_s27 + $0x3f8] sm:$0xff] %v934_v63  ;;  %v1062_v63 = vld [vmem:[%s5717_s17 + $0xbf0] sm:$0xff] }
  0x9b   : > { %937 = vst [vmem:[%s5722_s27 + $0x400] sm:$0xff] %v936_v0  ;;  %v1064_v0 = vld [vmem:[%s5717_s17 + $0xc00] sm:$0xff] }
  0x9c   : > { %939 = vst [vmem:[%s5722_s27 + $0x408] sm:$0xff] %v938_v1  ;;  %v1066_v1 = vld [vmem:[%s5717_s17 + $0xc10] sm:$0xff] }
  0x9d   : > { %941 = vst [vmem:[%s5722_s27 + $0x410] sm:$0xff] %v940_v2  ;;  %v1068_v2 = vld [vmem:[%s5717_s17 + $0xc20] sm:$0xff] }
  0x9e   : > { %943 = vst [vmem:[%s5722_s27 + $0x418] sm:$0xff] %v942_v3  ;;  %v1070_v3 = vld [vmem:[%s5717_s17 + $0xc30] sm:$0xff] }
  0x9f   : > { %945 = vst [vmem:[%s5722_s27 + $0x420] sm:$0xff] %v944_v4  ;;  %v1072_v4 = vld [vmem:[%s5717_s17 + $0xc40] sm:$0xff] }
  0xa0   : > { %947 = vst [vmem:[%s5722_s27 + $0x428] sm:$0xff] %v946_v5  ;;  %v1074_v5 = vld [vmem:[%s5717_s17 + $0xc50] sm:$0xff] }
  0xa1   : > { %949 = vst [vmem:[%s5722_s27 + $0x430] sm:$0xff] %v948_v6  ;;  %v1076_v6 = vld [vmem:[%s5717_s17 + $0xc60] sm:$0xff] }
  0xa2   : > { %951 = vst [vmem:[%s5722_s27 + $0x438] sm:$0xff] %v950_v7  ;;  %v1078_v7 = vld [vmem:[%s5717_s17 + $0xc70] sm:$0xff] }
  0xa3   : > { %953 = vst [vmem:[%s5722_s27 + $0x440] sm:$0xff] %v952_v8  ;;  %v1080_v8 = vld [vmem:[%s5717_s17 + $0xc80] sm:$0xff] }
  0xa4   : > { %955 = vst [vmem:[%s5722_s27 + $0x448] sm:$0xff] %v954_v9  ;;  %v1082_v9 = vld [vmem:[%s5717_s17 + $0xc90] sm:$0xff] }
  0xa5   : > { %957 = vst [vmem:[%s5722_s27 + $0x450] sm:$0xff] %v956_v10  ;;  %v1084_v10 = vld [vmem:[%s5717_s17 + $0xca0] sm:$0xff] }
  0xa6   : > { %959 = vst [vmem:[%s5722_s27 + $0x458] sm:$0xff] %v958_v11  ;;  %v1086_v11 = vld [vmem:[%s5717_s17 + $0xcb0] sm:$0xff] }
  0xa7   : > { %961 = vst [vmem:[%s5722_s27 + $0x460] sm:$0xff] %v960_v12  ;;  %v1088_v12 = vld [vmem:[%s5717_s17 + $0xcc0] sm:$0xff] }
  0xa8   : > { %963 = vst [vmem:[%s5722_s27 + $0x468] sm:$0xff] %v962_v13  ;;  %v1090_v13 = vld [vmem:[%s5717_s17 + $0xcd0] sm:$0xff] }
  0xa9   : > { %965 = vst [vmem:[%s5722_s27 + $0x470] sm:$0xff] %v964_v14  ;;  %v1092_v14 = vld [vmem:[%s5717_s17 + $0xce0] sm:$0xff] }
  0xaa   : > { %967 = vst [vmem:[%s5722_s27 + $0x478] sm:$0xff] %v966_v15  ;;  %v1094_v15 = vld [vmem:[%s5717_s17 + $0xcf0] sm:$0xff] }
  0xab   : > { %969 = vst [vmem:[%s5722_s27 + $0x480] sm:$0xff] %v968_v16  ;;  %v1096_v16 = vld [vmem:[%s5717_s17 + $0xd00] sm:$0xff] }
  0xac   : > { %971 = vst [vmem:[%s5722_s27 + $0x488] sm:$0xff] %v970_v17  ;;  %v1098_v17 = vld [vmem:[%s5717_s17 + $0xd10] sm:$0xff] }
  0xad   : > { %973 = vst [vmem:[%s5722_s27 + $0x490] sm:$0xff] %v972_v18  ;;  %v1100_v18 = vld [vmem:[%s5717_s17 + $0xd20] sm:$0xff] }
  0xae   : > { %975 = vst [vmem:[%s5722_s27 + $0x498] sm:$0xff] %v974_v19  ;;  %v1102_v19 = vld [vmem:[%s5717_s17 + $0xd30] sm:$0xff] }
  0xaf   : > { %977 = vst [vmem:[%s5722_s27 + $0x4a0] sm:$0xff] %v976_v20  ;;  %v1104_v20 = vld [vmem:[%s5717_s17 + $0xd40] sm:$0xff] }
  0xb0   : > { %979 = vst [vmem:[%s5722_s27 + $0x4a8] sm:$0xff] %v978_v21  ;;  %v1106_v21 = vld [vmem:[%s5717_s17 + $0xd50] sm:$0xff] }
  0xb1   : > { %981 = vst [vmem:[%s5722_s27 + $0x4b0] sm:$0xff] %v980_v22  ;;  %v1108_v22 = vld [vmem:[%s5717_s17 + $0xd60] sm:$0xff] }
  0xb2   : > { %983 = vst [vmem:[%s5722_s27 + $0x4b8] sm:$0xff] %v982_v23  ;;  %v1110_v23 = vld [vmem:[%s5717_s17 + $0xd70] sm:$0xff] }
  0xb3   : > { %985 = vst [vmem:[%s5722_s27 + $0x4c0] sm:$0xff] %v984_v24  ;;  %v1112_v24 = vld [vmem:[%s5717_s17 + $0xd80] sm:$0xff] }
  0xb4   : > { %987 = vst [vmem:[%s5722_s27 + $0x4c8] sm:$0xff] %v986_v25  ;;  %v1114_v25 = vld [vmem:[%s5717_s17 + $0xd90] sm:$0xff] }
  0xb5   : > { %989 = vst [vmem:[%s5722_s27 + $0x4d0] sm:$0xff] %v988_v26  ;;  %v1116_v26 = vld [vmem:[%s5717_s17 + $0xda0] sm:$0xff] }
  0xb6   : > { %991 = vst [vmem:[%s5722_s27 + $0x4d8] sm:$0xff] %v990_v27  ;;  %v1118_v27 = vld [vmem:[%s5717_s17 + $0xdb0] sm:$0xff] }
  0xb7   : > { %993 = vst [vmem:[%s5722_s27 + $0x4e0] sm:$0xff] %v992_v28  ;;  %v1120_v28 = vld [vmem:[%s5717_s17 + $0xdc0] sm:$0xff] }
  0xb8   : > { %995 = vst [vmem:[%s5722_s27 + $0x4e8] sm:$0xff] %v994_v29  ;;  %v1122_v29 = vld [vmem:[%s5717_s17 + $0xdd0] sm:$0xff] }
  0xb9   : > { %997 = vst [vmem:[%s5722_s27 + $0x4f0] sm:$0xff] %v996_v30  ;;  %v1124_v30 = vld [vmem:[%s5717_s17 + $0xde0] sm:$0xff] }
  0xba   : > { %999 = vst [vmem:[%s5722_s27 + $0x4f8] sm:$0xff] %v998_v31  ;;  %v1126_v31 = vld [vmem:[%s5717_s17 + $0xdf0] sm:$0xff] }
  0xbb   : > { %1001 = vst [vmem:[%s5722_s27 + $0x500] sm:$0xff] %v1000_v32 }
  0xbc   : > { %1003 = vst [vmem:[%s5722_s27 + $0x508] sm:$0xff] %v1002_v33 }
  0xbd   : > { %1005 = vst [vmem:[%s5722_s27 + $0x510] sm:$0xff] %v1004_v34 }
  0xbe   : > { %1007 = vst [vmem:[%s5722_s27 + $0x518] sm:$0xff] %v1006_v35 }
  0xbf   : > { %1009 = vst [vmem:[%s5722_s27 + $0x520] sm:$0xff] %v1008_v36 }
  0xc0   : > { %1011 = vst [vmem:[%s5722_s27 + $0x528] sm:$0xff] %v1010_v37 }
  0xc1   : > { %1013 = vst [vmem:[%s5722_s27 + $0x530] sm:$0xff] %v1012_v38 }
  0xc2   : > { %1015 = vst [vmem:[%s5722_s27 + $0x538] sm:$0xff] %v1014_v39 }
  0xc3   : > { %1017 = vst [vmem:[%s5722_s27 + $0x540] sm:$0xff] %v1016_v40 }
  0xc4   : > { %1019 = vst [vmem:[%s5722_s27 + $0x548] sm:$0xff] %v1018_v41 }
  0xc5   : > { %1021 = vst [vmem:[%s5722_s27 + $0x550] sm:$0xff] %v1020_v42 }
  0xc6   : > { %1023 = vst [vmem:[%s5722_s27 + $0x558] sm:$0xff] %v1022_v43 }
  0xc7   : > { %1025 = vst [vmem:[%s5722_s27 + $0x560] sm:$0xff] %v1024_v44 }
  0xc8   : > { %1027 = vst [vmem:[%s5722_s27 + $0x568] sm:$0xff] %v1026_v45 }
  0xc9   : > { %1029 = vst [vmem:[%s5722_s27 + $0x570] sm:$0xff] %v1028_v46 }
  0xca   : > { %1031 = vst [vmem:[%s5722_s27 + $0x578] sm:$0xff] %v1030_v47 }
  0xcb   : > { %1033 = vst [vmem:[%s5722_s27 + $0x580] sm:$0xff] %v1032_v48 }
  0xcc   : > { %1035 = vst [vmem:[%s5722_s27 + $0x588] sm:$0xff] %v1034_v49 }
  0xcd   : > { %1037 = vst [vmem:[%s5722_s27 + $0x590] sm:$0xff] %v1036_v50 }
  0xce   : > { %1039 = vst [vmem:[%s5722_s27 + $0x598] sm:$0xff] %v1038_v51 }
  0xcf   : > { %1041 = vst [vmem:[%s5722_s27 + $0x5a0] sm:$0xff] %v1040_v52 }
  0xd0   : > { %1043 = vst [vmem:[%s5722_s27 + $0x5a8] sm:$0xff] %v1042_v53 }
  0xd1   : > { %1045 = vst [vmem:[%s5722_s27 + $0x5b0] sm:$0xff] %v1044_v54 }
  0xd2   : > { %1047 = vst [vmem:[%s5722_s27 + $0x5b8] sm:$0xff] %v1046_v55 }
  0xd3   : > { %1049 = vst [vmem:[%s5722_s27 + $0x5c0] sm:$0xff] %v1048_v56 }
  0xd4   : > { %1051 = vst [vmem:[%s5722_s27 + $0x5c8] sm:$0xff] %v1050_v57 }
  0xd5   : > { %1053 = vst [vmem:[%s5722_s27 + $0x5d0] sm:$0xff] %v1052_v58 }
  0xd6   : > { %1055 = vst [vmem:[%s5722_s27 + $0x5d8] sm:$0xff] %v1054_v59 }
  0xd7   : > { %1057 = vst [vmem:[%s5722_s27 + $0x5e0] sm:$0xff] %v1056_v60 }
  0xd8   : > { %1059 = vst [vmem:[%s5722_s27 + $0x5e8] sm:$0xff] %v1058_v61 }
  0xd9   : > { %1061 = vst [vmem:[%s5722_s27 + $0x5f0] sm:$0xff] %v1060_v62 }
  0xda   : > { %1063 = vst [vmem:[%s5722_s27 + $0x5f8] sm:$0xff] %v1062_v63 }
  0xdb   : > { %1065 = vst [vmem:[%s5722_s27 + $0x600] sm:$0xff] %v1064_v0 }
  0xdc   : > { %1067 = vst [vmem:[%s5722_s27 + $0x608] sm:$0xff] %v1066_v1 }
  0xdd   : > { %1069 = vst [vmem:[%s5722_s27 + $0x610] sm:$0xff] %v1068_v2 }
  0xde   : > { %1071 = vst [vmem:[%s5722_s27 + $0x618] sm:$0xff] %v1070_v3 }
  0xdf   : > { %1073 = vst [vmem:[%s5722_s27 + $0x620] sm:$0xff] %v1072_v4 }
  0xe0   : > { %1075 = vst [vmem:[%s5722_s27 + $0x628] sm:$0xff] %v1074_v5 }
  0xe1   : > { %1077 = vst [vmem:[%s5722_s27 + $0x630] sm:$0xff] %v1076_v6 }
  0xe2   : > { %1079 = vst [vmem:[%s5722_s27 + $0x638] sm:$0xff] %v1078_v7 }
  0xe3   : > { %1081 = vst [vmem:[%s5722_s27 + $0x640] sm:$0xff] %v1080_v8 }
  0xe4   : > { %1083 = vst [vmem:[%s5722_s27 + $0x648] sm:$0xff] %v1082_v9 }
  0xe5   : > { %1085 = vst [vmem:[%s5722_s27 + $0x650] sm:$0xff] %v1084_v10 }
  0xe6   : > { %1087 = vst [vmem:[%s5722_s27 + $0x658] sm:$0xff] %v1086_v11 }
  0xe7   : > { %1089 = vst [vmem:[%s5722_s27 + $0x660] sm:$0xff] %v1088_v12 }
  0xe8   : > { %1091 = vst [vmem:[%s5722_s27 + $0x668] sm:$0xff] %v1090_v13 }
  0xe9   : > { %1093 = vst [vmem:[%s5722_s27 + $0x670] sm:$0xff] %v1092_v14 }
  0xea   : > { %1095 = vst [vmem:[%s5722_s27 + $0x678] sm:$0xff] %v1094_v15 }
  0xeb   : > { %1097 = vst [vmem:[%s5722_s27 + $0x680] sm:$0xff] %v1096_v16 }
  0xec   : > { %1099 = vst [vmem:[%s5722_s27 + $0x688] sm:$0xff] %v1098_v17 }
  0xed   : > { %1101 = vst [vmem:[%s5722_s27 + $0x690] sm:$0xff] %v1100_v18 }
  0xee   : > { %1103 = vst [vmem:[%s5722_s27 + $0x698] sm:$0xff] %v1102_v19 }
  0xef   : > { %1105 = vst [vmem:[%s5722_s27 + $0x6a0] sm:$0xff] %v1104_v20 }
  0xf0   : > { %1107 = vst [vmem:[%s5722_s27 + $0x6a8] sm:$0xff] %v1106_v21 }
  0xf1   : > { %1109 = vst [vmem:[%s5722_s27 + $0x6b0] sm:$0xff] %v1108_v22 }
  0xf2   : > { %1111 = vst [vmem:[%s5722_s27 + $0x6b8] sm:$0xff] %v1110_v23 }
  0xf3   : > { %1113 = vst [vmem:[%s5722_s27 + $0x6c0] sm:$0xff] %v1112_v24 }
  0xf4   : > { %1115 = vst [vmem:[%s5722_s27 + $0x6c8] sm:$0xff] %v1114_v25 }
  0xf5   : > { %1117 = vst [vmem:[%s5722_s27 + $0x6d0] sm:$0xff] %v1116_v26 }
  0xf6   : > { %1119 = vst [vmem:[%s5722_s27 + $0x6d8] sm:$0xff] %v1118_v27 }
  0xf7   : > { %1121 = vst [vmem:[%s5722_s27 + $0x6e0] sm:$0xff] %v1120_v28 }
  0xf8   : > { %1123 = vst [vmem:[%s5722_s27 + $0x6e8] sm:$0xff] %v1122_v29 }
  0xf9   : > { %1125 = vst [vmem:[%s5722_s27 + $0x6f0] sm:$0xff] %v1124_v30 }
  0xfa   : > { %1127 = vst [vmem:[%s5722_s27 + $0x6f8] sm:$0xff] %v1126_v31 }
  0xfb PF: > { %p4050_p9 = scmp.ge.s32.totalorder %s5619_s24, 1  ;;  %p1132_p10 = scmp.lt.s32.totalorder %s5619_s24, 5 }
  0xfd   : > { %p1133_p11 = pnand %p4050_p9, %p1132_p10 }
  0xff   : > { %1136 = sbr.rel (%p1133_p11) target bundleno = 1121 (0x461), region = 74 }
 0x104   : > { %s1139_s28 = sand.u32 1, %s5595_s18   ;;  %v1452_v10 = vld [vmem:[%s7549_s2 + $0x20] sm:$0xff]  ;;  %v5209_v16 = vld [vmem:[%s7548_s1 + $0x34] sm:$0xf0]  ;;  %v5621_v20 = vmov 0   ;;  %vm3808_vm0 = vcmask 523264  }
 0x105   : > { %s5504_s30 = smul.u32 1792, %s1139_s28  ;;  %v4054_v15 = vld [vmem:[%s7548_s1] sm:$0xf]  ;;  %5563 = vset.pattern.permute.xlu1 %v5621_v20  ;;  %5562 = vset.pattern.permute.xlu0 %v5621_v20  ;;  %v5237_v26 = vld [vmem:[%s7548_s1 + $0x114] sm:$0xf0]  ;;  %s4051_s27 = sshll.u32 %s1139_s28, 7 }
 0x106   : > { %1478 = vperm.xlu1 %5563, %v1452_v10   ;;  %5564 = vset.pattern.permute.xlu2 %v5621_v20  ;;  %v4166_v25 = vld [vmem:[%s7548_s1 + $0xe0] sm:$0xf]  ;;  %v5230_v27 = vld [vmem:[%s7548_s1 + $0xe4] sm:$0xf]  ;;  %v4168_v29 = vld [vmem:[%s7548_s1 + $0x118] sm:$0xf0] }
 0x107   : > { %s6174_s6 = scalar_lea.vmem [#allocation2], %s5504_s30  ;;  %s7450_s30 = scalar_lea.vmem [#allocation3], %s4051_s27 }
 0x108   : > { %v4334_v32 = vld [vmem:[%s6174_s6 + $0x70] sm:$0xf]  ;;  %v5273_v33 = vld [vmem:[%s6174_s6 + $0x74] sm:$0xf0]  ;;  %v4326_v37 = vld [vmem:[%s6174_s6 + $0x60] sm:$0xf] }
 0x109   : > { %v4398_v34 = vld [vmem:[%s6174_s6 + $0xf0] sm:$0xf]  ;;  %v4335_v35 = vor.u32 %v5273_v33, %v4334_v32  ;;  %v5289_v36 = vld [vmem:[%s6174_s6 + $0xf4] sm:$0xf0]  ;;  %v5271_v38 = vld [vmem:[%s6174_s6 + $0x64] sm:$0xf0] }
 0x10a   : > { %v4399_v39 = vor.u32 %v5289_v36, %v4398_v34  ;;  %v4390_v40 = vld [vmem:[%s6174_s6 + $0xe0] sm:$0xf]  ;;  %v5287_v41 = vld [vmem:[%s6174_s6 + $0xe4] sm:$0xf0]  ;;  %v4327_v42 = vor.u32 %v5271_v38, %v4326_v37  ;;  %v4318_v44 = vld [vmem:[%s6174_s6 + $0x50] sm:$0xf]  ;;  %v6240_v38 = vor.u32 %v5209_v16, %v4054_v15 }
 0x10b   : > { %2896 = vmatpush.bf16.msra.mxu0 %v4335_v35  ;;  %5486 = vmatpush.bf16.msra.mxu2 %v4335_v35  ;;  %v4391_v43 = vor.u32 %v5287_v41, %v4390_v40  ;;  %v5269_v45 = vld [vmem:[%s6174_s6 + $0x54] sm:$0xf0]  ;;  %v4382_v46 = vld [vmem:[%s6174_s6 + $0xd0] sm:$0xf]  ;;  %v4310_v50 = vld [vmem:[%s6174_s6 + $0x40] sm:$0xf] }
 0x10c   : > { %5494 = vmatpush.bf16.msra.mxu3 %v4399_v39  ;;  %2925 = vmatpush.bf16.msra.mxu1 %v4399_v39  ;;  %v5285_v47 = vld [vmem:[%s6174_s6 + $0xd4] sm:$0xf0]  ;;  %v4319_v48 = vor.u32 %v5269_v45, %v4318_v44  ;;  %v5267_v51 = vld [vmem:[%s6174_s6 + $0x44] sm:$0xf0]  ;;  %v4374_v52 = vld [vmem:[%s6174_s6 + $0xc0] sm:$0xf]  ;;  %v6242_v39 = vor.u32 %v5237_v26, %v4166_v25 }
 0x10d   : > { %v4383_v49 = vor.u32 %v5285_v47, %v4382_v46  ;;  %v5283_v53 = vld [vmem:[%s6174_s6 + $0xc4] sm:$0xf0]  ;;  %v4311_v54 = vor.u32 %v5267_v51, %v4310_v50  ;;  %v4302_v56 = vld [vmem:[%s6174_s6 + $0x30] sm:$0xf]  ;;  %v5265_v57 = vld [vmem:[%s6174_s6 + $0x34] sm:$0xf0] }
 0x10e   : > { %v4375_v55 = vor.u32 %v5283_v53, %v4374_v52  ;;  %v4366_v58 = vld [vmem:[%s6174_s6 + $0xb0] sm:$0xf]  ;;  %v5281_v59 = vld [vmem:[%s6174_s6 + $0xb4] sm:$0xf0]  ;;  %v4303_v60 = vor.u32 %v5265_v57, %v4302_v56  ;;  %v4294_v62 = vld [vmem:[%s6174_s6 + $0x20] sm:$0xf] }
 0x10f   : > { %2897 = vmatpush.bf16.msra.mxu0 %v4327_v42  ;;  %5487 = vmatpush.bf16.msra.mxu2 %v4327_v42  ;;  %v4367_v61 = vor.u32 %v5281_v59, %v4366_v58  ;;  %v5263_v63 = vld [vmem:[%s6174_s6 + $0x24] sm:$0xf0]  ;;  %v4358_v0 = vld [vmem:[%s6174_s6 + $0xa0] sm:$0xf]  ;;  %v4286_v4 = vld [vmem:[%s6174_s6 + $0x10] sm:$0xf] }
 0x110   : > { %5495 = vmatpush.bf16.msra.mxu3 %v4391_v43  ;;  %2926 = vmatpush.bf16.msra.mxu1 %v4391_v43  ;;  %v5279_v1 = vld [vmem:[%s6174_s6 + $0xa4] sm:$0xf0]  ;;  %v4295_v2 = vor.u32 %v5263_v63, %v4294_v62  ;;  %v5261_v5 = vld [vmem:[%s6174_s6 + $0x14] sm:$0xf0]  ;;  %v4350_v6 = vld [vmem:[%s6174_s6 + $0x90] sm:$0xf]  ;;  %v6247_v43 = vor.u32 %v5230_v27, %v4168_v29 }
 0x111   : > { %v4359_v3 = vor.u32 %v5279_v1, %v4358_v0  ;;  %v5277_v7 = vld [vmem:[%s6174_s6 + $0x94] sm:$0xf0]  ;;  %v4287_v8 = vor.u32 %v5261_v5, %v4286_v4  ;;  %v4278_v9 = vld [vmem:[%s6174_s6] sm:$0xf]  ;;  %v5259_v12 = vld [vmem:[%s6174_s6 + $0x4] sm:$0xf0] }
 0x112   : > { %v4351_v11 = vor.u32 %v5277_v7, %v4350_v6  ;;  %v4342_v13 = vld [vmem:[%s6174_s6 + $0x80] sm:$0xf]  ;;  %v5275_v14 = vld [vmem:[%s6174_s6 + $0x84] sm:$0xf0]  ;;  %v4462_v17 = vld [vmem:[%s6174_s6 + $0x170] sm:$0xf]  ;;  %v4279_v24 = vor.u32 %v5259_v12, %v4278_v9 }
 0x113   : > { %2898 = vmatpush.bf16.msra.mxu0 %v4319_v48  ;;  %5488 = vmatpush.bf16.msra.mxu2 %v4319_v48  ;;  %v5305_v18 = vld [vmem:[%s6174_s6 + $0x174] sm:$0xf0]  ;;  %v4526_v19 = vld [vmem:[%s6174_s6 + $0x1f0] sm:$0xf]  ;;  %v4343_v28 = vor.u32 %v5275_v14, %v4342_v13  ;;  %v4454_v31 = vld [vmem:[%s6174_s6 + $0x160] sm:$0xf] }
 0x114   : > { %5496 = vmatpush.bf16.msra.mxu3 %v4383_v49  ;;  %2927 = vmatpush.bf16.msra.mxu1 %v4383_v49  ;;  %v5321_v21 = vld [vmem:[%s6174_s6 + $0x1f4] sm:$0xf0]  ;;  %v4590_v22 = vld [vmem:[%s6174_s6 + $0x270] sm:$0xf]  ;;  %v4463_v30 = vor.u32 %v5305_v18, %v4462_v17  ;;  %v5303_v32 = vld [vmem:[%s6174_s6 + $0x164] sm:$0xf0] }
 0x115   : > { %v5337_v23 = vld [vmem:[%s6174_s6 + $0x274] sm:$0xf0]  ;;  %v4527_v33 = vor.u32 %v5321_v21, %v4526_v19  ;;  %v4518_v35 = vld [vmem:[%s6174_s6 + $0x1e0] sm:$0xf]  ;;  %v4654_v36 = vld [vmem:[%s6174_s6 + $0x2f0] sm:$0xf]  ;;  %v4455_v46 = vor.u32 %v5303_v32, %v4454_v31 }
 0x116   : > { %v4591_v34 = vor.u32 %v5337_v23, %v4590_v22  ;;  %v5353_v37 = vld [vmem:[%s6174_s6 + $0x2f4] sm:$0xf0]  ;;  %v5319_v40 = vld [vmem:[%s6174_s6 + $0x1e4] sm:$0xf0]  ;;  %v4582_v41 = vld [vmem:[%s6174_s6 + $0x260] sm:$0xf] }
 0x117   : > { %2899 = vmatpush.bf16.msra.mxu0 %v4311_v54  ;;  %5489 = vmatpush.bf16.msra.mxu2 %v4311_v54  ;;  %v5335_v42 = vld [vmem:[%s6174_s6 + $0x264] sm:$0xf0]  ;;  %v5202_v44 = vld [vmem:[%s7548_s1 + $0x4] sm:$0xf]  ;;  %v4056_v45 = vld [vmem:[%s7548_s1 + $0x38] sm:$0xf0]  ;;  %v4655_v49 = vor.u32 %v5353_v37, %v4654_v36  ;;  %v4519_v50 = vor.u32 %v5319_v40, %v4518_v35 }
 0x118   : > { %5497 = vmatpush.bf16.msra.mxu3 %v4375_v55  ;;  %2928 = vmatpush.bf16.msra.mxu1 %v4375_v55  ;;  %v4446_v47 = vld [vmem:[%s6174_s6 + $0x150] sm:$0xf]  ;;  %v5301_v48 = vld [vmem:[%s6174_s6 + $0x154] sm:$0xf0]  ;;  %v4583_v51 = vor.u32 %v5335_v42, %v4582_v41  ;;  %v4646_v53 = vld [vmem:[%s6174_s6 + $0x2e0] sm:$0xf]  ;;  %v6265_v58 = vor.u32 %v5202_v44, %v4056_v45 }
 0x119   : > { %v4510_v52 = vld [vmem:[%s6174_s6 + $0x1d0] sm:$0xf]  ;;  %v5351_v54 = vld [vmem:[%s6174_s6 + $0x2e4] sm:$0xf0]  ;;  %v5317_v55 = vld [vmem:[%s6174_s6 + $0x1d4] sm:$0xf0] }
 0x11a   : > { %v4574_v56 = vld [vmem:[%s6174_s6 + $0x250] sm:$0xf]  ;;  %v5333_v57 = vld [vmem:[%s6174_s6 + $0x254] sm:$0xf0]  ;;  %v1453_v59 = vld [vmem:[%s7549_s2 + $0x28] sm:$0xff]  ;;  %v4647_v63 = vor.u32 %v5351_v54, %v4646_v53  ;;  %v4511_v1 = vor.u32 %v5317_v55, %v4510_v52  ;;  %s5197_s18 = sshll.u32 (%p5700_p6), %s5603_s20, 1 }
 0x11b   : > { %2900 = vmatpush.bf16.msra.mxu0 %v4303_v60  ;;  %5490 = vmatpush.bf16.msra.mxu2 %v4303_v60  ;;  %v4447_v60 = vor.u32 %v5301_v48, %v4446_v47  ;;  %v5299_v62 = vld [vmem:[%s6174_s6 + $0x144] sm:$0xf0]  ;;  %v1454_v0 = vld [vmem:[%s7549_s2 + $0x30] sm:$0xff]  ;;  %v5349_v5 = vld [vmem:[%s6174_s6 + $0x2d4] sm:$0xf0]  ;;  %s5198_s28 = sshll.u32 (%p5700_p6), %s5607_s21, 5 }
 0x11c   : > { %5498 = vmatpush.bf16.msra.mxu3 %v4367_v61  ;;  %2929 = vmatpush.bf16.msra.mxu1 %v4367_v61  ;;  %v4438_v61 = vld [vmem:[%s6174_s6 + $0x140] sm:$0xf]  ;;  %v4638_v4 = vld [vmem:[%s6174_s6 + $0x2d0] sm:$0xf]  ;;  %v5315_v6 = vld [vmem:[%s6174_s6 + $0x1c4] sm:$0xf0] }
 0x11d   : > { %v4566_v7 = vld [vmem:[%s6174_s6 + $0x240] sm:$0xf]  ;;  %1483 = vperm.xlu1 %5563, %v1453_v59   ;;  %1488 = vperm.xlu0 %5562, %v1454_v0   ;;  %v4439_v9 = vor.u32 %v5299_v62, %v4438_v61  ;;  %v4430_v10 = vld [vmem:[%s6174_s6 + $0x130] sm:$0xf]  ;;  %v4639_v12 = vor.u32 %v5349_v5, %v4638_v4  ;;  %v5223_v16 = vld [vmem:[%s7548_s1 + $0xa4] sm:$0xf0] }
 0x11e   : > { %v4110_v15 = vld [vmem:[%s7548_s1 + $0x70] sm:$0xf]  ;;  %v4630_v19 = vld [vmem:[%s6174_s6 + $0x2c0] sm:$0xf]  ;;  %v5347_v20 = vld [vmem:[%s6174_s6 + $0x2c4] sm:$0xf0] }
 0x11f   : > { %2901 = vmatpush.bf16.msra.mxu0 %v4295_v2  ;;  %5491 = vmatpush.bf16.msra.mxu2 %v4295_v2  ;;  %v4575_v2 = vor.u32 %v5333_v57, %v4574_v56  ;;  %v4222_v17 = vld [vmem:[%s7548_s1 + $0x150] sm:$0xf]  ;;  %v5313_v21 = vld [vmem:[%s6174_s6 + $0x1b4] sm:$0xf0]  ;;  %v5244_v25 = vld [vmem:[%s7548_s1 + $0x154] sm:$0xf]  ;;  %v6317_v37 = vor.u32 %v5223_v16, %v4110_v15 }
 0x120   : > { %5499 = vmatpush.bf16.msra.mxu3 %v4359_v3  ;;  %2930 = vmatpush.bf16.msra.mxu1 %v4359_v3  ;;  %v4502_v3 = vld [vmem:[%s6174_s6 + $0x1c0] sm:$0xf]  ;;  %v4494_v18 = vld [vmem:[%s6174_s6 + $0x1b0] sm:$0xf]  ;;  %v5329_v23 = vld [vmem:[%s6174_s6 + $0x234] sm:$0xf0] }
 0x121   : > { %v4503_v13 = vor.u32 %v5315_v6, %v4502_v3  ;;  %v4558_v22 = vld [vmem:[%s6174_s6 + $0x230] sm:$0xf]  ;;  %v4224_v26 = vld [vmem:[%s7548_s1 + $0x188] sm:$0xf0]  ;;  %v5295_v29 = vld [vmem:[%s6174_s6 + $0x124] sm:$0xf0]  ;;  %v4495_v32 = vor.u32 %v5313_v21, %v4494_v18 }
 0x122   : > { %v1455_v31 = vld [vmem:[%s7549_s2 + $0x38] sm:$0xff]  ;;  %v4622_v35 = vld [vmem:[%s6174_s6 + $0x2b0] sm:$0xf]  ;;  %v5311_v41 = vld [vmem:[%s6174_s6 + $0x1a4] sm:$0xf0]  ;;  %v6324_v45 = vor.u32 %v5244_v25, %v4224_v26 }
 0x123   : > { %2902 = vmatpush.bf16.msra.mxu0 %v4287_v8  ;;  %5492 = vmatpush.bf16.msra.mxu2 %v4287_v8  ;;  %v5331_v8 = vld [vmem:[%s6174_s6 + $0x244] sm:$0xf0]  ;;  %v5345_v36 = vld [vmem:[%s6174_s6 + $0x2b4] sm:$0xf0]  ;;  %v4550_v42 = vld [vmem:[%s6174_s6 + $0x220] sm:$0xf] }
 0x124   : > { %5500 = vmatpush.bf16.msra.mxu3 %v4351_v11  ;;  %2931 = vmatpush.bf16.msra.mxu1 %v4351_v11  ;;  %v5297_v11 = vld [vmem:[%s6174_s6 + $0x134] sm:$0xf0]  ;;  %v4567_v14 = vor.u32 %v5331_v8, %v4566_v7  ;;  %v5327_v44 = vld [vmem:[%s6174_s6 + $0x224] sm:$0xf0]  ;;  %v4112_v47 = vld [vmem:[%s7548_s1 + $0xa8] sm:$0xf0] }
 0x125   : > { %v4431_v27 = vor.u32 %v5297_v11, %v4430_v10  ;;  %1493 = vperm.xlu0 %5562, %v1455_v31   ;;  %v4551_v53 = vor.u32 %v5327_v44, %v4550_v42  ;;  %v4478_v54 = vld [vmem:[%s6174_s6 + $0x190] sm:$0xf]  ;;  %v4614_v55 = vld [vmem:[%s6174_s6 + $0x2a0] sm:$0xf]  ;;  %v5343_v56 = vld [vmem:[%s6174_s6 + $0x2a4] sm:$0xf0] }
 0x126   : > { %v5309_v57 = vld [vmem:[%s6174_s6 + $0x194] sm:$0xf0]  ;;  %v4542_v59 = vld [vmem:[%s6174_s6 + $0x210] sm:$0xf]  ;;  %v1449_v62 = vld [vmem:[%s7549_s2 + $0x8] sm:$0xff] }
 0x127   : > { %2903 = vmatpush.bf16.msra.mxu0 %v4279_v24  ;;  %5493 = vmatpush.bf16.msra.mxu2 %v4279_v24  ;;  %v5251_v24 = vld [vmem:[%s7548_s1 + $0x184] sm:$0xf0]  ;;  %v4406_v0 = vld [vmem:[%s6174_s6 + $0x100] sm:$0xf]  ;;  %v4479_v4 = vor.u32 %v5309_v57, %v4478_v54  ;;  %v4606_v7 = vld [vmem:[%s6174_s6 + $0x290] sm:$0xf] }
 0x128   : > { %5501 = vmatpush.bf16.msra.mxu3 %v4343_v28  ;;  %2932 = vmatpush.bf16.msra.mxu1 %v4343_v28  ;;  %v4422_v28 = vld [vmem:[%s6174_s6 + $0x120] sm:$0xf]  ;;  %v6319_v40 = vor.u32 %v5251_v24, %v4222_v17  ;;  %v5341_v8 = vld [vmem:[%s6174_s6 + $0x294] sm:$0xf0]  ;;  %v5323_v11 = vld [vmem:[%s6174_s6 + $0x204] sm:$0xf0] }
 0x129   : > { %v4423_v48 = vor.u32 %v5295_v29, %v4422_v28  ;;  %v1448_v3 = vld [vmem:[%s7549_s2] sm:$0xff]  ;;  %1463 = vperm.xlu1 %5563, %v1449_v62   ;;  %v5339_v17 = vld [vmem:[%s6174_s6 + $0x284] sm:$0xf0]  ;;  %v5204_v28 = vld [vmem:[%s7548_s1 + $0x14] sm:$0xf] }
 0x12a   : > { %2904 = vmatmul.bf16.vlgmr.msra.gmra.mxu0 %v6240_v38  ;;  %2914 = vmatmul.bf16.vlgmr.msra.gmra.mxu2 %v6242_v39  ;;  %v4470_v6 = vld [vmem:[%s6174_s6 + $0x180] sm:$0xf]  ;;  %v4062_v18 = vld [vmem:[%s7548_s1 + $0x8] sm:$0xf]  ;;  %v4072_v29 = vld [vmem:[%s7548_s1 + $0x48] sm:$0xf0] }
 0x12b   : > { %2954 = vmatpush.bf16.msrb.mxu2 %v4463_v30  ;;  %3012 = vmatpush.bf16.msrb.mxu0 %v4591_v34  ;;  %v4631_v30 = vor.u32 %v5347_v20, %v4630_v19  ;;  %v4486_v34 = vld [vmem:[%s6174_s6 + $0x1a0] sm:$0xf]  ;;  %v4070_v20 = vld [vmem:[%s7548_s1 + $0x10] sm:$0xf]  ;;  %v5211_v21 = vld [vmem:[%s7548_s1 + $0x44] sm:$0xf0] }
 0x12c   : > { %2983 = vmatpush.bf16.msrb.mxu3 %v4527_v33  ;;  %3041 = vmatpush.bf16.msrb.mxu1 %v4655_v49  ;;  %v4559_v33 = vor.u32 %v5329_v23, %v4558_v22  ;;  %v4414_v49 = vld [vmem:[%s6174_s6 + $0x110] sm:$0xf]  ;;  %v4487_v52 = vor.u32 %v5311_v41, %v4486_v34  ;;  %v4534_v10 = vld [vmem:[%s6174_s6 + $0x200] sm:$0xf]  ;;  %v5203_v22 = vld [vmem:[%s7548_s1 + $0xc] sm:$0xf]  ;;  %v6382_v26 = vor.u32 %v5211_v21, %v4070_v20 }
 0x12d   : > { %2943 = vmatmul.bf16.vlgmr.msra.gmra.mxu3 %v6247_v43  ;;  %2933 = vmatmul.bf16.vlgmr.msra.gmra.mxu1 %v6265_v58  ;;  %v4535_v15 = vor.u32 %v5323_v11, %v4534_v10  ;;  %v4598_v16 = vld [vmem:[%s6174_s6 + $0x280] sm:$0xf]  ;;  %v4064_v23 = vld [vmem:[%s7548_s1 + $0x40] sm:$0xf0]  ;;  %v5369_v31 = vld [vmem:[%s6174_s6 + $0x374] sm:$0xf0] }
 0x12e   : > { %1458 = vperm.xlu0 %5562, %v1448_v3   ;;  %v5210_v19 = vld [vmem:[%s7548_s1 + $0x3c] sm:$0xf0]  ;;  %v4599_v24 = vor.u32 %v5339_v17, %v4598_v16  ;;  %v4782_v34 = vld [vmem:[%s6174_s6 + $0x3f0] sm:$0xf]  ;;  %v5401_v42 = vld [vmem:[%s6174_s6 + $0x474] sm:$0xf0] }
 0x12f   : > { %2955 = vmatpush.bf16.msrb.mxu2 %v4455_v46  ;;  %3013 = vmatpush.bf16.msrb.mxu0 %v4583_v51  ;;  %v5216_v46 = vld [vmem:[%s7548_s1 + $0x74] sm:$0xf]  ;;  %v4623_v51 = vor.u32 %v5345_v36, %v4622_v35  ;;  %v6380_v25 = vor.u32 %v5210_v19, %v4062_v18  ;;  %v5385_v35 = vld [vmem:[%s6174_s6 + $0x3f4] sm:$0xf0]  ;;  %v4846_v36 = vld [vmem:[%s6174_s6 + $0x470] sm:$0xf] }
 0x130   : > { %2984 = vmatpush.bf16.msrb.mxu3 %v4519_v50  ;;  %3042 = vmatpush.bf16.msrb.mxu1 %v4647_v63  ;;  %v5293_v50 = vld [vmem:[%s6174_s6 + $0x114] sm:$0xf0]  ;;  %v6342_v61 = vor.u32 %v5216_v46, %v4112_v47  ;;  %v4783_v41 = vor.u32 %v5385_v35, %v4782_v34  ;;  %v4710_v44 = vld [vmem:[%s6174_s6 + $0x360] sm:$0xf]  ;;  %v5367_v46 = vld [vmem:[%s6174_s6 + $0x364] sm:$0xf0]  ;;  %v4847_v47 = vor.u32 %v5401_v42, %v4846_v36 }
 0x131   : > { %v4415_v63 = vor.u32 %v5293_v50, %v4414_v49  ;;  %v4774_v49 = vld [vmem:[%s6174_s6 + $0x3e0] sm:$0xf]  ;;  %v5383_v50 = vld [vmem:[%s6174_s6 + $0x3e4] sm:$0xf0]  ;;  %v4702_v54 = vld [vmem:[%s6174_s6 + $0x350] sm:$0xf] }
 0x132   : > { %v4766_v57 = vld [vmem:[%s6174_s6 + $0x3d0] sm:$0xf]  ;;  %v5397_v62 = vld [vmem:[%s6174_s6 + $0x454] sm:$0xf0]  ;;  %v4694_v3 = vld [vmem:[%s6174_s6 + $0x340] sm:$0xf] }
 0x133   : > { %2956 = vmatpush.bf16.msrb.mxu2 %v4447_v60  ;;  %3014 = vmatpush.bf16.msrb.mxu0 %v4575_v2  ;;  %v5325_v60 = vld [vmem:[%s6174_s6 + $0x214] sm:$0xf0]  ;;  %v4615_v2 = vor.u32 %v5343_v56, %v4614_v55  ;;  %v5217_v10 = vld [vmem:[%s7548_s1 + $0x7c] sm:$0xf]  ;;  %v4126_v11 = vld [vmem:[%s7548_s1 + $0x80] sm:$0xf] }
 0x134   : > { %2985 = vmatpush.bf16.msrb.mxu3 %v4511_v1  ;;  %3043 = vmatpush.bf16.msrb.mxu1 %v4639_v12  ;;  %v5291_v1 = vld [vmem:[%s6174_s6 + $0x104] sm:$0xf0]  ;;  %v4543_v5 = vor.u32 %v5325_v60, %v4542_v59  ;;  %v5365_v55 = vld [vmem:[%s6174_s6 + $0x354] sm:$0xf0]  ;;  %v4830_v60 = vld [vmem:[%s6174_s6 + $0x450] sm:$0xf] }
 0x135   : > { %v4407_v12 = vor.u32 %v5291_v1, %v4406_v0  ;;  %v5381_v59 = vld [vmem:[%s6174_s6 + $0x3d4] sm:$0xf0]  ;;  %v5224_v1 = vld [vmem:[%s7548_s1 + $0xac] sm:$0xf0]  ;;  %v4822_v16 = vld [vmem:[%s6174_s6 + $0x440] sm:$0xf] }
 0x136   : > { %v4118_v0 = vld [vmem:[%s7548_s1 + $0x78] sm:$0xf]  ;;  %v5395_v17 = vld [vmem:[%s6174_s6 + $0x444] sm:$0xf0]  ;;  %v4814_v35 = vld [vmem:[%s6174_s6 + $0x430] sm:$0xf] }
 0x137   : > { %2957 = vmatpush.bf16.msrb.mxu2 %v4439_v9  ;;  %3015 = vmatpush.bf16.msrb.mxu0 %v4567_v14  ;;  %v5307_v9 = vld [vmem:[%s6174_s6 + $0x184] sm:$0xf0]  ;;  %v6442_v19 = vor.u32 %v5224_v1, %v4118_v0  ;;  %v5377_v34 = vld [vmem:[%s6174_s6 + $0x3b4] sm:$0xf0]  ;;  %v4902_v42 = vld [vmem:[%s6174_s6 + $0x4e0] sm:$0xf] }
 0x138   : > { %2986 = vmatpush.bf16.msrb.mxu3 %v4503_v13  ;;  %3044 = vmatpush.bf16.msrb.mxu1 %v4631_v30  ;;  %v4607_v13 = vor.u32 %v5341_v8, %v4606_v7  ;;  %v4471_v14 = vor.u32 %v5307_v9, %v4470_v6  ;;  %v4718_v30 = vld [vmem:[%s6174_s6 + $0x370] sm:$0xf]  ;;  %v4831_v6 = vor.u32 %v5397_v62, %v4830_v60  ;;  %v5379_v7 = vld [vmem:[%s6174_s6 + $0x3c4] sm:$0xf0]  ;;  %v5417_v9 = vld [vmem:[%s6174_s6 + $0x4f4] sm:$0xf0] }
 0x139   : > { %v4910_v8 = vld [vmem:[%s6174_s6 + $0x4f0] sm:$0xf]  ;;  %v5357_v0 = vld [vmem:[%s6174_s6 + $0x314] sm:$0xf0] }
 0x13a   : > { %2909 = vmatmul.bf16.gmra.mxu0 %v6317_v37  ;;  %2919 = vmatmul.bf16.gmra.mxu2 %v6319_v40  ;;  %v4734_v1 = vld [vmem:[%s6174_s6 + $0x390] sm:$0xf] }
 0x13b   : > { %2958 = vmatpush.bf16.msrb.mxu2 %v4431_v27  ;;  %3016 = vmatpush.bf16.msrb.mxu0 %v4559_v33  ;;  %v6384_v27 = vor.u32 %v5203_v22, %v4064_v23  ;;  %v4719_v33 = vor.u32 %v5369_v31, %v4718_v30  ;;  %v5218_v22 = vld [vmem:[%s7548_s1 + $0x84] sm:$0xf]  ;;  %v4128_v23 = vld [vmem:[%s7548_s1 + $0xb8] sm:$0xf0] }
 0x13c   : > { %2987 = vmatpush.bf16.msrb.mxu3 %v4495_v32  ;;  %3045 = vmatpush.bf16.msrb.mxu1 %v4623_v51  ;;  %v6396_v32 = vor.u32 %v5204_v28, %v4072_v29  ;;  %v4838_v51 = vld [vmem:[%s6174_s6 + $0x460] sm:$0xf]  ;;  %v4686_v28 = vld [vmem:[%s6174_s6 + $0x330] sm:$0xf]  ;;  %v5361_v29 = vld [vmem:[%s6174_s6 + $0x334] sm:$0xf0]  ;;  %v6458_v30 = vor.u32 %v5218_v22, %v4128_v23 }
 0x13d   : > { %2948 = vmatmul.bf16.gmra.mxu3 %v6324_v45  ;;  %2938 = vmatmul.bf16.gmra.mxu1 %v6342_v61  ;;  %v4687_v31 = vor.u32 %v5361_v29, %v4686_v28  ;;  %v4726_v22 = vld [vmem:[%s6174_s6 + $0x380] sm:$0xf]  ;;  %v5371_v23 = vld [vmem:[%s6174_s6 + $0x384] sm:$0xf0] }
 0x13e   : > { %v4790_v29 = vld [vmem:[%s6174_s6 + $0x400] sm:$0xf] }
 0x13f   : > { %2959 = vmatpush.bf16.msrb.mxu2 %v4423_v48  ;;  %3017 = vmatpush.bf16.msrb.mxu0 %v4551_v53  ;;  %v4711_v48 = vor.u32 %v5367_v46, %v4710_v44  ;;  %v5399_v53 = vld [vmem:[%s6174_s6 + $0x464] sm:$0xf0] }
 0x140   : > { %2988 = vmatpush.bf16.msrb.mxu3 %v4487_v52  ;;  %3046 = vmatpush.bf16.msrb.mxu1 %v4615_v2  ;;  %v4775_v52 = vor.u32 %v5383_v50, %v4774_v49  ;;  %v4839_v56 = vor.u32 %v5399_v53, %v4838_v51  ;;  %v4767_v2 = vor.u32 %v5381_v59, %v4766_v57  ;;  %v5415_v44 = vld [vmem:[%s6174_s6 + $0x4e4] sm:$0xf0]  ;;  %v4678_v49 = vld [vmem:[%s6174_s6 + $0x320] sm:$0xf]  ;;  %v4894_v57 = vld [vmem:[%s6174_s6 + $0x4d0] sm:$0xf] }
 0x141   : > { %v5359_v50 = vld [vmem:[%s6174_s6 + $0x324] sm:$0xf0]  ;;  %v5413_v59 = vld [vmem:[%s6174_s6 + $0x4d4] sm:$0xf0] }
 0x142   : > { %v4679_v51 = vor.u32 %v5359_v50, %v4678_v49  ;;  %v5375_v53 = vld [vmem:[%s6174_s6 + $0x3a4] sm:$0xf0]  ;;  %v4895_v62 = vor.u32 %v5413_v59, %v4894_v57  ;;  %v4870_v49 = vld [vmem:[%s6174_s6 + $0x4a0] sm:$0xf]  ;;  %v4230_v59 = vld [vmem:[%s7548_s1 + $0x158] sm:$0xf] }
 0x143   : > { %2960 = vmatpush.bf16.msrb.mxu2 %v4415_v63  ;;  %3018 = vmatpush.bf16.msrb.mxu0 %v4543_v5  ;;  %v4703_v63 = vor.u32 %v5365_v55, %v4702_v54  ;;  %v4758_v5 = vld [vmem:[%s6174_s6 + $0x3c0] sm:$0xf]  ;;  %v5407_v50 = vld [vmem:[%s6174_s6 + $0x4a4] sm:$0xf0] }
 0x144   : > { %2989 = vmatpush.bf16.msrb.mxu3 %v4479_v4  ;;  %3047 = vmatpush.bf16.msrb.mxu1 %v4607_v13  ;;  %v5363_v4 = vld [vmem:[%s6174_s6 + $0x344] sm:$0xf0]  ;;  %v4911_v13 = vor.u32 %v5417_v9, %v4910_v8  ;;  %v4759_v18 = vor.u32 %v5379_v7, %v4758_v5  ;;  %v4806_v54 = vld [vmem:[%s6174_s6 + $0x420] sm:$0xf]  ;;  %v5389_v5 = vld [vmem:[%s6174_s6 + $0x414] sm:$0xf0] }
 0x145   : > { %v5238_v7 = vld [vmem:[%s7548_s1 + $0x11c] sm:$0xf0]  ;;  %v4182_v8 = vld [vmem:[%s7548_s1 + $0xf0] sm:$0xf]  ;;  %v5403_v57 = vld [vmem:[%s6174_s6 + $0x484] sm:$0xf0] }
 0x147   : > { %2961 = vmatpush.bf16.msrb.mxu2 %v4407_v12  ;;  %3019 = vmatpush.bf16.msrb.mxu0 %v4535_v15  ;;  %v5225_v12 = vld [vmem:[%s7548_s1 + $0xb4] sm:$0xf0]  ;;  %v4695_v15 = vor.u32 %v5363_v4, %v4694_v3  ;;  %v4798_v4 = vld [vmem:[%s6174_s6 + $0x410] sm:$0xf] }
 0x148   : > { %2990 = vmatpush.bf16.msrb.mxu3 %v4471_v14  ;;  %3048 = vmatpush.bf16.msrb.mxu1 %v4599_v24  ;;  %v4120_v14 = vld [vmem:[%s7548_s1 + $0xb0] sm:$0xf0]  ;;  %v6444_v20 = vor.u32 %v5225_v12, %v4126_v11  ;;  %v4823_v24 = vor.u32 %v5395_v17, %v4822_v16  ;;  %v5373_v3 = vld [vmem:[%s6174_s6 + $0x394] sm:$0xf0]  ;;  %v5411_v11 = vld [vmem:[%s6174_s6 + $0x4c4] sm:$0xf0]  ;;  %v4799_v16 = vor.u32 %v5389_v5, %v4798_v4 }
 0x149   : > { %v6446_v21 = vor.u32 %v5217_v10, %v4120_v14  ;;  %v4735_v9 = vor.u32 %v5373_v3, %v4734_v1  ;;  %v4886_v10 = vld [vmem:[%s6174_s6 + $0x4c0] sm:$0xf]  ;;  %v5231_v12 = vld [vmem:[%s7548_s1 + $0xec] sm:$0xf]  ;;  %v1451_v14 = vld [vmem:[%s7549_s2 + $0x18] sm:$0xff] }
 0x14a   : > { %2962 = vmatmul.bf16.vlgmr.msrb.gmra.mxu2 %v6380_v25  ;;  %3020 = vmatmul.bf16.vlgmr.msrb.gmra.mxu0 %v6382_v26  ;;  %v4887_v17 = vor.u32 %v5411_v11, %v4886_v10  ;;  %v4232_v1 = vld [vmem:[%s7548_s1 + $0x190] sm:$0xf0]  ;;  %v5212_v10 = vld [vmem:[%s7548_s1 + $0x4c] sm:$0xf0]  ;;  %v4086_v11 = vld [vmem:[%s7548_s1 + $0x20] sm:$0xf] }
 0x14b   : > { %3070 = vmatpush.bf16.msra.mxu2 %v4719_v33  ;;  %3128 = vmatpush.bf16.msra.mxu0 %v4847_v47  ;;  %v4750_v33 = vld [vmem:[%s6174_s6 + $0x3b0] sm:$0xf]  ;;  %v4903_v47 = vor.u32 %v5415_v44, %v4902_v42  ;;  %v5232_v44 = vld [vmem:[%s7548_s1 + $0xf4] sm:$0xf] }
 0x14c   : > { %3099 = vmatpush.bf16.msra.mxu3 %v4783_v41  ;;  %3157 = vmatpush.bf16.msra.mxu1 %v4911_v13  ;;  %v4751_v36 = vor.u32 %v5377_v34, %v4750_v33  ;;  %v5393_v41 = vld [vmem:[%s6174_s6 + $0x434] sm:$0xf0]  ;;  %v5239_v13 = vld [vmem:[%s7548_s1 + $0x124] sm:$0xf0]  ;;  %v4727_v33 = vor.u32 %v5371_v23, %v4726_v22  ;;  %v4878_v34 = vld [vmem:[%s6174_s6 + $0x4b0] sm:$0xf] }
 0x14d   : > { %2991 = vmatmul.bf16.vlgmr.msrb.gmra.mxu3 %v6384_v27  ;;  %3049 = vmatmul.bf16.vlgmr.msrb.gmra.mxu1 %v6396_v32  ;;  %v4815_v46 = vor.u32 %v5393_v41, %v4814_v35  ;;  %v5409_v35 = vld [vmem:[%s6174_s6 + $0x4b4] sm:$0xf0]  ;;  %v6518_v41 = vor.u32 %v5239_v13, %v4182_v8  ;;  %v5205_v13 = vld [vmem:[%s7548_s1 + $0x1c] sm:$0xf]  ;;  %v4974_v23 = vld [vmem:[%s6174_s6 + $0x570] sm:$0xf] }
 0x14e   : > { %v4088_v22 = vld [vmem:[%s7548_s1 + $0x58] sm:$0xf0] }
 0x14f   : > { %3071 = vmatpush.bf16.msra.mxu2 %v4711_v48  ;;  %3129 = vmatpush.bf16.msra.mxu0 %v4839_v56  ;;  %v1450_v48 = vld [vmem:[%s7549_s2 + $0x10] sm:$0xff]  ;;  %v5391_v56 = vld [vmem:[%s6174_s6 + $0x424] sm:$0xf0] }
 0x150   : > { %3100 = vmatpush.bf16.msra.mxu3 %v4775_v52  ;;  %1468 = vperm.xlu2 %5564, %v1450_v48   ;;  %v4742_v52 = vld [vmem:[%s6174_s6 + $0x3a0] sm:$0xf]  ;;  %v4807_v60 = vor.u32 %v5391_v56, %v4806_v54  ;;  %v4879_v48 = vor.u32 %v5409_v35, %v4878_v34  ;;  %v5405_v54 = vld [vmem:[%s6174_s6 + $0x494] sm:$0xf0]  ;;  %v5102_v34 = vld [vmem:[%s6174_s6 + $0x670] sm:$0xf] }
 0x151   : > { %v4743_v55 = vor.u32 %v5375_v53, %v4742_v52  ;;  %3158 = vmatpush.bf16.msra.mxu1 %v4903_v47  ;;  %v4871_v52 = vor.u32 %v5407_v50, %v4870_v49  ;;  %v4862_v53 = vld [vmem:[%s6174_s6 + $0x490] sm:$0xf]  ;;  %v4854_v56 = vld [vmem:[%s6174_s6 + $0x480] sm:$0xf] }
 0x152   : > { %v5030_v49 = vld [vmem:[%s6174_s6 + $0x5e0] sm:$0xf] }
 0x153   : > { %3072 = vmatpush.bf16.msra.mxu2 %v4703_v63  ;;  %3130 = vmatpush.bf16.msra.mxu0 %v4831_v6  ;;  %v4670_v63 = vld [vmem:[%s6174_s6 + $0x310] sm:$0xf]  ;;  %v4174_v6 = vld [vmem:[%s7548_s1 + $0xe8] sm:$0xf] }
 0x154   : > { %3101 = vmatpush.bf16.msra.mxu3 %v4767_v2  ;;  %v4671_v2 = vor.u32 %v5357_v0, %v4670_v63  ;;  %v5253_v63 = vld [vmem:[%s7548_s1 + $0x194] sm:$0xf0]  ;;  %v5245_v0 = vld [vmem:[%s7548_s1 + $0x15c] sm:$0xf] }
 0x155   : > { %3159 = vmatpush.bf16.msra.mxu1 %v4895_v62  ;;  %v4238_v62 = vld [vmem:[%s7548_s1 + $0x160] sm:$0xf]  ;;  %v6562_v5 = vor.u32 %v5245_v0, %v4232_v1  ;;  %v5086_v0 = vld [vmem:[%s6174_s6 + $0x650] sm:$0xf]  ;;  %v5461_v1 = vld [vmem:[%s6174_s6 + $0x654] sm:$0xf0] }
 0x156   : > { %v6560_v4 = vor.u32 %v5253_v63, %v4238_v62  ;;  %v5445_v63 = vld [vmem:[%s6174_s6 + $0x5d4] sm:$0xf0] }
 0x157   : > { %3073 = vmatpush.bf16.msra.mxu2 %v4695_v15  ;;  %3131 = vmatpush.bf16.msra.mxu0 %v4823_v24  ;;  %v4662_v15 = vld [vmem:[%s6174_s6 + $0x300] sm:$0xf]  ;;  %v4176_v24 = vld [vmem:[%s7548_s1 + $0x120] sm:$0xf0] }
 0x158   : > { %3102 = vmatpush.bf16.msra.mxu3 %v4759_v18  ;;  %v5355_v18 = vld [vmem:[%s6174_s6 + $0x304] sm:$0xf0]  ;;  %1473 = vperm.xlu2 %5564, %v1451_v14   ;;  %v6520_v42 = vor.u32 %v5231_v12, %v4176_v24  ;;  %v5213_v12 = vld [vmem:[%s7548_s1 + $0x54] sm:$0xf0]  ;;  %v4080_v14 = vld [vmem:[%s7548_s1 + $0x50] sm:$0xf0] }
 0x159   : > { %v4663_v28 = vor.u32 %v5355_v18, %v4662_v15  ;;  %3160 = vmatpush.bf16.msra.mxu1 %v4887_v17  ;;  %v6598_v17 = vor.u32 %v5205_v13, %v4080_v14  ;;  %v5206_v18 = vld [vmem:[%s7548_s1 + $0x24] sm:$0xf]  ;;  %v5433_v24 = vld [vmem:[%s6174_s6 + $0x574] sm:$0xf0]  ;;  %v5220_v14 = vld [vmem:[%s7548_s1 + $0x94] sm:$0xf] }
 0x15a   : > { %2967 = vmatmul.bf16.gmra.mxu2 %v6442_v19  ;;  %3025 = vmatmul.bf16.gmra.mxu0 %v6444_v20  ;;  %v4136_v13 = vld [vmem:[%s7548_s1 + $0xc0] sm:$0xf0] }
 0x15b   : > { %3074 = vmatpush.bf16.msra.mxu2 %v4687_v31  ;;  %3132 = vmatpush.bf16.msra.mxu0 %v4815_v46  ;;  %v5387_v31 = vld [vmem:[%s6174_s6 + $0x404] sm:$0xf0]  ;;  %v4184_v46 = vld [vmem:[%s7548_s1 + $0x128] sm:$0xf0] }
 0x15c   : > { %3103 = vmatpush.bf16.msra.mxu3 %v4751_v36  ;;  %v6516_v36 = vor.u32 %v5238_v7, %v4174_v6  ;;  %v4791_v47 = vor.u32 %v5387_v31, %v4790_v29  ;;  %v5246_v6 = vld [vmem:[%s7548_s1 + $0x164] sm:$0xf]  ;;  %v4240_v7 = vld [vmem:[%s7548_s1 + $0x198] sm:$0xf0]  ;;  %v4975_v29 = vor.u32 %v5433_v24, %v4974_v23  ;;  %v5038_v31 = vld [vmem:[%s6174_s6 + $0x5f0] sm:$0xf] }
 0x15d   : > { %2996 = vmatmul.bf16.gmra.mxu3 %v6446_v21  ;;  %3054 = vmatmul.bf16.gmra.mxu1 %v6458_v30  ;;  %v6572_v8 = vor.u32 %v5246_v6, %v4240_v7  ;;  %v5087_v7 = vor.u32 %v5461_v1, %v5086_v0  ;;  %v5014_v23 = vld [vmem:[%s6174_s6 + $0x5c0] sm:$0xf] }
 0x15e   : > { %3161 = vmatpush.bf16.msra.mxu1 %v4879_v48  ;;  %v5431_v48 = vld [vmem:[%s6174_s6 + $0x564] sm:$0xf0]  ;;  %v5158_v1 = vld [vmem:[%s6174_s6 + $0x6e0] sm:$0xf] }
 0x15f   : > { %3075 = vmatpush.bf16.msra.mxu2 %v4679_v51  ;;  %3133 = vmatpush.bf16.msra.mxu0 %v4807_v60  ;;  %v6532_v51 = vor.u32 %v5232_v44, %v4184_v46  ;;  %v5252_v60 = vld [vmem:[%s7548_s1 + $0x18c] sm:$0xf0]  ;;  %7581 = vst [vmem:[#allocation4_spill] sm:$0xff] %v6572_v8  ;;  %v5465_v44 = vld [vmem:[%s6174_s6 + $0x674] sm:$0xf0] }
 0x160   : > { %3104 = vmatpush.bf16.msra.mxu3 %v4743_v55  ;;  %v4863_v55 = vor.u32 %v5405_v54, %v4862_v53  ;;  %v6558_v3 = vor.u32 %v5252_v60, %v4230_v59  ;;  %v5103_v46 = vor.u32 %v5465_v44, %v5102_v34  ;;  %v5094_v53 = vld [vmem:[%s6174_s6 + $0x660] sm:$0xf]  ;;  %v5463_v54 = vld [vmem:[%s6174_s6 + $0x664] sm:$0xf0]  ;;  %v5429_v59 = vld [vmem:[%s6174_s6 + $0x554] sm:$0xf0] }
 0x161   : > { %v5022_v60 = vld [vmem:[%s6174_s6 + $0x5d0] sm:$0xf]  ;;  %v5078_v34 = vld [vmem:[%s6174_s6 + $0x640] sm:$0xf] }
 0x162   : > { %3162 = vmatpush.bf16.msra.mxu1 %v4871_v52  ;;  %v5447_v52 = vld [vmem:[%s6174_s6 + $0x5e4] sm:$0xf0]  ;;  %v5023_v6 = vor.u32 %v5445_v63, %v5022_v60  ;;  %v5070_v60 = vld [vmem:[%s6174_s6 + $0x630] sm:$0xf] }
 0x163   : > { %3076 = vmatpush.bf16.msra.mxu2 %v4671_v2  ;;  %3134 = vmatpush.bf16.msra.mxu0 %v4799_v16  ;;  %v4855_v2 = vor.u32 %v5403_v57, %v4854_v56  ;;  %v6596_v16 = vor.u32 %v5213_v12, %v4086_v11  ;;  %v5095_v56 = vor.u32 %v5463_v54, %v5094_v53  ;;  %v4958_v57 = vld [vmem:[%s6174_s6 + $0x550] sm:$0xf]  ;;  %v5227_v11 = vld [vmem:[%s7548_s1 + $0xc4] sm:$0xf0]  ;;  %v5219_v12 = vld [vmem:[%s7548_s1 + $0x8c] sm:$0xf] }
 0x164   : > { %3105 = vmatpush.bf16.msra.mxu3 %v4735_v9  ;;  %v4078_v9 = vld [vmem:[%s7548_s1 + $0x18] sm:$0xf]  ;;  %v4959_v62 = vor.u32 %v5429_v59, %v4958_v57  ;;  %v6661_v44 = vor.u32 %v5219_v12, %v4136_v13  ;;  %v4942_v54 = vld [vmem:[%s6174_s6 + $0x530] sm:$0xf]  ;;  %v5439_v13 = vld [vmem:[%s6174_s6 + $0x5a4] sm:$0xf0] }
 0x165   : > { %v6594_v15 = vor.u32 %v5212_v10, %v4078_v9  ;;  %7582 = vst [vmem:[#allocation5_spill] sm:$0xff] %v6596_v16  ;;  %v5226_v9 = vld [vmem:[%s7548_s1 + $0xbc] sm:$0xf0]  ;;  %v4142_v10 = vld [vmem:[%s7548_s1 + $0x90] sm:$0xf] }
 0x166   : > { %3163 = vmatpush.bf16.msra.mxu1 %v4863_v55  ;;  %v5031_v55 = vor.u32 %v5447_v52, %v5030_v49  ;;  %v5166_v49 = vld [vmem:[%s6174_s6 + $0x6f0] sm:$0xf]  ;;  %v5441_v59 = vld [vmem:[%s6174_s6 + $0x5b4] sm:$0xf0] }
 0x167   : > { %3077 = vmatpush.bf16.msra.mxu2 %v4663_v28  ;;  %3135 = vmatpush.bf16.msra.mxu0 %v4791_v47  ;;  %v6610_v28 = vor.u32 %v5206_v18, %v4088_v22  ;;  %v4966_v47 = vld [vmem:[%s6174_s6 + $0x560] sm:$0xf]  ;;  %v5427_v22 = vld [vmem:[%s6174_s6 + $0x544] sm:$0xf0] }
 0x168   : > { %3106 = vmatpush.bf16.msra.mxu3 %v4727_v33  ;;  %v5449_v33 = vld [vmem:[%s6174_s6 + $0x5f4] sm:$0xf0]  ;;  %v4967_v50 = vor.u32 %v5431_v48, %v4966_v47  ;;  %v4950_v18 = vld [vmem:[%s6174_s6 + $0x540] sm:$0xf] }
 0x169   : > { %7583 = vst [vmem:[#allocation6_spill] sm:$0xff] %v6610_v28  ;;  %v5039_v35 = vor.u32 %v5449_v33, %v5038_v31  ;;  %v4951_v31 = vor.u32 %v5427_v22, %v4950_v18  ;;  %v5443_v33 = vld [vmem:[%s6174_s6 + $0x5c4] sm:$0xf0] }
 0x16a   : > { %2972 = vmatmul.bf16.gmra.mxu2 %v6516_v36  ;;  %3030 = vmatmul.bf16.gmra.mxu0 %v6518_v41  ;;  %v5015_v47 = vor.u32 %v5443_v33, %v5014_v23  ;;  %v5455_v18 = vld [vmem:[%s6174_s6 + $0x624] sm:$0xf0]  ;;  %v5477_v33 = vld [vmem:[%s6174_s6 + $0x6d4] sm:$0xf0] }
 0x16b   : > { %3164 = vmatpush.bf16.msra.mxu1 %v4855_v2  ;;  %3186 = vmatpush.bf16.msrb.mxu2 %v4975_v29  ;;  %v4134_v2 = vld [vmem:[%s7548_s1 + $0x88] sm:$0xf]  ;;  %v6656_v29 = vor.u32 %v5227_v11, %v4142_v10  ;;  %v4998_v10 = vld [vmem:[%s6174_s6 + $0x5a0] sm:$0xf] }
 0x16c   : > { %3215 = vmatpush.bf16.msrb.mxu3 %v5039_v35  ;;  %3244 = vmatpush.bf16.msrb.mxu0 %v5103_v46  ;;  %v6654_v24 = vor.u32 %v5226_v9, %v4134_v2  ;;  %v5459_v35 = vld [vmem:[%s6174_s6 + $0x644] sm:$0xf0]  ;;  %v4144_v46 = vld [vmem:[%s7548_s1 + $0xc8] sm:$0xf0]  ;;  %v4999_v22 = vor.u32 %v5439_v13, %v4998_v10 }
 0x16d   : > { %3001 = vmatmul.bf16.gmra.mxu3 %v6520_v42  ;;  %3059 = vmatmul.bf16.gmra.mxu1 %v6532_v51  ;;  %7584 = vst [vmem:[#allocation7_spill] sm:$0xff] %v6656_v29  ;;  %v5079_v48 = vor.u32 %v5459_v35, %v5078_v34  ;;  %v6670_v53 = vor.u32 %v5220_v14, %v4144_v46  ;;  %v5479_v2 = vld [vmem:[%s6174_s6 + $0x6e4] sm:$0xf0]  ;;  %v5062_v14 = vld [vmem:[%s6174_s6 + $0x620] sm:$0xf] }
 0x16e   : > { %v5423_v9 = vld [vmem:[%s6174_s6 + $0x524] sm:$0xf0]  ;;  %v5063_v23 = vor.u32 %v5455_v18, %v5062_v14  ;;  %v4926_v35 = vld [vmem:[%s6174_s6 + $0x510] sm:$0xf]  ;;  %v5421_v46 = vld [vmem:[%s6174_s6 + $0x514] sm:$0xf0] }
 0x16f   : > { %3187 = vmatpush.bf16.msrb.mxu2 %v4967_v50  ;;  %v5481_v50 = vld [vmem:[%s6174_s6 + $0x6f4] sm:$0xf0]  ;;  %7585 = vst [vmem:[#allocation8_spill] sm:$0xff] %v6670_v53  ;;  %v5419_v10 = vld [vmem:[%s6174_s6 + $0x504] sm:$0xf0] }
 0x170   : > { %3216 = vmatpush.bf16.msrb.mxu3 %v5031_v55  ;;  %3245 = vmatpush.bf16.msrb.mxu0 %v5095_v56  ;;  %v5167_v52 = vor.u32 %v5481_v50, %v5166_v49  ;;  %v5425_v55 = vld [vmem:[%s6174_s6 + $0x534] sm:$0xf0]  ;;  %v5006_v56 = vld [vmem:[%s6174_s6 + $0x5b0] sm:$0xf]  ;;  %v4927_v49 = vor.u32 %v5421_v46, %v4926_v35  ;;  %v4200_v35 = vld [vmem:[%s7548_s1 + $0x138] sm:$0xf0] }
 0x171   : > { %v4943_v57 = vor.u32 %v5425_v55, %v4942_v54  ;;  %v5007_v63 = vor.u32 %v5441_v59, %v5006_v56  ;;  %v5437_v50 = vld [vmem:[%s6174_s6 + $0x594] sm:$0xf0]  ;;  %v5475_v59 = vld [vmem:[%s6174_s6 + $0x6c4] sm:$0xf0] }
 0x172   : > { %3273 = vmatpush.bf16.msrb.mxu1 %v5167_v52  ;;  %v5054_v52 = vld [vmem:[%s6174_s6 + $0x610] sm:$0xf]  ;;  %v5453_v54 = vld [vmem:[%s6174_s6 + $0x614] sm:$0xf0] }
 0x173   : > { %3188 = vmatpush.bf16.msrb.mxu2 %v4959_v62  ;;  %v5457_v62 = vld [vmem:[%s6174_s6 + $0x634] sm:$0xf0] }
 0x174   : > { %3217 = vmatpush.bf16.msrb.mxu3 %v5023_v6  ;;  %3246 = vmatpush.bf16.msrb.mxu0 %v5087_v7  ;;  %v5071_v0 = vor.u32 %v5457_v62, %v5070_v60  ;;  %v5159_v6 = vor.u32 %v5479_v2, %v5158_v1  ;;  %v4934_v7 = vld [vmem:[%s6174_s6 + $0x520] sm:$0xf]  ;;  %v4190_v55 = vld [vmem:[%s7548_s1 + $0xf8] sm:$0xf]  ;;  %v5240_v60 = vld [vmem:[%s7548_s1 + $0x12c] sm:$0xf0] }
 0x175   : > { %v4935_v12 = vor.u32 %v5423_v9, %v4934_v7  ;;  %v4198_v62 = vld [vmem:[%s7548_s1 + $0x100] sm:$0xf]  ;;  %v5233_v1 = vld [vmem:[%s7548_s1 + $0xfc] sm:$0xf]  ;;  %v4192_v2 = vld [vmem:[%s7548_s1 + $0x130] sm:$0xf0]  ;;  %v6726_v13 = vor.u32 %v5240_v60, %v4190_v55 }
 0x176   : > { %3274 = vmatpush.bf16.msrb.mxu1 %v5159_v6  ;;  %v5234_v7 = vld [vmem:[%s7548_s1 + $0x104] sm:$0xf]  ;;  %v4918_v9 = vld [vmem:[%s6174_s6 + $0x500] sm:$0xf] }
 0x177   : > { %3189 = vmatpush.bf16.msrb.mxu2 %v4951_v31  ;;  %v5150_v31 = vld [vmem:[%s6174_s6 + $0x6d0] sm:$0xf]  ;;  %v4919_v18 = vor.u32 %v5419_v10, %v4918_v9 }
 0x178   : > { %3218 = vmatpush.bf16.msrb.mxu3 %v5015_v47  ;;  %3247 = vmatpush.bf16.msrb.mxu0 %v5079_v48  ;;  %v6685_v11 = vpop.permute.xlu1 %1478  ;;  %v5151_v34 = vor.u32 %v5477_v33, %v5150_v31  ;;  %v4990_v47 = vld [vmem:[%s6174_s6 + $0x590] sm:$0xf]  ;;  %v5451_v31 = vld [vmem:[%s6174_s6 + $0x604] sm:$0xf0] }
 0x179   : > { %7586 = vst [vmem:[#allocation9_spill] sm:$0xff] %v6685_v11  ;;  %v4991_v56 = vor.u32 %v5437_v50, %v4990_v47  ;;  %v5134_v47 = vld [vmem:[%s6174_s6 + $0x6b0] sm:$0xf] }
 0x17a   : > { %2977 = vmatmul.bf16.gmra.mxu2 %v6558_v3  ;;  %3035 = vmatmul.bf16.gmra.mxu0 %v6560_v4 }
 0x17b   : > { %3190 = vmatpush.bf16.msrb.mxu2 %v4943_v57  ;;  %v5142_v57 = vld [vmem:[%s6174_s6 + $0x6c0] sm:$0xf]  ;;  %3275 = vmatpush.bf16.msrb.mxu1 %v5151_v34  ;;  %v6733_v34 = vor.u32 %v5233_v1, %v4192_v2  ;;  %v5469_v1 = vld [vmem:[%s6174_s6 + $0x694] sm:$0xf0] }
 0x17c   : > { %3219 = vmatpush.bf16.msrb.mxu3 %v5007_v63  ;;  %3248 = vmatpush.bf16.msrb.mxu0 %v5071_v0  ;;  %v5241_v63 = vld [vmem:[%s7548_s1 + $0x134] sm:$0xf0]  ;;  %v5055_v0 = vor.u32 %v5453_v54, %v5054_v52  ;;  %v5143_v6 = vor.u32 %v5475_v59, %v5142_v57  ;;  %v5126_v57 = vld [vmem:[%s6174_s6 + $0x6a0] sm:$0xf]  ;;  %v5471_v59 = vld [vmem:[%s6174_s6 + $0x6a4] sm:$0xf0] }
 0x17d   : > { %3006 = vmatmul.bf16.gmra.mxu3 %v6562_v5  ;;  %3064 = vmatmul.bf16.gmra.mxu1 %v6572_v8  ;;  %v6728_v14 = vor.u32 %v5241_v63, %v4198_v62  ;;  %v5127_v62 = vor.u32 %v5471_v59, %v5126_v57  ;;  %v5247_v57 = vld [vmem:[%s7548_s1 + $0x16c] sm:$0xf] }
 0x17f   : > { %3191 = vmatpush.bf16.msrb.mxu2 %v4935_v12  ;;  %v4982_v12 = vld [vmem:[%s6174_s6 + $0x580] sm:$0xf]  ;;  %7588 = vst [vmem:[#allocation11_spill] sm:$0xff] %v6728_v14  ;;  %3276 = vmatpush.bf16.msrb.mxu1 %v5143_v6 }
 0x180   : > { %3220 = vmatpush.bf16.msrb.mxu3 %v4999_v22  ;;  %3249 = vmatpush.bf16.msrb.mxu0 %v5063_v23  ;;  %v5435_v22 = vld [vmem:[%s6174_s6 + $0x584] sm:$0xf0]  ;;  %v5046_v23 = vld [vmem:[%s6174_s6 + $0x600] sm:$0xf] }
 0x181   : > { %v5047_v46 = vor.u32 %v5451_v31, %v5046_v23  ;;  %v4983_v52 = vor.u32 %v5435_v22, %v4982_v12  ;;  %v5110_v23 = vld [vmem:[%s6174_s6 + $0x680] sm:$0xf]  ;;  %v5467_v31 = vld [vmem:[%s6174_s6 + $0x684] sm:$0xf0] }
 0x183   : > { %3192 = vmatpush.bf16.msrb.mxu2 %v4927_v49  ;;  %v5473_v49 = vld [vmem:[%s6174_s6 + $0x6b4] sm:$0xf0] }
 0x184   : > { %3221 = vmatpush.bf16.msrb.mxu3 %v4991_v56  ;;  %3250 = vmatpush.bf16.msrb.mxu0 %v5055_v0  ;;  %v5135_v54 = vor.u32 %v5473_v49, %v5134_v47  ;;  %v6746_v56 = vor.u32 %v5234_v7, %v4200_v35  ;;  %v5118_v0 = vld [vmem:[%s6174_s6 + $0x690] sm:$0xf]  ;;  %v4246_v35 = vld [vmem:[%s7548_s1 + $0x168] sm:$0xf]  ;;  %v5254_v47 = vld [vmem:[%s7548_s1 + $0x19c] sm:$0xf0] }
 0x185   : > { %v5119_v10 = vor.u32 %v5469_v1, %v5118_v0  ;;  %v4254_v49 = vld [vmem:[%s7548_s1 + $0x170] sm:$0xf] }
 0x186   : > { %7591 = vst [vmem:[#allocation14_spill] sm:$0xff] %v6746_v56  ;;  %3277 = vmatpush.bf16.msrb.mxu1 %v5135_v54 }
 0x187   : > { %3193 = vmatpush.bf16.msrb.mxu2 %v4919_v18 }
 0x188   : > { %3251 = vmatpush.bf16.msrb.mxu0 %v5047_v46  ;;  %3222 = vmatpush.bf16.msrb.mxu3 %v4983_v52  ;;  %v5255_v52 = vld [vmem:[%s7548_s1 + $0x1a4] sm:$0xf0] }
 0x18a   : > { %3078 = vmatmul.bf16.vlgmr.msra.gmra.mxu2 %v6594_v15  ;;  %3136 = vmatmul.bf16.vlgmr.msra.gmra.mxu0 %v6596_v16  ;;  %v4440_v16 = vld [vmem:[%s6174_s6 + $0x148] sm:$0xf0] }
 0x18b   : > { %3278 = vmatpush.bf16.msrb.mxu1 %v5127_v62  ;;  %v5111_v62 = vor.u32 %v5467_v31, %v5110_v23 }
 0x18d   : > { %3107 = vmatmul.bf16.vlgmr.msra.gmra.mxu3 %v6598_v17  ;;  %3165 = vmatmul.bf16.vlgmr.msra.gmra.mxu1 %v6610_v28  ;;  %v4448_v28 = vld [vmem:[%s6174_s6 + $0x158] sm:$0xf0] }
 0x18f   : > { %v6695_v48 = vpop.permute.xlu0 %1488  ;;  %v6740_v50 = vpop.permute.xlu1 %1483  ;;  %3279 = vmatpush.bf16.msrb.mxu1 %v5119_v10  ;;  %v4256_v10 = vld [vmem:[%s7548_s1 + $0x1a8] sm:$0xf0] }
 0x190   : > { %7587 = vst [vmem:[#allocation10_spill] sm:$0xff] %v6695_v48 }
 0x191   : > { %7589 = vst [vmem:[#allocation12_spill] sm:$0xff] %v6740_v50 }
 0x193   : > { %3280 = vmatpush.bf16.msrb.mxu1 %v5111_v62 }
 0x197   : > { %v6742_v55 = vpop.permute.xlu0 %1493 }
 0x198   : > { %7590 = vst [vmem:[#allocation13_spill] sm:$0xff] %v6742_v55 }
 0x19a   : > { %3083 = vmatmul.bf16.gmra.mxu2 %v6654_v24  ;;  %3141 = vmatmul.bf16.gmra.mxu0 %v6656_v29 }
 0x19b   : > { %v6757_v12 = vpop.permute.xlu1 %1463 }
 0x19c   : > { %7592 = vst [vmem:[#allocation15_spill] sm:$0xff] %v6757_v12 }
 0x19d   : > { %3112 = vmatmul.bf16.gmra.mxu3 %v6661_v44  ;;  %3170 = vmatmul.bf16.gmra.mxu1 %v6670_v53 }
 0x1a0   : > { %v6759_v18 = vpop.permute.xlu0 %1458 }
 0x1a1   : > { %7593 = vst [vmem:[#allocation16_spill] sm:$0xff] %v6759_v18 }
 0x1a7   : > { %v2905_v33 = vpop.f32.mrf.mxu0 }
 0x1a8   : > { %v2906_v46 = vadd.f32 %v2905_v33, %v6759_v18  ;;  %v4248_v33 = vld [vmem:[%s7548_s1 + $0x1a0] sm:$0xf0]  ;;  %v5300_v18 = vld [vmem:[%s6174_s6 + $0x154] sm:$0xf] }
 0x1aa   : > { %3088 = vmatmul.bf16.gmra.mxu2 %v6726_v13  ;;  %3146 = vmatmul.bf16.gmra.mxu0 %v6728_v14  ;;  %v2934_v60 = vpop.f32.mrf.mxu1  ;;  %v6802_v23 = vpop.permute.xlu2 %1468 }
 0x1ab   : > { %v6783_v59 = vadd.f32 %v2934_v60, %v2906_v46  ;;  %v5248_v60 = vld [vmem:[%s7548_s1 + $0x174] sm:$0xf]  ;;  %7597 = vst [vmem:[#allocation20_spill] sm:$0xff] %v6802_v23 }
 0x1ad   : > { %3117 = vmatmul.bf16.gmra.mxu3 %v6733_v34  ;;  %v2915_v63 = vpop.f32.mrf.mxu2  ;;  %3175 = vmatmul.bf16.gmra.mxu1 %v6746_v56  ;;  %v6792_v56 = vor.u32 %v5247_v57, %v4248_v33 }
 0x1ae   : > { %v2916_v2 = vadd.f32 %v2915_v63, %v6685_v11 }
 0x1af   : > { %v2907_v7 = vpop.f32.mrf.mxu0  ;;  %7596 = vst [vmem:[#allocation19_spill] sm:$0xff] %v6792_v56 }
 0x1b0   : > { %v2944_v6 = vpop.f32.mrf.mxu3  ;;  %v2908_v22 = vadd.f32 %v2907_v7, %v6757_v12  ;;  %v6790_v7 = vor.u32 %v5255_v52, %v4254_v49  ;;  %v5302_v12 = vld [vmem:[%s6174_s6 + $0x164] sm:$0xf] }
 0x1b1   : > { %v6755_v9 = vadd.f32 %v2944_v6, %v2916_v2  ;;  %v6788_v6 = vor.u32 %v5254_v47, %v4246_v35  ;;  %v6807_v35 = vor.u32 %v5248_v60, %v4256_v10  ;;  %v5215_v60 = vld [vmem:[%s7548_s1 + $0x64] sm:$0xf0] }
 0x1b2   : > { %v2936_v54 = vpop.f32.mrf.mxu1  ;;  %7595 = vst [vmem:[#allocation18_spill] sm:$0xff] %v6790_v7 }
 0x1b3   : > { %v6785_v63 = vadd.f32 %v2936_v54, %v2908_v22  ;;  %7594 = vst [vmem:[#allocation17_spill] sm:$0xff] %v6788_v6 }
 0x1b4   : > { %7598 = vst [vmem:[#allocation21_spill] sm:$0xff] %v6807_v35 }
 0x1b5   : > { %v2917_v0 = vpop.f32.mrf.mxu2 }
 0x1b6   : > { %v2918_v1 = vadd.f32 %v2917_v0, %v6740_v50  ;;  %v4094_v0 = vld [vmem:[%s7548_s1 + $0x28] sm:$0xf] }
 0x1b7   : > { %v2910_v11 = vpop.f32.mrf.mxu0 }
 0x1b8   : > { %v2946_v2 = vpop.f32.mrf.mxu3  ;;  %v2911_v31 = vadd.f32 %v2910_v11, %v6802_v23  ;;  %v6816_v11 = vpop.permute.xlu2 %1473  ;;  %v5286_v23 = vld [vmem:[%s6174_s6 + $0xe4] sm:$0xf] }
 0x1b9   : > { %v6800_v22 = vadd.f32 %v2946_v2, %v2918_v1  ;;  %7599 = vst [vmem:[#allocation22_spill] sm:$0xff] %v6816_v11  ;;  %v5214_v1 = vld [vmem:[%s7548_s1 + $0x5c] sm:$0xf0]  ;;  %v4102_v2 = vld [vmem:[%s7548_s1 + $0x30] sm:$0xf] }
 0x1ba   : > { %3093 = vmatmul.bf16.gmra.mxu2 %v6788_v6  ;;  %3151 = vmatmul.bf16.gmra.mxu0 %v6790_v7  ;;  %v2939_v46 = vpop.f32.mrf.mxu1  ;;  %v4216_v6 = vld [vmem:[%s7548_s1 + $0x148] sm:$0xf0] }
 0x1bb   : > { %v6810_v47 = vadd.f32 %v2939_v46, %v2911_v31  ;;  %v5207_v31 = vld [vmem:[%s7548_s1 + $0x2c] sm:$0xf]  ;;  %v4096_v46 = vld [vmem:[%s7548_s1 + $0x60] sm:$0xf0] }
 0x1bc   : > { %v6844_v50 = vor.u32 %v5207_v31, %v4096_v46 }
 0x1bd   : > { %3122 = vmatmul.bf16.gmra.mxu3 %v6792_v56  ;;  %v2920_v49 = vpop.f32.mrf.mxu2  ;;  %3180 = vmatmul.bf16.gmra.mxu1 %v6807_v35  ;;  %v6842_v35 = vor.u32 %v5215_v60, %v4102_v2  ;;  %v4336_v2 = vld [vmem:[%s6174_s6 + $0x78] sm:$0xf0]  ;;  %v5288_v60 = vld [vmem:[%s6174_s6 + $0xf4] sm:$0xf] }
 0x1be   : > { %v2921_v52 = vadd.f32 %v2920_v49, %v6695_v48  ;;  %v6840_v48 = vor.u32 %v5214_v1, %v4094_v0  ;;  %7602 = vst [vmem:[#allocation25_spill] sm:$0xff] %v6844_v50  ;;  %v5272_v1 = vld [vmem:[%s6174_s6 + $0x74] sm:$0xf] }
 0x1bf   : > { %v2912_v57 = vpop.f32.mrf.mxu0  ;;  %7601 = vst [vmem:[#allocation24_spill] sm:$0xff] %v6842_v35  ;;  %v4339_v46 = vor.u32 %v5272_v1, %v4336_v2  ;;  %v4392_v2 = vld [vmem:[%s6174_s6 + $0xe8] sm:$0xf0] }
 0x1c0   : > { %v2949_v54 = vpop.f32.mrf.mxu3  ;;  %v2913_v62 = vadd.f32 %v2912_v57, %v6816_v11  ;;  %7600 = vst [vmem:[#allocation23_spill] sm:$0xff] %v6840_v48 }
 0x1c1   : > { %v6814_v33 = vadd.f32 %v2949_v54, %v2921_v52  ;;  %3302 = vmatpush.bf16.msra.mxu2 %v4339_v46  ;;  %v4395_v46 = vor.u32 %v5286_v23, %v4392_v2  ;;  %v4152_v2 = vld [vmem:[%s7548_s1 + $0xd0] sm:$0xf0] }
 0x1c2   : > { %v2941_v10 = vpop.f32.mrf.mxu1 }
 0x1c3   : > { %v6837_v49 = vadd.f32 %v2941_v10, %v2913_v62  ;;  %v5208_v62 = vld [vmem:[%s7548_s1 + $0x34] sm:$0xf]  ;;  %v4104_v10 = vld [vmem:[%s7548_s1 + $0x68] sm:$0xf0] }
 0x1c4   : > { %v6856_v0 = vor.u32 %v5208_v62, %v4104_v10  ;;  %v5270_v62 = vld [vmem:[%s6174_s6 + $0x64] sm:$0xf]  ;;  %v4328_v10 = vld [vmem:[%s6174_s6 + $0x68] sm:$0xf0] }
 0x1c5   : > { %v2922_v52 = vpop.f32.mrf.mxu2  ;;  %v4331_v1 = vor.u32 %v5270_v62, %v4328_v10 }
 0x1c6   : > { %v2923_v54 = vadd.f32 %v2922_v52, %v6742_v55  ;;  %7603 = vst [vmem:[#allocation26_spill] sm:$0xff] %v6856_v0  ;;  %v4400_v55 = vld [vmem:[%s6174_s6 + $0xf8] sm:$0xf0] }
 0x1c7   : > { %v3021_v7 = vpop.f32.mrf.mxu0  ;;  %v4403_v14 = vor.u32 %v5288_v60, %v4400_v55  ;;  %v4456_v55 = vld [vmem:[%s6174_s6 + $0x168] sm:$0xf0]  ;;  %3303 = vmatpush.bf16.msra.mxu2 %v4331_v1  ;;  %v5221_v1 = vld [vmem:[%s7548_s1 + $0x9c] sm:$0xf] }
 0x1c8   : > { %v2951_v57 = vpop.f32.mrf.mxu3 }
 0x1c9   : > { %v6852_v52 = vadd.f32 %v2951_v57, %v2923_v54  ;;  %v5304_v54 = vld [vmem:[%s6174_s6 + $0x174] sm:$0xf]  ;;  %v4464_v57 = vld [vmem:[%s6174_s6 + $0x178] sm:$0xf0]  ;;  %3331 = vmatpush.bf16.msra.mxu3 %v4403_v14 }
 0x1ca   : > { %3194 = vmatmul.bf16.vlgmr.msrb.gmra.mxu2 %v6840_v48  ;;  %3252 = vmatmul.bf16.vlgmr.msrb.gmra.mxu0 %v6842_v35  ;;  %v3050_v31 = vpop.f32.mrf.mxu1  ;;  %v4467_v11 = vor.u32 %v5304_v54, %v4464_v57  ;;  %v4459_v54 = vor.u32 %v5302_v12, %v4456_v55  ;;  %v5284_v14 = vld [vmem:[%s6174_s6 + $0xd4] sm:$0xf]  ;;  %v5229_v12 = vld [vmem:[%s7548_s1 + $0xd4] sm:$0xf0]  ;;  %v5298_v48 = vld [vmem:[%s6174_s6 + $0x144] sm:$0xf] }
 0x1cc   : > { %3360 = vmatpush.bf16.msra.mxu0 %v4467_v11  ;;  %v4451_v11 = vor.u32 %v5300_v18, %v4448_v28  ;;  %v5266_v28 = vld [vmem:[%s6174_s6 + $0x44] sm:$0xf] }
 0x1cd   : > { %3223 = vmatmul.bf16.vlgmr.msrb.gmra.mxu3 %v6844_v50  ;;  %v2963_v35 = vpop.f32.mrf.mxu2  ;;  %3281 = vmatmul.bf16.vlgmr.msrb.gmra.mxu1 %v6856_v0  ;;  %v4320_v0 = vld [vmem:[%s6174_s6 + $0x58] sm:$0xf0]  ;;  %v5282_v18 = vld [vmem:[%s6174_s6 + $0xc4] sm:$0xf] }
 0x1ce   : > { %v2964_v53 = vadd.f32 %v2963_v35, %v6783_v59  ;;  %v4150_v59 = vld [vmem:[%s7548_s1 + $0x98] sm:$0xf]  ;;  %v5268_v35 = vld [vmem:[%s6174_s6 + $0x54] sm:$0xf]  ;;  %3332 = vmatpush.bf16.msra.mxu3 %v4395_v46  ;;  %v4384_v50 = vld [vmem:[%s6174_s6 + $0xd8] sm:$0xf0] }
 0x1cf   : > { %v3023_v60 = vpop.f32.mrf.mxu0  ;;  %v4323_v10 = vor.u32 %v5268_v35, %v4320_v0  ;;  %v4387_v23 = vor.u32 %v5284_v14, %v4384_v50  ;;  %v5222_v46 = vld [vmem:[%s7548_s1 + $0xa4] sm:$0xf]  ;;  %v4312_v50 = vld [vmem:[%s6174_s6 + $0x48] sm:$0xf0] }
 0x1d0   : > { %v2992_v29 = vpop.f32.mrf.mxu3  ;;  %3361 = vmatpush.bf16.msra.mxu0 %v4459_v54  ;;  %v4315_v14 = vor.u32 %v5266_v28, %v4312_v50  ;;  %v5264_v28 = vld [vmem:[%s6174_s6 + $0x34] sm:$0xf] }
 0x1d1   : > { %v2993_v57 = vadd.f32 %v2992_v29, %v2964_v53  ;;  %v5228_v29 = vld [vmem:[%s7548_s1 + $0xcc] sm:$0xf0]  ;;  %v4158_v53 = vld [vmem:[%s7548_s1 + $0xa0] sm:$0xf]  ;;  %3304 = vmatpush.bf16.msra.mxu2 %v4323_v10  ;;  %v6913_v10 = vor.u32 %v5221_v1, %v4152_v2 }
 0x1d2   : > { %v6908_v35 = vor.u32 %v5229_v12, %v4158_v53  ;;  %3333 = vmatpush.bf16.msra.mxu3 %v4387_v23  ;;  %v4528_v53 = vld [vmem:[%s6174_s6 + $0x1f8] sm:$0xf0] }
 0x1d3   : > { %v3022_v62 = vadd.f32 %v3021_v7, %v2993_v57  ;;  %v3052_v7 = vpop.f32.mrf.mxu1  ;;  %v6906_v57 = vor.u32 %v5228_v29, %v4150_v59  ;;  %7606 = vst [vmem:[#allocation29_spill] sm:$0xff] %v6913_v10  ;;  %v4443_v59 = vor.u32 %v5298_v48, %v4440_v16  ;;  %v5320_v29 = vld [vmem:[%s6174_s6 + $0x1f4] sm:$0xf]  ;;  %v4304_v16 = vld [vmem:[%s6174_s6 + $0x38] sm:$0xf0] }
 0x1d4   : > { %7605 = vst [vmem:[#allocation28_spill] sm:$0xff] %v6908_v35  ;;  %3362 = vmatpush.bf16.msra.mxu0 %v4451_v11  ;;  %v5280_v48 = vld [vmem:[%s6174_s6 + $0xb4] sm:$0xf]  ;;  %v4307_v50 = vor.u32 %v5264_v28, %v4304_v16  ;;  %v5278_v28 = vld [vmem:[%s6174_s6 + $0xa4] sm:$0xf] }
 0x1d5   : > { %v6891_v0 = vadd.f32 %v3050_v31, %v3022_v62  ;;  %v2965_v55 = vpop.f32.mrf.mxu2  ;;  %7604 = vst [vmem:[#allocation27_spill] sm:$0xff] %v6906_v57  ;;  %v4376_v62 = vld [vmem:[%s6174_s6 + $0xc8] sm:$0xf0]  ;;  %3305 = vmatpush.bf16.msra.mxu2 %v4315_v14  ;;  %v5294_v16 = vld [vmem:[%s6174_s6 + $0x124] sm:$0xf] }
 0x1d6   : > { %v2966_v31 = vadd.f32 %v2965_v55, %v6785_v63  ;;  %v4160_v63 = vld [vmem:[%s7548_s1 + $0xd8] sm:$0xf0]  ;;  %v4379_v23 = vor.u32 %v5282_v18, %v4376_v62  ;;  %v4531_v55 = vor.u32 %v5320_v29, %v4528_v53  ;;  %v5318_v62 = vld [vmem:[%s6174_s6 + $0x1e4] sm:$0xf] }
 0x1d7   : > { %v3026_v56 = vpop.f32.mrf.mxu0  ;;  %v6922_v2 = vor.u32 %v5222_v46, %v4160_v63  ;;  %v4368_v18 = vld [vmem:[%s6174_s6 + $0xb8] sm:$0xf0]  ;;  %v4520_v63 = vld [vmem:[%s6174_s6 + $0x1e8] sm:$0xf0]  ;;  %v5262_v53 = vld [vmem:[%s6174_s6 + $0x24] sm:$0xf] }
 0x1d8   : > { %v2994_v54 = vpop.f32.mrf.mxu3  ;;  %3363 = vmatpush.bf16.msra.mxu0 %v4443_v59  ;;  %3334 = vmatpush.bf16.msra.mxu3 %v4379_v23  ;;  %v4523_v59 = vor.u32 %v5318_v62, %v4520_v63 }
 0x1d9   : > { %v2995_v12 = vadd.f32 %v2994_v54, %v2966_v31  ;;  %7607 = vst [vmem:[#allocation30_spill] sm:$0xff] %v6922_v2  ;;  %v5296_v31 = vld [vmem:[%s6174_s6 + $0x134] sm:$0xf]  ;;  %v4432_v54 = vld [vmem:[%s6174_s6 + $0x138] sm:$0xf0]  ;;  %3389 = vmatpush.bf16.msra.mxu1 %v4531_v55  ;;  %3306 = vmatpush.bf16.msra.mxu2 %v4307_v50 }
 0x1da   : > { %3199 = vmatmul.bf16.gmra.mxu2 %v6906_v57  ;;  %3257 = vmatmul.bf16.gmra.mxu0 %v6908_v35  ;;  %v4435_v46 = vor.u32 %v5296_v31, %v4432_v54  ;;  %v4360_v55 = vld [vmem:[%s6174_s6 + $0xa8] sm:$0xf0]  ;;  %v5316_v31 = vld [vmem:[%s6174_s6 + $0x1d4] sm:$0xf]  ;;  %v4512_v54 = vld [vmem:[%s6174_s6 + $0x1d8] sm:$0xf0] }
 0x1db   : > { %v3024_v1 = vadd.f32 %v3023_v60, %v2995_v12  ;;  %v3055_v11 = vpop.f32.mrf.mxu1  ;;  %v4371_v60 = vor.u32 %v5280_v48, %v4368_v18  ;;  %v4296_v12 = vld [vmem:[%s6174_s6 + $0x28] sm:$0xf0]  ;;  %v4515_v63 = vor.u32 %v5316_v31, %v4512_v54 }
 0x1dc   : > { %v4299_v23 = vor.u32 %v5262_v53, %v4296_v12  ;;  %v4424_v48 = vld [vmem:[%s6174_s6 + $0x128] sm:$0xf0]  ;;  %3364 = vmatpush.bf16.msra.mxu0 %v4435_v46  ;;  %v5242_v46 = vld [vmem:[%s7548_s1 + $0x13c] sm:$0xf0]  ;;  %v4214_v53 = vld [vmem:[%s7548_s1 + $0x110] sm:$0xf] }
 0x1dd   : > { %3228 = vmatmul.bf16.gmra.mxu3 %v6913_v10  ;;  %v6931_v14 = vadd.f32 %v3052_v7, %v3024_v1  ;;  %v2968_v29 = vpop.f32.mrf.mxu2  ;;  %3286 = vmatmul.bf16.gmra.mxu1 %v6922_v2  ;;  %v4427_v50 = vor.u32 %v5294_v16, %v4424_v48  ;;  %v5260_v12 = vld [vmem:[%s6174_s6 + $0x14] sm:$0xf]  ;;  %v4416_v16 = vld [vmem:[%s6174_s6 + $0x118] sm:$0xf0]  ;;  %v5243_v48 = vld [vmem:[%s7548_s1 + $0x144] sm:$0xf0] }
 0x1de   : > { %v2969_v7 = vadd.f32 %v2968_v29, %v6810_v47  ;;  %3335 = vmatpush.bf16.msra.mxu3 %v4371_v60  ;;  %3390 = vmatpush.bf16.msra.mxu1 %v4523_v59  ;;  %v4363_v47 = vor.u32 %v5278_v28, %v4360_v55  ;;  %v4206_v29 = vld [vmem:[%s7548_s1 + $0x108] sm:$0xf]  ;;  %v4288_v60 = vld [vmem:[%s6174_s6 + $0x18] sm:$0xf0]  ;;  %v5276_v59 = vld [vmem:[%s6174_s6 + $0x94] sm:$0xf] }
 0x1df   : > { %v6943_v18 = vpop.f32.mrf.mxu0  ;;  %3307 = vmatpush.bf16.msra.mxu2 %v4299_v23  ;;  %v5292_v55 = vld [vmem:[%s6174_s6 + $0x114] sm:$0xf]  ;;  %v5314_v2 = vld [vmem:[%s6174_s6 + $0x1c4] sm:$0xf]  ;;  %v4504_v23 = vld [vmem:[%s6174_s6 + $0x1c8] sm:$0xf0] }
 0x1e0   : > { %v2997_v1 = vpop.f32.mrf.mxu3  ;;  %3365 = vmatpush.bf16.msra.mxu0 %v4427_v50  ;;  %v4419_v54 = vor.u32 %v5292_v55, %v4416_v16  ;;  %v4280_v55 = vld [vmem:[%s6174_s6 + $0x8] sm:$0xf0]  ;;  %v5274_v16 = vld [vmem:[%s6174_s6 + $0x84] sm:$0xf] }
 0x1e1   : > { %v2998_v62 = vadd.f32 %v2997_v1, %v2969_v7  ;;  %v4291_v7 = vor.u32 %v5260_v12, %v4288_v60  ;;  %v4352_v1 = vld [vmem:[%s6174_s6 + $0x98] sm:$0xf0]  ;;  %v4507_v12 = vor.u32 %v5314_v2, %v4504_v23  ;;  %v4344_v2 = vld [vmem:[%s6174_s6 + $0x88] sm:$0xf0] }
 0x1e2   : > { %3336 = vmatpush.bf16.msra.mxu3 %v4363_v47  ;;  %3391 = vmatpush.bf16.msra.mxu1 %v4515_v63  ;;  %v4355_v50 = vor.u32 %v5276_v59, %v4352_v1  ;;  %v6982_v47 = vor.u32 %v5242_v46, %v4206_v29  ;;  %v6984_v63 = vor.u32 %v5243_v48, %v4214_v53  ;;  %v5290_v1 = vld [vmem:[%s6174_s6 + $0x104] sm:$0xf]  ;;  %v4408_v23 = vld [vmem:[%s6174_s6 + $0x108] sm:$0xf0]  ;;  %v4496_v29 = vld [vmem:[%s6174_s6 + $0x1b8] sm:$0xf0] }
 0x1e3   : > { %v3027_v28 = vadd.f32 %v3026_v56, %v2998_v62  ;;  %v3057_v31 = vpop.f32.mrf.mxu1  ;;  %v5235_v56 = vld [vmem:[%s7548_s1 + $0x10c] sm:$0xf]  ;;  %v4208_v62 = vld [vmem:[%s7548_s1 + $0x140] sm:$0xf0]  ;;  %3308 = vmatpush.bf16.msra.mxu2 %v4291_v7  ;;  %v4347_v53 = vor.u32 %v5274_v16, %v4344_v2  ;;  %v4480_v16 = vld [vmem:[%s6174_s6 + $0x198] sm:$0xf0] }
 0x1e4   : > { %v6989_v7 = vor.u32 %v5235_v56, %v4208_v62  ;;  %3366 = vmatpush.bf16.msra.mxu0 %v4419_v54 }
 0x1e5   : > { %v6967_v35 = vadd.f32 %v3055_v11, %v3027_v28  ;;  %v2970_v60 = vpop.f32.mrf.mxu2  ;;  %v5236_v11 = vld [vmem:[%s7548_s1 + $0x114] sm:$0xf]  ;;  %v5258_v28 = vld [vmem:[%s6174_s6 + $0x4] sm:$0xf] }
 0x1e6   : > { %v2971_v10 = vadd.f32 %v2970_v60, %v6837_v49  ;;  %v4283_v59 = vor.u32 %v5258_v28, %v4280_v55  ;;  %v4411_v49 = vor.u32 %v5290_v1, %v4408_v23  ;;  %v5312_v60 = vld [vmem:[%s6174_s6 + $0x1b4] sm:$0xf]  ;;  %3337 = vmatpush.bf16.msra.mxu3 %v4355_v50  ;;  %3392 = vmatpush.bf16.msra.mxu1 %v4507_v12  ;;  %v5310_v28 = vld [vmem:[%s6174_s6 + $0x1a4] sm:$0xf]  ;;  %v4488_v55 = vld [vmem:[%s6174_s6 + $0x1a8] sm:$0xf0] }
 0x1e7   : > { %v3031_v8 = vpop.f32.mrf.mxu0  ;;  %v4499_v48 = vor.u32 %v5312_v60, %v4496_v29  ;;  %v7001_v54 = vor.u32 %v5236_v11, %v4216_v6  ;;  %v4491_v62 = vor.u32 %v5310_v28, %v4488_v55  ;;  %v5308_v12 = vld [vmem:[%s6174_s6 + $0x194] sm:$0xf]  ;;  %v5306_v1 = vld [vmem:[%s6174_s6 + $0x184] sm:$0xf]  ;;  %v4472_v23 = vld [vmem:[%s6174_s6 + $0x188] sm:$0xf0] }
 0x1e8   : > { %v2999_v57 = vpop.f32.mrf.mxu3  ;;  %3309 = vmatpush.bf16.msra.mxu2 %v4283_v59  ;;  %3367 = vmatpush.bf16.msra.mxu0 %v4411_v49  ;;  %v4483_v11 = vor.u32 %v5308_v12, %v4480_v16  ;;  %v5256_v60 = vld [vmem:[%s7548_s1 + $0x1ac] sm:$0xf0]  ;;  %v5257_v29 = vld [vmem:[%s7548_s1 + $0x1b4] sm:$0xf0]  ;;  %v4475_v28 = vor.u32 %v5306_v1, %v4472_v23 }
 0x1e9   : > { %v3000_v46 = vadd.f32 %v2999_v57, %v2971_v10 }
 0x1ea   : > { %3204 = vmatmul.bf16.gmra.mxu2 %v6982_v47  ;;  %3262 = vmatmul.bf16.gmra.mxu0 %v6984_v63 }
 0x1eb   : > { %v3029_v56 = vadd.f32 %v6943_v18, %v3000_v46  ;;  %v3060_v57 = vpop.f32.mrf.mxu1  ;;  %3338 = vmatpush.bf16.msra.mxu3 %v4347_v53  ;;  %3393 = vmatpush.bf16.msra.mxu1 %v4499_v48  ;;  %v4264_v48 = vld [vmem:[%s7548_s1 + $0x1b0] sm:$0xf0] }
 0x1ed   : > { %3233 = vmatmul.bf16.gmra.mxu3 %v6989_v7  ;;  %v7004_v10 = vadd.f32 %v3057_v31, %v3029_v56  ;;  %v2973_v50 = vpop.f32.mrf.mxu2  ;;  %3291 = vmatmul.bf16.gmra.mxu1 %v7001_v54  ;;  %v4262_v31 = vld [vmem:[%s7548_s1 + $0x178] sm:$0xf] }
 0x1ee   : > { %v2974_v59 = vadd.f32 %v2973_v50, %v6755_v9  ;;  %v4270_v9 = vld [vmem:[%s7548_s1 + $0x180] sm:$0xf]  ;;  %v7033_v50 = vor.u32 %v5256_v60, %v4262_v31 }
 0x1ef   : > { %v3033_v6 = vpop.f32.mrf.mxu0  ;;  %3394 = vmatpush.bf16.msra.mxu1 %v4491_v62  ;;  %v7035_v12 = vor.u32 %v5257_v29, %v4270_v9 }
 0x1f0   : > { %v3002_v2 = vpop.f32.mrf.mxu3 }
 0x1f1   : > { %v3003_v18 = vadd.f32 %v3002_v2, %v2974_v59  ;;  %v5250_v59 = vld [vmem:[%s7548_s1 + $0x184] sm:$0xf]  ;;  %v4272_v2 = vld [vmem:[%s7548_s1 + $0x1b8] sm:$0xf0] }
 0x1f3   : > { %v3032_v49 = vadd.f32 %v3031_v8, %v3003_v18  ;;  %v3062_v46 = vpop.f32.mrf.mxu1  ;;  %v5249_v8 = vld [vmem:[%s7548_s1 + $0x17c] sm:$0xf]  ;;  %3395 = vmatpush.bf16.msra.mxu1 %v4483_v11  ;;  %v7047_v11 = vor.u32 %v5250_v59, %v4272_v2  ;;  %v5336_v59 = vld [vmem:[%s6174_s6 + $0x274] sm:$0xf] }
 0x1f4   : > { %v7037_v16 = vor.u32 %v5249_v8, %v4264_v48  ;;  %v5352_v2 = vld [vmem:[%s6174_s6 + $0x2f4] sm:$0xf] }
 0x1f5   : > { %v7024_v53 = vadd.f32 %v3060_v57, %v3032_v49  ;;  %v2975_v55 = vpop.f32.mrf.mxu2 }
 0x1f6   : > { %v2976_v56 = vadd.f32 %v2975_v55, %v6800_v22 }
 0x1f7   : > { %v3036_v57 = vpop.f32.mrf.mxu0  ;;  %3396 = vmatpush.bf16.msra.mxu1 %v4475_v28 }
 0x1f8   : > { %v3004_v62 = vpop.f32.mrf.mxu3 }
 0x1f9   : > { %v3005_v18 = vadd.f32 %v3004_v62, %v2976_v56 }
 0x1fa   : > { %3209 = vmatmul.bf16.gmra.mxu2 %v7033_v50  ;;  %3267 = vmatmul.bf16.gmra.mxu0 %v7035_v12 }
 0x1fb   : > { %v3034_v22 = vadd.f32 %v3033_v6, %v3005_v18  ;;  %v3065_v1 = vpop.f32.mrf.mxu1 }
 0x1fd   : > { %3238 = vmatmul.bf16.gmra.mxu3 %v7037_v16  ;;  %v7050_v23 = vadd.f32 %v3062_v46, %v3034_v22  ;;  %v2978_v49 = vpop.f32.mrf.mxu2  ;;  %3296 = vmatmul.bf16.gmra.mxu1 %v7047_v11  ;;  %v4656_v22 = vld [vmem:[%s6174_s6 + $0x2f8] sm:$0xf0] }
 0x1fe   : > { %v2979_v31 = vadd.f32 %v2978_v49, %v6814_v33  ;;  %v4592_v33 = vld [vmem:[%s6174_s6 + $0x278] sm:$0xf0] }
 0x1ff   : > { %v3038_v9 = vpop.f32.mrf.mxu0  ;;  %v4595_v18 = vor.u32 %v5336_v59, %v4592_v33  ;;  %v4720_v49 = vld [vmem:[%s6174_s6 + $0x378] sm:$0xf0] }
 0x200   : > { %v3007_v60 = vpop.f32.mrf.mxu3 }
 0x201   : > { %v3008_v29 = vadd.f32 %v3007_v60, %v2979_v31  ;;  %v4659_v31 = vor.u32 %v5352_v2, %v4656_v22  ;;  %3418 = vmatpush.bf16.msrb.mxu2 %v4595_v18  ;;  %v5332_v18 = vld [vmem:[%s6174_s6 + $0x254] sm:$0xf] }
 0x202   : > { %v5348_v22 = vld [vmem:[%s6174_s6 + $0x2d4] sm:$0xf] }
 0x203   : > { %v3037_v6 = vadd.f32 %v3036_v57, %v3008_v29  ;;  %v3067_v8 = vpop.f32.mrf.mxu1  ;;  %3447 = vmatpush.bf16.msrb.mxu3 %v4659_v31  ;;  %v5364_v31 = vld [vmem:[%s6174_s6 + $0x354] sm:$0xf] }
 0x205   : > { %v7054_v48 = vadd.f32 %v3065_v1, %v3037_v6  ;;  %v2980_v28 = vpop.f32.mrf.mxu2  ;;  %v5368_v1 = vld [vmem:[%s6174_s6 + $0x374] sm:$0xf]  ;;  %v5350_v6 = vld [vmem:[%s6174_s6 + $0x2e4] sm:$0xf] }
 0x206   : > { %v2981_v46 = vadd.f32 %v2980_v28, %v6852_v52  ;;  %v4723_v60 = vor.u32 %v5368_v1, %v4720_v49  ;;  %v4640_v49 = vld [vmem:[%s6174_s6 + $0x2d8] sm:$0xf0] }
 0x207   : > { %v3137_v56 = vpop.f32.mrf.mxu0 }
 0x208   : > { %v3009_v55 = vpop.f32.mrf.mxu3  ;;  %3476 = vmatpush.bf16.msrb.mxu0 %v4723_v60  ;;  %v4704_v60 = vld [vmem:[%s6174_s6 + $0x358] sm:$0xf0] }
 0x209   : > { %v3010_v62 = vadd.f32 %v3009_v55, %v2981_v46  ;;  %v4648_v55 = vld [vmem:[%s6174_s6 + $0x2e8] sm:$0xf0] }
 0x20a   : > { %3310 = vmatmul.bf16.vlgmr.msra.gmra.mxu2 %v6240_v38  ;;  %3368 = vmatmul.bf16.vlgmr.msra.gmra.mxu0 %v6380_v25  ;;  %v5334_v25 = vld [vmem:[%s6174_s6 + $0x264] sm:$0xf]  ;;  %v4651_v33 = vor.u32 %v5350_v6, %v4648_v55 }
 0x20b   : > { %v3039_v57 = vadd.f32 %v3038_v9, %v3010_v62  ;;  %v3166_v52 = vpop.f32.mrf.mxu1  ;;  %v4584_v9 = vld [vmem:[%s6174_s6 + $0x268] sm:$0xf0] }
 0x20c   : > { %v4587_v46 = vor.u32 %v5334_v25, %v4584_v9  ;;  %v4712_v62 = vld [vmem:[%s6174_s6 + $0x368] sm:$0xf0]  ;;  %3448 = vmatpush.bf16.msrb.mxu3 %v4651_v33  ;;  %v4643_v25 = vor.u32 %v5348_v22, %v4640_v49  ;;  %v4707_v9 = vor.u32 %v5364_v31, %v4704_v60  ;;  %v5384_v22 = vld [vmem:[%s6174_s6 + $0x3f4] sm:$0xf]  ;;  %v4560_v31 = vld [vmem:[%s6174_s6 + $0x238] sm:$0xf0] }
 0x20d   : > { %3339 = vmatmul.bf16.vlgmr.msra.gmra.mxu3 %v6265_v58  ;;  %v7066_v29 = vadd.f32 %v3067_v8, %v3039_v57  ;;  %v3079_v38 = vpop.f32.mrf.mxu2  ;;  %3397 = vmatmul.bf16.vlgmr.msra.gmra.mxu1 %v6384_v27  ;;  %v5366_v8 = vld [vmem:[%s6174_s6 + $0x364] sm:$0xf]  ;;  %v4632_v33 = vld [vmem:[%s6174_s6 + $0x2c8] sm:$0xf0]  ;;  %v5344_v60 = vld [vmem:[%s6174_s6 + $0x2b4] sm:$0xf] }
 0x20e   : > { %v3080_v28 = vadd.f32 %v3079_v38, %v6891_v0  ;;  %v4715_v2 = vor.u32 %v5366_v8, %v4712_v62  ;;  %3419 = vmatpush.bf16.msrb.mxu2 %v4587_v46  ;;  %v4576_v0 = vld [vmem:[%s6174_s6 + $0x258] sm:$0xf0]  ;;  %v5346_v46 = vld [vmem:[%s6174_s6 + $0x2c4] sm:$0xf] }
 0x20f   : > { %v3139_v59 = vpop.f32.mrf.mxu0  ;;  %v4579_v1 = vor.u32 %v5332_v18, %v4576_v0  ;;  %v4635_v18 = vor.u32 %v5346_v46, %v4632_v33 }
 0x210   : > { %v3108_v58 = vpop.f32.mrf.mxu3  ;;  %3477 = vmatpush.bf16.msrb.mxu0 %v4715_v2  ;;  %3449 = vmatpush.bf16.msrb.mxu3 %v4643_v25  ;;  %v5362_v2 = vld [vmem:[%s6174_s6 + $0x344] sm:$0xf] }
 0x211   : > { %v3109_v57 = vadd.f32 %v3108_v58, %v3080_v28  ;;  %v5330_v58 = vld [vmem:[%s6174_s6 + $0x244] sm:$0xf] }
 0x212   : > { %3420 = vmatpush.bf16.msrb.mxu2 %v4579_v1 }
 0x213   : > { %v3138_v27 = vadd.f32 %v3137_v56, %v3109_v57  ;;  %v3168_v38 = vpop.f32.mrf.mxu1  ;;  %v4568_v56 = vld [vmem:[%s6174_s6 + $0x248] sm:$0xf0] }
 0x214   : > { %3478 = vmatpush.bf16.msrb.mxu0 %v4707_v9  ;;  %v4571_v62 = vor.u32 %v5330_v58, %v4568_v56  ;;  %3450 = vmatpush.bf16.msrb.mxu3 %v4635_v18  ;;  %v5360_v58 = vld [vmem:[%s6174_s6 + $0x334] sm:$0xf]  ;;  %v4688_v56 = vld [vmem:[%s6174_s6 + $0x338] sm:$0xf0] }
 0x215   : > { %v7082_v6 = vadd.f32 %v3166_v52, %v3138_v27  ;;  %v3081_v28 = vpop.f32.mrf.mxu2  ;;  %v4696_v52 = vld [vmem:[%s6174_s6 + $0x348] sm:$0xf0]  ;;  %v4784_v27 = vld [vmem:[%s6174_s6 + $0x3f8] sm:$0xf0] }
 0x216   : > { %v3082_v55 = vadd.f32 %v3081_v28, %v6931_v14  ;;  %v4699_v0 = vor.u32 %v5362_v2, %v4696_v52  ;;  %3421 = vmatpush.bf16.msrb.mxu2 %v4571_v62  ;;  %v4787_v49 = vor.u32 %v5384_v22, %v4784_v27  ;;  %v5328_v14 = vld [vmem:[%s6174_s6 + $0x234] sm:$0xf]  ;;  %v4624_v28 = vld [vmem:[%s6174_s6 + $0x2b8] sm:$0xf0]  ;;  %v5382_v62 = vld [vmem:[%s6174_s6 + $0x3e4] sm:$0xf] }
 0x217   : > { %v3142_v57 = vpop.f32.mrf.mxu0  ;;  %v4563_v9 = vor.u32 %v5328_v14, %v4560_v31  ;;  %v5326_v2 = vld [vmem:[%s6174_s6 + $0x224] sm:$0xf] }
 0x218   : > { %v3110_v8 = vpop.f32.mrf.mxu3  ;;  %3479 = vmatpush.bf16.msrb.mxu0 %v4699_v0  ;;  %3505 = vmatpush.bf16.msrb.mxu1 %v4787_v49  ;;  %v5342_v52 = vld [vmem:[%s6174_s6 + $0x2a4] sm:$0xf] }
 0x219   : > { %v3111_v1 = vadd.f32 %v3110_v8, %v3082_v55  ;;  %v4627_v55 = vor.u32 %v5344_v60, %v4624_v28  ;;  %v4691_v8 = vor.u32 %v5360_v58, %v4688_v56  ;;  %v5358_v27 = vld [vmem:[%s6174_s6 + $0x324] sm:$0xf]  ;;  %v5380_v60 = vld [vmem:[%s6174_s6 + $0x3d4] sm:$0xf]  ;;  %v4544_v28 = vld [vmem:[%s6174_s6 + $0x218] sm:$0xf0] }
 0x21a   : > { %3315 = vmatmul.bf16.gmra.mxu2 %v6317_v37  ;;  %3373 = vmatmul.bf16.gmra.mxu0 %v6442_v19  ;;  %v4776_v37 = vld [vmem:[%s6174_s6 + $0x3e8] sm:$0xf0]  ;;  %v5340_v58 = vld [vmem:[%s6174_s6 + $0x294] sm:$0xf] }
 0x21b   : > { %v3140_v25 = vadd.f32 %v3139_v59, %v3111_v1  ;;  %v3171_v46 = vpop.f32.mrf.mxu1  ;;  %3422 = vmatpush.bf16.msrb.mxu2 %v4563_v9  ;;  %v4779_v59 = vor.u32 %v5382_v62, %v4776_v37  ;;  %3451 = vmatpush.bf16.msrb.mxu3 %v4627_v55  ;;  %v4680_v1 = vld [vmem:[%s6174_s6 + $0x328] sm:$0xf0]  ;;  %v5324_v9 = vld [vmem:[%s6174_s6 + $0x214] sm:$0xf]  ;;  %v4672_v37 = vld [vmem:[%s6174_s6 + $0x318] sm:$0xf0] }
 0x21c   : > { %3480 = vmatpush.bf16.msrb.mxu0 %v4691_v8  ;;  %v4683_v31 = vor.u32 %v5358_v27, %v4680_v1  ;;  %v4547_v55 = vor.u32 %v5324_v9, %v4544_v28  ;;  %v4608_v8 = vld [vmem:[%s6174_s6 + $0x298] sm:$0xf0]  ;;  %v5356_v62 = vld [vmem:[%s6174_s6 + $0x314] sm:$0xf]  ;;  %v5338_v27 = vld [vmem:[%s6174_s6 + $0x284] sm:$0xf] }
 0x21d   : > { %3344 = vmatmul.bf16.gmra.mxu3 %v6342_v61  ;;  %v7104_v19 = vadd.f32 %v3168_v38, %v3140_v25  ;;  %v3084_v33 = vpop.f32.mrf.mxu2  ;;  %v4552_v61 = vld [vmem:[%s6174_s6 + $0x228] sm:$0xf0]  ;;  %3402 = vmatmul.bf16.gmra.mxu1 %v6446_v21  ;;  %v4768_v25 = vld [vmem:[%s6174_s6 + $0x3d8] sm:$0xf0]  ;;  %v5376_v28 = vld [vmem:[%s6174_s6 + $0x3b4] sm:$0xf] }
 0x21e   : > { %v3085_v18 = vadd.f32 %v3084_v33, %v6967_v35  ;;  %v4555_v22 = vor.u32 %v5326_v2, %v4552_v61  ;;  %v4616_v38 = vld [vmem:[%s6174_s6 + $0x2a8] sm:$0xf0]  ;;  %3506 = vmatpush.bf16.msrb.mxu1 %v4779_v59  ;;  %v4771_v21 = vor.u32 %v5380_v60, %v4768_v25  ;;  %v4611_v33 = vor.u32 %v5340_v58, %v4608_v8  ;;  %v5378_v61 = vld [vmem:[%s6174_s6 + $0x3c4] sm:$0xf]  ;;  %v4752_v58 = vld [vmem:[%s6174_s6 + $0x3b8] sm:$0xf0] }
 0x21f   : > { %v3144_v49 = vpop.f32.mrf.mxu0  ;;  %v4619_v14 = vor.u32 %v5342_v52, %v4616_v38  ;;  %v4675_v2 = vor.u32 %v5356_v62, %v4672_v37  ;;  %v4760_v52 = vld [vmem:[%s6174_s6 + $0x3c8] sm:$0xf0]  ;;  %v5354_v25 = vld [vmem:[%s6174_s6 + $0x304] sm:$0xf] }
 0x220   : > { %v3113_v0 = vpop.f32.mrf.mxu3  ;;  %3423 = vmatpush.bf16.msrb.mxu2 %v4555_v22  ;;  %3481 = vmatpush.bf16.msrb.mxu0 %v4683_v31  ;;  %v5322_v22 = vld [vmem:[%s6174_s6 + $0x204] sm:$0xf]  ;;  %v4536_v38 = vld [vmem:[%s6174_s6 + $0x208] sm:$0xf0] }
 0x221   : > { %v3114_v35 = vadd.f32 %v3113_v0, %v3085_v18  ;;  %3452 = vmatpush.bf16.msrb.mxu3 %v4619_v14  ;;  %v4539_v31 = vor.u32 %v5322_v22, %v4536_v38  ;;  %v4600_v60 = vld [vmem:[%s6174_s6 + $0x288] sm:$0xf0]  ;;  %v5370_v38 = vld [vmem:[%s6174_s6 + $0x384] sm:$0xf] }
 0x222   : > { %3507 = vmatpush.bf16.msrb.mxu1 %v4771_v21  ;;  %v4603_v21 = vor.u32 %v5338_v27, %v4600_v60  ;;  %v4744_v8 = vld [vmem:[%s6174_s6 + $0x3a8] sm:$0xf0] }
 0x223   : > { %v3143_v56 = vadd.f32 %v3142_v57, %v3114_v35  ;;  %v3173_v59 = vpop.f32.mrf.mxu1  ;;  %v4763_v57 = vor.u32 %v5378_v61, %v4760_v52  ;;  %v5372_v52 = vld [vmem:[%s6174_s6 + $0x394] sm:$0xf] }
 0x224   : > { %3424 = vmatpush.bf16.msrb.mxu2 %v4547_v55  ;;  %3482 = vmatpush.bf16.msrb.mxu0 %v4675_v2  ;;  %v4755_v55 = vor.u32 %v5376_v28, %v4752_v58 }
 0x225   : > { %v7124_v18 = vadd.f32 %v3171_v46, %v3143_v56  ;;  %v3086_v0 = vpop.f32.mrf.mxu2  ;;  %3453 = vmatpush.bf16.msrb.mxu3 %v4611_v33  ;;  %v4664_v46 = vld [vmem:[%s6174_s6 + $0x308] sm:$0xf0] }
 0x226   : > { %v3087_v1 = vadd.f32 %v3086_v0, %v7004_v10  ;;  %3508 = vmatpush.bf16.msrb.mxu1 %v4763_v57  ;;  %v4667_v9 = vor.u32 %v5354_v25, %v4664_v46  ;;  %v5374_v10 = vld [vmem:[%s6174_s6 + $0x3a4] sm:$0xf]  ;;  %v4736_v57 = vld [vmem:[%s6174_s6 + $0x398] sm:$0xf0] }
 0x227   : > { %v3147_v35 = vpop.f32.mrf.mxu0  ;;  %v4747_v33 = vor.u32 %v5374_v10, %v4744_v8 }
 0x228   : > { %v3115_v14 = vpop.f32.mrf.mxu3  ;;  %3425 = vmatpush.bf16.msrb.mxu2 %v4539_v31  ;;  %3483 = vmatpush.bf16.msrb.mxu0 %v4667_v9 }
 0x229   : > { %v3116_v56 = vadd.f32 %v3115_v14, %v3087_v1  ;;  %3454 = vmatpush.bf16.msrb.mxu3 %v4603_v21 }
 0x22a   : > { %3320 = vmatmul.bf16.gmra.mxu2 %v6242_v39  ;;  %3378 = vmatmul.bf16.gmra.mxu0 %v6516_v36  ;;  %v4739_v36 = vor.u32 %v5372_v52, %v4736_v57  ;;  %v4912_v57 = vld [vmem:[%s6174_s6 + $0x4f8] sm:$0xf0] }
 0x22b   : > { %v3145_v62 = vadd.f32 %v3144_v49, %v3116_v56  ;;  %v3176_v37 = vpop.f32.mrf.mxu1  ;;  %3509 = vmatpush.bf16.msrb.mxu1 %v4755_v55 }
 0x22d   : > { %3349 = vmatmul.bf16.gmra.mxu3 %v6247_v43  ;;  %v7140_v2 = vadd.f32 %v3173_v59, %v3145_v62  ;;  %v3089_v61 = vpop.f32.mrf.mxu2  ;;  %3407 = vmatmul.bf16.gmra.mxu1 %v6520_v42  ;;  %v4728_v43 = vld [vmem:[%s6174_s6 + $0x388] sm:$0xf0] }
 0x22e   : > { %v3090_v0 = vadd.f32 %v3089_v61, %v7024_v53  ;;  %v4731_v14 = vor.u32 %v5370_v38, %v4728_v43  ;;  %v5416_v61 = vld [vmem:[%s6174_s6 + $0x4f4] sm:$0xf]  ;;  %v5414_v38 = vld [vmem:[%s6174_s6 + $0x4e4] sm:$0xf] }
 0x22f   : > { %v3149_v39 = vpop.f32.mrf.mxu0  ;;  %3510 = vmatpush.bf16.msrb.mxu1 %v4747_v33  ;;  %v4848_v33 = vld [vmem:[%s6174_s6 + $0x478] sm:$0xf0] }
 0x230   : > { %v3118_v22 = vpop.f32.mrf.mxu3 }
 0x231   : > { %v3119_v49 = vadd.f32 %v3118_v22, %v3090_v0  ;;  %v5432_v0 = vld [vmem:[%s6174_s6 + $0x574] sm:$0xf]  ;;  %v4976_v22 = vld [vmem:[%s6174_s6 + $0x578] sm:$0xf0] }
 0x233   : > { %v3148_v27 = vadd.f32 %v3147_v35, %v3119_v49  ;;  %v3178_v1 = vpop.f32.mrf.mxu1  ;;  %3511 = vmatpush.bf16.msrb.mxu1 %v4739_v36  ;;  %v4979_v36 = vor.u32 %v5432_v0, %v4976_v22  ;;  %v4840_v49 = vld [vmem:[%s6174_s6 + $0x468] sm:$0xf0]  ;;  %v5426_v0 = vld [vmem:[%s6174_s6 + $0x544] sm:$0xf] }
 0x235   : > { %v7148_v59 = vadd.f32 %v3176_v37, %v3148_v27  ;;  %v3091_v31 = vpop.f32.mrf.mxu2  ;;  %3592 = vmatpush.bf16.msra.mxu0 %v4979_v36  ;;  %v5448_v36 = vld [vmem:[%s6174_s6 + $0x5f4] sm:$0xf] }
 0x236   : > { %v3092_v60 = vadd.f32 %v3091_v31, %v7050_v23  ;;  %v4968_v31 = vld [vmem:[%s6174_s6 + $0x568] sm:$0xf0] }
 0x237   : > { %v3152_v53 = vpop.f32.mrf.mxu0  ;;  %3512 = vmatpush.bf16.msrb.mxu1 %v4731_v14  ;;  %v5430_v14 = vld [vmem:[%s6174_s6 + $0x564] sm:$0xf] }
 0x238   : > { %v3120_v25 = vpop.f32.mrf.mxu3 }
 0x239   : > { %v3121_v46 = vadd.f32 %v3120_v25, %v3092_v60 }
 0x23a   : > { %3325 = vmatmul.bf16.gmra.mxu2 %v6319_v40  ;;  %3383 = vmatmul.bf16.gmra.mxu0 %v6558_v3 }
 0x23b   : > { %v3150_v42 = vadd.f32 %v3149_v39, %v3121_v46  ;;  %v3181_v35 = vpop.f32.mrf.mxu1  ;;  %v4915_v39 = vor.u32 %v5416_v61, %v4912_v57  ;;  %v4888_v57 = vld [vmem:[%s6174_s6 + $0x4c8] sm:$0xf0] }
 0x23d   : > { %3354 = vmatmul.bf16.gmra.mxu3 %v6324_v45  ;;  %v7154_v21 = vadd.f32 %v3178_v1, %v3150_v42  ;;  %v3094_v9 = vpop.f32.mrf.mxu2  ;;  %3412 = vmatmul.bf16.gmra.mxu1 %v6562_v5  ;;  %v4904_v1 = vld [vmem:[%s6174_s6 + $0x4e8] sm:$0xf0]  ;;  %v5396_v42 = vld [vmem:[%s6174_s6 + $0x454] sm:$0xf] }
 0x23e   : > { %v3095_v23 = vadd.f32 %v3094_v9, %v7054_v48  ;;  %v5400_v48 = vld [vmem:[%s6174_s6 + $0x474] sm:$0xf]  ;;  %3563 = vmatpush.bf16.msra.mxu3 %v4915_v39  ;;  %v4907_v25 = vor.u32 %v5414_v38, %v4904_v1  ;;  %v4952_v39 = vld [vmem:[%s6174_s6 + $0x548] sm:$0xf0] }
 0x23f   : > { %v3154_v58 = vpop.f32.mrf.mxu0  ;;  %v4851_v52 = vor.u32 %v5400_v48, %v4848_v33  ;;  %v5410_v48 = vld [vmem:[%s6174_s6 + $0x4c4] sm:$0xf] }
 0x240   : > { %v3123_v28 = vpop.f32.mrf.mxu3 }
 0x241   : > { %v3124_v56 = vadd.f32 %v3123_v28, %v3095_v23  ;;  %3534 = vmatpush.bf16.msra.mxu2 %v4851_v52  ;;  %v4896_v23 = vld [vmem:[%s6174_s6 + $0x4d8] sm:$0xf0]  ;;  %v5428_v28 = vld [vmem:[%s6174_s6 + $0x554] sm:$0xf] }
 0x242   : > { %3564 = vmatpush.bf16.msra.mxu3 %v4907_v25  ;;  %v4944_v25 = vld [vmem:[%s6174_s6 + $0x538] sm:$0xf0] }
 0x243   : > { %v3153_v40 = vadd.f32 %v3152_v53, %v3124_v56  ;;  %v7158_v3 = vpop.f32.mrf.mxu1  ;;  %v4971_v53 = vor.u32 %v5430_v14, %v4968_v31  ;;  %v4880_v14 = vld [vmem:[%s6174_s6 + $0x4b8] sm:$0xf0]  ;;  %v5424_v31 = vld [vmem:[%s6174_s6 + $0x534] sm:$0xf] }
 0x245   : > { %v7160_v45 = vadd.f32 %v3181_v35, %v3153_v40  ;;  %v3096_v55 = vpop.f32.mrf.mxu2  ;;  %3593 = vmatpush.bf16.msra.mxu0 %v4971_v53  ;;  %v5412_v35 = vld [vmem:[%s6174_s6 + $0x4d4] sm:$0xf] }
 0x246   : > { %v3097_v10 = vadd.f32 %v3096_v55, %v7066_v29  ;;  %v4899_v40 = vor.u32 %v5412_v35, %v4896_v23  ;;  %v5032_v35 = vld [vmem:[%s6174_s6 + $0x5e8] sm:$0xf0] }
 0x247   : > { %v3253_v62 = vpop.f32.mrf.mxu0 }
 0x248   : > { %v3125_v8 = vpop.f32.mrf.mxu3  ;;  %3565 = vmatpush.bf16.msra.mxu3 %v4899_v40 }
 0x249   : > { %v3126_v37 = vadd.f32 %v3125_v8, %v3097_v10 }
 0x24a   : > { %3426 = vmatmul.bf16.vlgmr.msrb.gmra.mxu2 %v6382_v26  ;;  %3484 = vmatmul.bf16.vlgmr.msrb.gmra.mxu0 %v6594_v15  ;;  %v5398_v15 = vld [vmem:[%s6174_s6 + $0x464] sm:$0xf] }
 0x24b   : > { %v7168_v5 = vadd.f32 %v3154_v58, %v3126_v37  ;;  %v3282_v29 = vpop.f32.mrf.mxu1  ;;  %v4960_v58 = vld [vmem:[%s6174_s6 + $0x558] sm:$0xf0]  ;;  %v5394_v37 = vld [vmem:[%s6174_s6 + $0x444] sm:$0xf] }
 0x24c   : > { %v4963_v55 = vor.u32 %v5428_v28, %v4960_v58 }
 0x24d   : > { %3455 = vmatmul.bf16.vlgmr.msrb.gmra.mxu3 %v6396_v32  ;;  %v3195_v26 = vpop.f32.mrf.mxu2  ;;  %3513 = vmatmul.bf16.vlgmr.msrb.gmra.mxu1 %v6598_v17  ;;  %v4843_v32 = vor.u32 %v5398_v15, %v4840_v49  ;;  %v4955_v49 = vor.u32 %v5426_v0, %v4952_v39 }
 0x24e   : > { %v3196_v43 = vadd.f32 %v3195_v26, %v7082_v6  ;;  %v4832_v6 = vld [vmem:[%s6174_s6 + $0x458] sm:$0xf0]  ;;  %3594 = vmatpush.bf16.msra.mxu0 %v4963_v55  ;;  %v4872_v55 = vld [vmem:[%s6174_s6 + $0x4a8] sm:$0xf0] }
 0x24f   : > { %v3255_v60 = vpop.f32.mrf.mxu0  ;;  %3535 = vmatpush.bf16.msra.mxu2 %v4843_v32  ;;  %v4835_v9 = vor.u32 %v5396_v42, %v4832_v6  ;;  %v5040_v26 = vld [vmem:[%s6174_s6 + $0x5f8] sm:$0xf0]  ;;  %v4947_v42 = vor.u32 %v5424_v31, %v4944_v25  ;;  %v5446_v6 = vld [vmem:[%s6174_s6 + $0x5e4] sm:$0xf]  ;;  %v4792_v31 = vld [vmem:[%s6174_s6 + $0x408] sm:$0xf0] }
 0x250   : > { %v3224_v27 = vpop.f32.mrf.mxu3  ;;  %v5043_v38 = vor.u32 %v5448_v36, %v5040_v26  ;;  %v4864_v36 = vld [vmem:[%s6174_s6 + $0x498] sm:$0xf0]  ;;  %v5420_v26 = vld [vmem:[%s6174_s6 + $0x514] sm:$0xf]  ;;  %v5402_v25 = vld [vmem:[%s6174_s6 + $0x484] sm:$0xf] }
 0x251   : > { %v3225_v46 = vadd.f32 %v3224_v27, %v3196_v43  ;;  %v4816_v43 = vld [vmem:[%s6174_s6 + $0x438] sm:$0xf0]  ;;  %v5408_v27 = vld [vmem:[%s6174_s6 + $0x4b4] sm:$0xf] }
 0x252   : > { %3595 = vmatpush.bf16.msra.mxu0 %v4955_v49  ;;  %3621 = vmatpush.bf16.msra.mxu1 %v5043_v38 }
 0x253   : > { %v3254_v17 = vadd.f32 %v3253_v62, %v3225_v46  ;;  %v3284_v56 = vpop.f32.mrf.mxu1  ;;  %3536 = vmatpush.bf16.msra.mxu2 %v4835_v9  ;;  %v4824_v62 = vld [vmem:[%s6174_s6 + $0x448] sm:$0xf0]  ;;  %v4883_v46 = vor.u32 %v5408_v27, %v4880_v14  ;;  %v5406_v9 = vld [vmem:[%s6174_s6 + $0x4a4] sm:$0xf] }
 0x254   : > { %v4827_v52 = vor.u32 %v5394_v37, %v4824_v62  ;;  %v4875_v62 = vor.u32 %v5406_v9, %v4872_v55  ;;  %v5016_v27 = vld [vmem:[%s6174_s6 + $0x5c8] sm:$0xf0]  ;;  %v5386_v14 = vld [vmem:[%s6174_s6 + $0x404] sm:$0xf]  ;;  %v5440_v9 = vld [vmem:[%s6174_s6 + $0x5b4] sm:$0xf] }
 0x255   : > { %v7188_v10 = vadd.f32 %v3282_v29, %v3254_v17  ;;  %v3197_v8 = vpop.f32.mrf.mxu2  ;;  %v4891_v29 = vor.u32 %v5410_v48, %v4888_v57  ;;  %v5390_v17 = vld [vmem:[%s6174_s6 + $0x424] sm:$0xf]  ;;  %v4936_v48 = vld [vmem:[%s6174_s6 + $0x528] sm:$0xf0]  ;;  %v5404_v57 = vld [vmem:[%s6174_s6 + $0x494] sm:$0xf] }
 0x256   : > { %v3198_v33 = vadd.f32 %v3197_v8, %v7104_v19  ;;  %v5392_v19 = vld [vmem:[%s6174_s6 + $0x434] sm:$0xf]  ;;  %v5422_v8 = vld [vmem:[%s6174_s6 + $0x524] sm:$0xf]  ;;  %3596 = vmatpush.bf16.msra.mxu0 %v4947_v42  ;;  %v4867_v38 = vor.u32 %v5404_v57, %v4864_v36  ;;  %v4984_v57 = vld [vmem:[%s6174_s6 + $0x588] sm:$0xf0] }
 0x257   : > { %v7196_v22 = vpop.f32.mrf.mxu0  ;;  %3537 = vmatpush.bf16.msra.mxu2 %v4827_v52  ;;  %3566 = vmatpush.bf16.msra.mxu3 %v4891_v29  ;;  %v4819_v1 = vor.u32 %v5392_v19, %v4816_v43  ;;  %v3708_v23 = vmax.f32 %v7188_v10, 0.0  ;;  %v5444_v10 = vld [vmem:[%s6174_s6 + $0x5d4] sm:$0xf]  ;;  %v4800_v52 = vld [vmem:[%s6174_s6 + $0x418] sm:$0xf0] }
 0x258   : > { %v3226_v61 = vpop.f32.mrf.mxu3  ;;  %v5442_v43 = vld [vmem:[%s6174_s6 + $0x5c4] sm:$0xf] }
 0x259   : > { %v3227_v15 = vadd.f32 %v3226_v61, %v3198_v33  ;;  %v5024_v33 = vld [vmem:[%s6174_s6 + $0x5d8] sm:$0xf0] }
 0x25a   : > { %3431 = vmatmul.bf16.gmra.mxu2 %v6444_v20  ;;  %3489 = vmatmul.bf16.gmra.mxu0 %v6654_v24  ;;  %v5035_v24 = vor.u32 %v5446_v6, %v5032_v35  ;;  %v5027_v61 = vor.u32 %v5444_v10, %v5024_v33  ;;  %v4795_v35 = vor.u32 %v5386_v14, %v4792_v31  ;;  %v5436_v33 = vld [vmem:[%s6174_s6 + $0x594] sm:$0xf] }
 0x25b   : > { %v3256_v32 = vadd.f32 %v3255_v60, %v3227_v15  ;;  %v7210_v53 = vpop.f32.mrf.mxu1  ;;  %3538 = vmatpush.bf16.msra.mxu2 %v4819_v1  ;;  %3567 = vmatpush.bf16.msra.mxu3 %v4883_v46  ;;  %v4928_v15 = vld [vmem:[%s6174_s6 + $0x518] sm:$0xf0] }
 0x25c   : > { %3622 = vmatpush.bf16.msra.mxu1 %v5035_v24  ;;  %v4931_v19 = vor.u32 %v5420_v26, %v4928_v15  ;;  %v5418_v24 = vld [vmem:[%s6174_s6 + $0x504] sm:$0xf] }
 0x25d   : > { %3460 = vmatmul.bf16.gmra.mxu3 %v6458_v30  ;;  %v3285_v20 = vadd.f32 %v3284_v56, %v3256_v32  ;;  %v3200_v60 = vpop.f32.mrf.mxu2  ;;  %v4808_v30 = vld [vmem:[%s6174_s6 + $0x428] sm:$0xf0]  ;;  %3518 = vmatmul.bf16.gmra.mxu1 %v6661_v44  ;;  %v5388_v44 = vld [vmem:[%s6174_s6 + $0x414] sm:$0xf]  ;;  %v5019_v32 = vor.u32 %v5442_v43, %v5016_v27 }
 0x25e   : > { %v3201_v58 = vadd.f32 %v3200_v60, %v7124_v18  ;;  %v4811_v56 = vor.u32 %v5390_v17, %v4808_v30  ;;  %v4939_v18 = vor.u32 %v5422_v8, %v4936_v48  ;;  %v4803_v39 = vor.u32 %v5388_v44, %v4800_v52  ;;  %v4920_v30 = vld [vmem:[%s6174_s6 + $0x508] sm:$0xf0]  ;;  %v5434_v52 = vld [vmem:[%s6174_s6 + $0x584] sm:$0xf] }
 0x25f   : > { %v3710_v28 = vmax.f32 %v3285_v20, 0.0  ;;  %v3260_v37 = vpop.f32.mrf.mxu0  ;;  %3568 = vmatpush.bf16.msra.mxu3 %v4875_v62  ;;  %v4856_v20 = vld [vmem:[%s6174_s6 + $0x488] sm:$0xf0]  ;;  %v4987_v36 = vor.u32 %v5434_v52, %v4984_v57 }
 0x260   : > { %v3229_v40 = vpop.f32.mrf.mxu3  ;;  %3539 = vmatpush.bf16.msra.mxu2 %v4811_v56  ;;  %3597 = vmatpush.bf16.msra.mxu0 %v4939_v18  ;;  %v4859_v17 = vor.u32 %v5402_v25, %v4856_v20  ;;  %v4992_v18 = vld [vmem:[%s6174_s6 + $0x598] sm:$0xf0]  ;;  %v7608_v43 = vld [vmem:[#allocation17_spill] sm:$0xff] }
 0x261   : > { %v7228_v0 = vpack.c.bf16 %v3710_v28, %v3708_v23  ;;  %v3230_v29 = vadd.f32 %v3229_v40, %v3201_v58  ;;  %3623 = vmatpush.bf16.msra.mxu1 %v5027_v61  ;;  %v5008_v23 = vld [vmem:[%s6174_s6 + $0x5b8] sm:$0xf0]  ;;  %v4923_v58 = vor.u32 %v5418_v24, %v4920_v30  ;;  %v5000_v40 = vld [vmem:[%s6174_s6 + $0x5a8] sm:$0xf0] }
 0x263   : > { %v3289_v49 = vpop.f32.mrf.mxu1  ;;  %3569 = vmatpush.bf16.msra.mxu3 %v4867_v38  ;;  %v3259_v46 = vadd.f32 %v7196_v22, %v3230_v29  ;;  %v5011_v22 = vor.u32 %v5440_v9, %v5008_v23 }
 0x264   : > { %3540 = vmatpush.bf16.msra.mxu2 %v4803_v39  ;;  %3598 = vmatpush.bf16.msra.mxu0 %v4931_v19 }
 0x265   : > { %v3202_v1 = vpop.f32.mrf.mxu2  ;;  %3624 = vmatpush.bf16.msra.mxu1 %v5019_v32  ;;  %v3288_v56 = vadd.f32 %v7210_v53, %v3259_v46  ;;  %v7609_v32 = vld [vmem:[#allocation4_spill] sm:$0xff] }
 0x266   : > { %v3203_v42 = vadd.f32 %v3202_v1, %v7140_v2  ;;  %v5438_v2 = vld [vmem:[%s6174_s6 + $0x5a4] sm:$0xf] }
 0x267   : > { %v3263_v60 = vpop.f32.mrf.mxu0  ;;  %3570 = vmatpush.bf16.msra.mxu3 %v4859_v17  ;;  %v5003_v48 = vor.u32 %v5438_v2, %v5000_v40  ;;  %v3712_v61 = vmax.f32 %v3288_v56, 0.0  ;;  %v5480_v2 = vld [vmem:[%s6174_s6 + $0x6f4] sm:$0xf]  ;;  %v7611_v56 = vld [vmem:[#allocation5_spill] sm:$0xff] }
 0x268   : > { %v3231_v6 = vpop.f32.mrf.mxu3  ;;  %3541 = vmatpush.bf16.msra.mxu2 %v4795_v35  ;;  %3599 = vmatpush.bf16.msra.mxu0 %v4923_v58 }
 0x269   : > { %v3232_v28 = vadd.f32 %v3231_v6, %v3203_v42  ;;  %3625 = vmatpush.bf16.msra.mxu1 %v5011_v22  ;;  %v7610_v6 = vld [vmem:[#allocation19_spill] sm:$0xff]  ;;  %v5464_v22 = vld [vmem:[%s6174_s6 + $0x674] sm:$0xf] }
 0x26a   : > { %3436 = vmatmul.bf16.gmra.mxu2 %v6518_v41  ;;  %3494 = vmatmul.bf16.gmra.mxu0 %v6726_v13 }
 0x26b   : > { %v3261_v55 = vadd.f32 %v3260_v37, %v3232_v28  ;;  %v3292_v8 = vpop.f32.mrf.mxu1 }
 0x26d   : > { %3465 = vmatmul.bf16.gmra.mxu3 %v6532_v51  ;;  %v3290_v62 = vadd.f32 %v3289_v49, %v3261_v55  ;;  %v3205_v10 = vpop.f32.mrf.mxu2  ;;  %3523 = vmatmul.bf16.gmra.mxu1 %v6733_v34  ;;  %v4995_v51 = vor.u32 %v5436_v33, %v4992_v18  ;;  %v7612_v55 = vld [vmem:[#allocation23_spill] sm:$0xff] }
 0x26e   : > { %v3206_v53 = vadd.f32 %v3205_v10, %v7148_v59  ;;  %3626 = vmatpush.bf16.msra.mxu1 %v5003_v48 }
 0x26f   : > { %v3714_v44 = vmax.f32 %v3290_v62, 0.0  ;;  %v3265_v13 = vpop.f32.mrf.mxu0 }
 0x270   : > { %v3234_v41 = vpop.f32.mrf.mxu3 }
 0x271   : > { %v7255_v37 = vpack.c.bf16 %v3714_v44, %v3712_v61  ;;  %v3235_v29 = vadd.f32 %v3234_v41, %v3206_v53  ;;  %v5462_v61 = vld [vmem:[%s6174_s6 + $0x664] sm:$0xf]  ;;  %v5096_v44 = vld [vmem:[%s6174_s6 + $0x668] sm:$0xf0] }
 0x272   : > { %3627 = vmatpush.bf16.msra.mxu1 %v4995_v51  ;;  %v5478_v53 = vld [vmem:[%s6174_s6 + $0x6e4] sm:$0xf] }
 0x273   : > { %v3294_v39 = vpop.f32.mrf.mxu1  ;;  %v3264_v15 = vadd.f32 %v3263_v60, %v3235_v29  ;;  %v3184_v60 = vadd.f32 %v7158_v3, %v7168_v5  ;;  %v5168_v3 = vld [vmem:[%s6174_s6 + $0x6f8] sm:$0xf0]  ;;  %v7613_v5 = vld [vmem:[#allocation6_spill] sm:$0xff]  ;;  %v7614_v51 = vld [vmem:[#allocation16_spill] sm:$0xff] }
 0x274   : > { %v5171_v10 = vor.u32 %v5480_v2, %v5168_v3  ;;  %v7615_v29 = vld [vmem:[#allocation25_spill] sm:$0xff]  ;;  %v5454_v3 = vld [vmem:[%s6174_s6 + $0x624] sm:$0xf] }
 0x275   : > { %v3207_v26 = vpop.f32.mrf.mxu2  ;;  %v3293_v34 = vadd.f32 %v3292_v8, %v3264_v15 }
 0x276   : > { %v3208_v49 = vadd.f32 %v3207_v26, %v7154_v21  ;;  %3628 = vmatpush.bf16.msra.mxu1 %v4987_v36  ;;  %3679 = vmatpush.bf16.msrb.mxu3 %v5171_v10  ;;  %v5160_v36 = vld [vmem:[%s6174_s6 + $0x6e8] sm:$0xf0]  ;;  %v7620_v10 = vld [vmem:[#allocation20_spill] sm:$0xff] }
 0x277   : > { %v3268_v59 = vpop.f32.mrf.mxu0  ;;  %v3716_v25 = vmax.f32 %v3293_v34, 0.0  ;;  %v5163_v15 = vor.u32 %v5478_v53, %v5160_v36  ;;  %v5476_v34 = vld [vmem:[%s6174_s6 + $0x6d4] sm:$0xf]  ;;  %v5128_v53 = vld [vmem:[%s6174_s6 + $0x6a8] sm:$0xf0] }
 0x278   : > { %v3236_v38 = vpop.f32.mrf.mxu3  ;;  %v5120_v36 = vld [vmem:[%s6174_s6 + $0x698] sm:$0xf0] }
 0x279   : > { %v3237_v19 = vadd.f32 %v3236_v38, %v3208_v49 }
 0x27a   : > { %3441 = vmatmul.bf16.gmra.mxu2 %v6560_v4  ;;  %3499 = vmatmul.bf16.gmra.mxu0 %v7608_v43 }
 0x27b   : > { %v3266_v27 = vadd.f32 %v3265_v13, %v3237_v19  ;;  %v3297_v1 = vpop.f32.mrf.mxu1  ;;  %3680 = vmatpush.bf16.msrb.mxu3 %v5163_v15  ;;  %v5088_v19 = vld [vmem:[%s6174_s6 + $0x658] sm:$0xf0] }
 0x27d   : > { %3470 = vmatmul.bf16.gmra.mxu3 %v7609_v32  ;;  %v3295_v14 = vadd.f32 %v3294_v39, %v3266_v27  ;;  %v3210_v31 = vpop.f32.mrf.mxu2  ;;  %3528 = vmatmul.bf16.gmra.mxu1 %v7610_v6  ;;  %v5099_v39 = vor.u32 %v5462_v61, %v5096_v44  ;;  %v5152_v32 = vld [vmem:[%s6174_s6 + $0x6d8] sm:$0xf0]  ;;  %v7621_v61 = vld [vmem:[#allocation29_spill] sm:$0xff] }
 0x27e   : > { %v3211_v21 = vadd.f32 %v3210_v31, %v7160_v45  ;;  %v5104_v45 = vld [vmem:[%s6174_s6 + $0x678] sm:$0xf0] }
 0x27f   : > { %v3718_v46 = vmax.f32 %v3295_v14, 0.0  ;;  %v3270_v35 = vpop.f32.mrf.mxu0  ;;  %v5107_v62 = vor.u32 %v5464_v22, %v5104_v45  ;;  %v5155_v14 = vor.u32 %v5476_v34, %v5152_v32  ;;  %v7616_v6 = vld [vmem:[#allocation15_spill] sm:$0xff]  ;;  %v7622_v34 = vld [vmem:[#allocation22_spill] sm:$0xff] }
 0x280   : > { %v3239_v42 = vpop.f32.mrf.mxu3  ;;  %v7617_v22 = vld [vmem:[#allocation7_spill] sm:$0xff] }
 0x281   : > { %v3736_v4 = vpack.c.bf16 %v3718_v46, %v3716_v25  ;;  %v3240_v20 = vadd.f32 %v3239_v42, %v3211_v21  ;;  %3650 = vmatpush.bf16.msrb.mxu2 %v5107_v62  ;;  %3681 = vmatpush.bf16.msrb.mxu3 %v5155_v14  ;;  %v5458_v46 = vld [vmem:[%s6174_s6 + $0x644] sm:$0xf]  ;;  %v5080_v21 = vld [vmem:[%s6174_s6 + $0x648] sm:$0xf0]  ;;  %v7618_v45 = vld [vmem:[#allocation27_spill] sm:$0xff] }
 0x282   : > { %v5474_v42 = vld [vmem:[%s6174_s6 + $0x6c4] sm:$0xf]  ;;  %v5112_v14 = vld [vmem:[%s6174_s6 + $0x688] sm:$0xf0] }
 0x283   : > { %v3299_v24 = vpop.f32.mrf.mxu1  ;;  %v3269_v30 = vadd.f32 %v3268_v59, %v3240_v20  ;;  %v5460_v59 = vld [vmem:[%s6174_s6 + $0x654] sm:$0xf] }
 0x284   : > { %v5091_v27 = vor.u32 %v5460_v59, %v5088_v19  ;;  %v5048_v59 = vld [vmem:[%s6174_s6 + $0x608] sm:$0xf0]  ;;  %v5466_v19 = vld [vmem:[%s6174_s6 + $0x684] sm:$0xf] }
 0x285   : > { %v3212_v17 = vpop.f32.mrf.mxu2  ;;  %v3298_v40 = vadd.f32 %v3297_v1, %v3269_v30  ;;  %3651 = vmatpush.bf16.msrb.mxu2 %v5099_v39 }
 0x286   : > { %v3213_v9 = vadd.f32 %v3212_v17, %v3184_v60  ;;  %v5144_v60 = vld [vmem:[%s6174_s6 + $0x6c8] sm:$0xf0] }
 0x287   : > { %v3369_v28 = vpop.f32.mrf.mxu0  ;;  %v3720_v41 = vmax.f32 %v3298_v40, 0.0  ;;  %v5147_v30 = vor.u32 %v5474_v42, %v5144_v60  ;;  %v5136_v40 = vld [vmem:[%s6174_s6 + $0x6b8] sm:$0xf0]  ;;  %v7625_v60 = vld [vmem:[#allocation9_spill] sm:$0xff] }
 0x288   : > { %v3241_v23 = vpop.f32.mrf.mxu3  ;;  %v7623_v42 = vld [vmem:[#allocation11_spill] sm:$0xff] }
 0x289   : > { %v3242_v58 = vadd.f32 %v3241_v23, %v3213_v9  ;;  %3652 = vmatpush.bf16.msrb.mxu2 %v5091_v27  ;;  %3682 = vmatpush.bf16.msrb.mxu3 %v5147_v30  ;;  %v5456_v23 = vld [vmem:[%s6174_s6 + $0x634] sm:$0xf] }
 0x28a   : > { %3542 = vmatmul.bf16.vlgmr.msra.gmra.mxu2 %v7611_v56  ;;  %3600 = vmatmul.bf16.vlgmr.msra.gmra.mxu0 %v7612_v55  ;;  %v7619_v56 = vld [vmem:[#allocation8_spill] sm:$0xff] }
 0x28b   : > { %v3271_v8 = vadd.f32 %v3270_v35, %v3242_v58  ;;  %v3398_v48 = vpop.f32.mrf.mxu1  ;;  %v5472_v58 = vld [vmem:[%s6174_s6 + $0x6b4] sm:$0xf] }
 0x28d   : > { %3571 = vmatmul.bf16.vlgmr.msra.gmra.mxu3 %v7613_v5  ;;  %v3300_v33 = vadd.f32 %v3299_v24, %v3271_v8  ;;  %v3311_v18 = vpop.f32.mrf.mxu2  ;;  %3629 = vmatmul.bf16.vlgmr.msra.gmra.mxu1 %v7615_v29  ;;  %v5083_v24 = vor.u32 %v5458_v46, %v5080_v21  ;;  %v5139_v8 = vor.u32 %v5472_v58, %v5136_v40  ;;  %v5064_v5 = vld [vmem:[%s6174_s6 + $0x628] sm:$0xf0] }
 0x28e   : > { %v3312_v52 = vadd.f32 %v3311_v18, %v7614_v51  ;;  %v5067_v44 = vor.u32 %v5454_v3, %v5064_v5  ;;  %v5452_v51 = vld [vmem:[%s6174_s6 + $0x614] sm:$0xf]  ;;  %v5115_v46 = vor.u32 %v5466_v19, %v5112_v14  ;;  %v3747_v14 = vld [vmem:[%s7551_s4 + $0x38] sm:$0xff] }
 0x28f   : > { %v3722_v13 = vmax.f32 %v3300_v33, 0.0  ;;  %v3371_v26 = vpop.f32.mrf.mxu0  ;;  %3653 = vmatpush.bf16.msrb.mxu2 %v5083_v24  ;;  %3683 = vmatpush.bf16.msrb.mxu3 %v5139_v8  ;;  %v7627_v8 = vld [vmem:[#allocation18_spill] sm:$0xff] }
 0x290   : > { %v3340_v57 = vpop.f32.mrf.mxu3 }
 0x291   : > { %v3738_v49 = vpack.c.bf16 %v3722_v13, %v3720_v41  ;;  %v3341_v38 = vadd.f32 %v3340_v57, %v3312_v52  ;;  %v5056_v52 = vld [vmem:[%s6174_s6 + $0x618] sm:$0xf0]  ;;  %v5468_v57 = vld [vmem:[%s6174_s6 + $0x694] sm:$0xf] }
 0x292   : > { %v5059_v39 = vor.u32 %v5452_v51, %v5056_v52  ;;  %v5123_v15 = vor.u32 %v5468_v57, %v5120_v36 }
 0x293   : > { %3825 = vmatpush.bf16.msrb.mxu0 %v3738_v49  ;;  %v3370_v43 = vadd.f32 %v3369_v28, %v3341_v38  ;;  %v7284_v1 = vpop.f32.mrf.mxu1  ;;  %v5072_v28 = vld [vmem:[%s6174_s6 + $0x638] sm:$0xf0]  ;;  %v5450_v38 = vld [vmem:[%s6174_s6 + $0x604] sm:$0xf] }
 0x294   : > { %v5051_v32 = vor.u32 %v5450_v38, %v5048_v59  ;;  %v3744_v38 = vld [vmem:[%s7551_s4 + $0x20] sm:$0xff] }
 0x295   : > { %v7286_v31 = vadd.f32 %v3398_v48, %v3370_v43  ;;  %v3313_v25 = vpop.f32.mrf.mxu2  ;;  %v5470_v48 = vld [vmem:[%s6174_s6 + $0x6a4] sm:$0xf]  ;;  %s3920_s6 = sadd.s32 (%p5700_p6), %s5198_s28, %s5197_s18 }
 0x296   : > { %v3314_v35 = vadd.f32 %v3313_v25, %v7616_v6  ;;  %v5131_v41 = vor.u32 %v5470_v48, %v5128_v53  ;;  %v7629_v48 = vld [vmem:[#allocation10_spill] sm:$0xff]  ;;  %s5199_s7 = sshll.u32 (%p5700_p6), %s3920_s6, 3 }
 0x297   : > { %3826 = vmatpush.bf16.msrb.mxu0 %v3736_v4  ;;  %v3374_v17 = vpop.f32.mrf.mxu0  ;;  %v5075_v4 = vor.u32 %v5456_v23, %v5072_v28  ;;  %s3922_s10 = scalar_lea.vmem (%p5700_p6), %s7552_s5, %s5199_s7 }
 0x298   : > { %v3342_v20 = vpop.f32.mrf.mxu3  ;;  %3684 = vmatpush.bf16.msrb.mxu3 %v5131_v41 }
 0x299   : > { %v3343_v9 = vadd.f32 %v3342_v20, %v3314_v35  ;;  %3654 = vmatpush.bf16.msrb.mxu2 %v5075_v4  ;;  %v7624_v35 = vld [vmem:[#allocation14_spill] sm:$0xff] }
 0x29a   : > { %3547 = vmatmul.bf16.gmra.mxu2 %v7617_v22  ;;  %3605 = vmatmul.bf16.gmra.mxu0 %v7618_v45 }
 0x29b   : > { %v7298_v2 = vadd.f32 %v3371_v26, %v3343_v9  ;;  %3827 = vmatpush.bf16.msrb.mxu0 %v7255_v37  ;;  %v3403_v55 = vpop.f32.mrf.mxu1 }
 0x29c   : > { %3685 = vmatpush.bf16.msrb.mxu3 %v5123_v15  ;;  %v7632_v15 = vld [vmem:[#allocation26_spill] sm:$0xff] }
 0x29d   : > { %3576 = vmatmul.bf16.gmra.mxu3 %v7619_v56  ;;  %v3316_v62 = vpop.f32.mrf.mxu2  ;;  %3634 = vmatmul.bf16.gmra.mxu1 %v7621_v61 }
 0x29e   : > { %v3317_v33 = vadd.f32 %v3316_v62, %v7620_v10  ;;  %3655 = vmatpush.bf16.msrb.mxu2 %v5067_v44  ;;  %v3741_v44 = vld [vmem:[%s7551_s4 + $0x8] sm:$0xff] }
 0x29f   : > { %3828 = vmatpush.bf16.msrb.mxu0 %v7228_v0  ;;  %v3376_v37 = vpop.f32.mrf.mxu0  ;;  %3755 = vperm.xlu0 %5562, %v3741_v44  }
 0x2a0   : > { %v3345_v18 = vpop.f32.mrf.mxu3  ;;  %3686 = vmatpush.bf16.msrb.mxu3 %v5115_v46 }
 0x2a1   : > { %v3346_v13 = vadd.f32 %v3345_v18, %v3317_v33 }
 0x2a2   : > { %3656 = vmatpush.bf16.msrb.mxu2 %v5059_v39  ;;  %v7631_v39 = vld [vmem:[#allocation24_spill] sm:$0xff] }
 0x2a3   : > { %v3375_v29 = vadd.f32 %v3374_v17, %v3346_v13  ;;  %v7314_v26 = vpop.f32.mrf.mxu1  ;;  %v7630_v13 = vld [vmem:[#allocation13_spill] sm:$0xff] }
 0x2a5   : > { %v7316_v49 = vadd.f32 %v3403_v55, %v3375_v29  ;;  %v3318_v0 = vpop.f32.mrf.mxu2 }
 0x2a6   : > { %v3319_v43 = vadd.f32 %v3318_v0, %v7622_v34  ;;  %3657 = vmatpush.bf16.msrb.mxu2 %v5051_v32 }
 0x2a7   : > { %v3379_v25 = vpop.f32.mrf.mxu0  ;;  %3770 = vperm.xlu0 %5562, %v3744_v38  }
 0x2a8   : > { %v3347_v27 = vpop.f32.mrf.mxu3 }
 0x2a9   : > { %v3348_v21 = vadd.f32 %v3347_v27, %v3319_v43  ;;  %v3742_v27 = vld [vmem:[%s7551_s4 + $0x10] sm:$0xff] }
 0x2aa   : > { %3552 = vmatmul.bf16.gmra.mxu2 %v7623_v42  ;;  %3610 = vmatmul.bf16.gmra.mxu0 %v6982_v47  ;;  %v7626_v47 = vld [vmem:[#allocation12_spill] sm:$0xff] }
 0x2ab   : > { %v7325_v6 = vadd.f32 %v3376_v37, %v3348_v21  ;;  %v3408_v20 = vpop.f32.mrf.mxu1  ;;  %3760 = vperm.xlu1 %5563, %v3742_v27   ;;  %v3401_v21 = vadd.f32 %v7284_v1, %v7298_v2  ;;  %v7634_v2 = vld [vmem:[#allocation30_spill] sm:$0xff] }
 0x2ad   : > { %3581 = vmatmul.bf16.gmra.mxu3 %v7624_v35  ;;  %v3321_v24 = vpop.f32.mrf.mxu2  ;;  %3639 = vmatmul.bf16.gmra.mxu1 %v6989_v7  ;;  %v7628_v7 = vld [vmem:[#allocation21_spill] sm:$0xff] }
 0x2ae   : > { %v3322_v17 = vadd.f32 %v3321_v24, %v7625_v60  ;;  %v7378_v24 = vld [vmem:[%s7550_s3 + $0x8] sm:$0xff] }
 0x2af   : > { %v3381_v9 = vpop.f32.mrf.mxu0  ;;  %3785 = vperm.xlu0 %5562, %v3747_v14  }
 0x2b0   : > { %v3350_v30 = vpop.f32.mrf.mxu3 }
 0x2b1   : > { %v3351_v23 = vadd.f32 %v3350_v30, %v3322_v17  ;;  %v3745_v17 = vld [vmem:[%s7551_s4 + $0x28] sm:$0xff] }
 0x2b3   : > { %v3380_v28 = vadd.f32 %v3379_v25, %v3351_v23  ;;  %v7330_v58 = vpop.f32.mrf.mxu1  ;;  %3775 = vperm.xlu1 %5563, %v3745_v17  }
 0x2b5   : > { %v7332_v22 = vadd.f32 %v3408_v20, %v3380_v28  ;;  %v3323_v45 = vpop.f32.mrf.mxu2 }
 0x2b6   : > { %v3324_v4 = vadd.f32 %v3323_v45, %v7626_v47 }
 0x2b7   : > { %v3384_v56 = vpop.f32.mrf.mxu0 }
 0x2b8   : > { %v3352_v40 = vpop.f32.mrf.mxu3 }
 0x2b9   : > { %v3353_v55 = vadd.f32 %v3352_v40, %v3324_v4 }
 0x2ba   : > { %3557 = vmatmul.bf16.gmra.mxu2 %v7627_v8  ;;  %3615 = vmatmul.bf16.gmra.mxu0 %v7033_v50 }
 0x2bb   : > { %v7337_v62 = vadd.f32 %v3381_v9, %v3353_v55  ;;  %v3413_v3 = vpop.f32.mrf.mxu1  ;;  %v7633_v9 = vld [vmem:[#allocation28_spill] sm:$0xff] }
 0x2bd   : > { %3586 = vmatmul.bf16.gmra.mxu3 %v7628_v7  ;;  %v3326_v5 = vpop.f32.mrf.mxu2  ;;  %3644 = vmatmul.bf16.gmra.mxu1 %v7037_v16  ;;  %v7353_v16 = vld [vmem:[%s7550_s3] sm:$0xff] }
 0x2be   : > { %v3327_v10 = vadd.f32 %v3326_v5, %v7629_v48  ;;  %v3740_v7 = vld [vmem:[%s7551_s4] sm:$0xff] }
 0x2bf   : > { %v3386_v18 = vpop.f32.mrf.mxu0  ;;  %3750 = vperm.xlu2 %5564, %v3740_v7  }
 0x2c0   : > { %v3355_v33 = vpop.f32.mrf.mxu3 }
 0x2c1   : > { %v3356_v61 = vadd.f32 %v3355_v33, %v3327_v10 }
 0x2c3   : > { %v3385_v53 = vadd.f32 %v3384_v56, %v3356_v61  ;;  %v7345_v50 = vpop.f32.mrf.mxu1 }
 0x2c5   : > { %v7347_v37 = vadd.f32 %v3413_v3, %v3385_v53  ;;  %v3328_v41 = vpop.f32.mrf.mxu2  ;;  %v3406_v3 = vadd.f32 %v7314_v26, %v7325_v6  ;;  %v3743_v6 = vld [vmem:[%s7551_s4 + $0x18] sm:$0xff] }
 0x2c6   : > { %v3329_v51 = vadd.f32 %v3328_v41, %v7630_v13 }
 0x2c7   : > { %v3485_v57 = vpop.f32.mrf.mxu0  ;;  %3765 = vperm.xlu2 %5564, %v3743_v6  }
 0x2c8   : > { %v3357_v52 = vpop.f32.mrf.mxu3 }
 0x2c9   : > { %v3358_v29 = vadd.f32 %v3357_v52, %v3329_v51 }
 0x2ca   : > { %3658 = vmatmul.bf16.vlgmr.msrb.gmra.mxu2 %v7631_v39  ;;  %5188 = vmatmul.msk.bf16.vlgmr.msrb.gmra.mxu0 %vm3808_vm0, %v7353_v16  ;;  %v3746_v39 = vld [vmem:[%s7551_s4 + $0x30] sm:$0xff] }
 0x2cb   : > { %v7358_v36 = vadd.f32 %v3386_v18, %v3358_v29  ;;  %v3514_v0 = vpop.f32.mrf.mxu1 }
 0x2cd   : > { %3687 = vmatmul.bf16.vlgmr.msrb.gmra.mxu3 %v7632_v15  ;;  %v3427_v59 = vpop.f32.mrf.mxu2 }
 0x2ce   : > { %v3428_v19 = vadd.f32 %v3427_v59, %v7286_v31 }
 0x2cf   : > { %v3487_v43 = vpop.f32.mrf.mxu0  ;;  %3780 = vperm.xlu2 %5564, %v3746_v39  }
 0x2d0   : > { %v3456_v34 = vpop.f32.mrf.mxu3 }
 0x2d1   : > { %v3457_v32 = vadd.f32 %v3456_v34, %v3428_v19 }
 0x2d3   : > { %v3486_v25 = vadd.f32 %v3485_v57, %v3457_v32  ;;  %v3516_v46 = vpop.f32.mrf.mxu1 }
 0x2d5   : > { %v7373_v42 = vadd.f32 %v3514_v0, %v3486_v25  ;;  %v3429_v31 = vpop.f32.mrf.mxu2 }
 0x2d6   : > { %v3430_v35 = vadd.f32 %v3429_v31, %v3401_v21  ;;  %v3416_v31 = vadd.f32 %v7345_v50, %v7358_v36 }
 0x2d7   : > { %v3490_v60 = vpop.f32.mrf.mxu0 }
 0x2d8   : > { %v3458_v20 = vpop.f32.mrf.mxu3 }
 0x2d9   : > { %v3459_v30 = vadd.f32 %v3458_v20, %v3430_v35 }
 0x2da   : > { %3663 = vmatmul.bf16.gmra.mxu2 %v7633_v9  ;;  %5189 = vmatmul.msk.bf16.gmra.mxu0 %vm3808_vm0, %v7378_v24 }
 0x2db   : > { %v3488_v1 = vadd.f32 %v3487_v43, %v3459_v30  ;;  %v3519_v23 = vpop.f32.mrf.mxu1 }
 0x2dd   : > { %3692 = vmatmul.bf16.gmra.mxu3 %v7634_v2  ;;  %v7387_v28 = vadd.f32 %v3516_v46, %v3488_v1  ;;  %v3432_v45 = vpop.f32.mrf.mxu2 }
 0x2de   : > { %v3433_v47 = vadd.f32 %v3432_v45, %v7316_v49  ;;  %v7400_v49 = vld [vmem:[%s7550_s3 + $0x10] sm:$0xff] }
 0x2df   : > { %v3492_v40 = vpop.f32.mrf.mxu0 }
 0x2e0   : > { %v3461_v4 = vpop.f32.mrf.mxu3 }
 0x2e1   : > { %v3462_v56 = vadd.f32 %v3461_v4, %v3433_v47 }
 0x2e3   : > { %v3491_v55 = vadd.f32 %v3490_v60, %v3462_v56  ;;  %v3521_v8 = vpop.f32.mrf.mxu1 }
 0x2e5   : > { %v7395_v5 = vadd.f32 %v3519_v23, %v3491_v55  ;;  %v3434_v48 = vpop.f32.mrf.mxu2 }
 0x2e6   : > { %v3435_v10 = vadd.f32 %v3434_v48, %v3406_v3 }
 0x2e7   : > { %v3495_v18 = vpop.f32.mrf.mxu0 }
 0x2e8   : > { %v3463_v33 = vpop.f32.mrf.mxu3 }
 0x2e9   : > { %v3464_v61 = vadd.f32 %v3463_v33, %v3435_v10 }
 0x2ea   : > { %3668 = vmatmul.bf16.gmra.mxu2 %v6984_v63  ;;  %5190 = vmatmul.msk.bf16.gmra.mxu0 %vm3808_vm0, %v7400_v49 }
 0x2eb   : > { %v3493_v44 = vadd.f32 %v3492_v40, %v3464_v61  ;;  %v3524_v26 = vpop.f32.mrf.mxu1 }
 0x2ed   : > { %3697 = vmatmul.bf16.gmra.mxu3 %v7001_v54  ;;  %v3522_v53 = vadd.f32 %v3521_v8, %v3493_v44  ;;  %v3437_v41 = vpop.f32.mrf.mxu2  ;;  %v3411_v54 = vadd.f32 %v7330_v58, %v7337_v62 }
 0x2ee   : > { %v3438_v13 = vadd.f32 %v3437_v41, %v7332_v22  ;;  %v7418_v22 = vld [vmem:[%s7550_s3 + $0x18] sm:$0xff] }
 0x2ef   : > { %v3497_v52 = vpop.f32.mrf.mxu0 }
 0x2f0   : > { %v3466_v51 = vpop.f32.mrf.mxu3 }
 0x2f1   : > { %v3467_v57 = vadd.f32 %v3466_v51, %v3438_v13 }
 0x2f3   : > { %v3496_v63 = vadd.f32 %v3495_v18, %v3467_v57  ;;  %v3526_v29 = vpop.f32.mrf.mxu1 }
 0x2f5   : > { %v3525_v15 = vadd.f32 %v3524_v26, %v3496_v63  ;;  %v3439_v0 = vpop.f32.mrf.mxu2 }
 0x2f6   : > { %v3440_v38 = vadd.f32 %v3439_v0, %v3411_v54 }
 0x2f7   : > { %v3500_v19 = vpop.f32.mrf.mxu0 }
 0x2f8   : > { %v3468_v59 = vpop.f32.mrf.mxu3 }
 0x2f9   : > { %v3469_v34 = vadd.f32 %v3468_v59, %v3440_v38 }
 0x2fa   : > { %3673 = vmatmul.bf16.gmra.mxu2 %v7035_v12  ;;  %5191 = vmatmul.msk.bf16.gmra.mxu0 %vm3808_vm0, %v7418_v22 }
 0x2fb   : > { %v3498_v43 = vadd.f32 %v3497_v52, %v3469_v34  ;;  %v3529_v27 = vpop.f32.mrf.mxu1 }
 0x2fd   : > { %3702 = vmatmul.bf16.gmra.mxu3 %v7047_v11  ;;  %v3527_v58 = vadd.f32 %v3526_v29, %v3498_v43  ;;  %v3442_v62 = vpop.f32.mrf.mxu2 }
 0x2fe   : > { %v3443_v32 = vadd.f32 %v3442_v62, %v7347_v37 }
 0x2ff   : > { %v3502_v25 = vpop.f32.mrf.mxu0 }
 0x300   : > { %v3471_v14 = vpop.f32.mrf.mxu3 }
 0x301   : > { %v3472_v46 = vadd.f32 %v3471_v14, %v3443_v32 }
 0x303   : > { %v3501_v21 = vadd.f32 %v3500_v19, %v3472_v46  ;;  %v3531_v30 = vpop.f32.mrf.mxu1 }
 0x305   : > { %v3530_v35 = vadd.f32 %v3529_v27, %v3501_v21  ;;  %v3444_v12 = vpop.f32.mrf.mxu2 }
 0x306   : > { %v3445_v20 = vadd.f32 %v3444_v12, %v3416_v31 }
 0x307   : > { %v3601_v17 = vpop.f32.mrf.mxu0 }
 0x308   : > { %v3473_v60 = vpop.f32.mrf.mxu3 }
 0x309   : > { %v3474_v9 = vadd.f32 %v3473_v60, %v3445_v20 }
 0x30b   : > { %v3503_v11 = vadd.f32 %v3502_v25, %v3474_v9  ;;  %v3630_v47 = vpop.f32.mrf.mxu1 }
 0x30d   : > { %v3543_v1 = vpop.f32.mrf.mxu2  ;;  %v3532_v32 = vadd.f32 %v3531_v30, %v3503_v11 }
 0x30e   : > { %v3544_v2 = vadd.f32 %v3543_v1, %v7373_v42 }
 0x30f   : > { %v3603_v37 = vpop.f32.mrf.mxu0 }
 0x310   : > { %v3572_v23 = vpop.f32.mrf.mxu3 }
 0x311   : > { %v3573_v45 = vadd.f32 %v3572_v23, %v3544_v2  ;;  %v7446_v1 = vpop.permute.xlu0 %3755 }
 0x313   : > { %v3602_v4 = vadd.f32 %v3601_v17, %v3573_v45 }
 0x315   : > { %v3631_v40 = vadd.f32 %v3630_v47, %v3602_v4  ;;  %v3545_v56 = vpop.f32.mrf.mxu2 }
 0x316   : > { %v3546_v50 = vadd.f32 %v3545_v56, %v7387_v28 }
 0x317   : > { %v3606_v55 = vpop.f32.mrf.mxu0 }
 0x318   : > { %v3574_v36 = vpop.f32.mrf.mxu3 }
 0x319   : > { %v3575_v8 = vadd.f32 %v3574_v36, %v3546_v50 }
 0x31b   : > { %v3604_v7 = vadd.f32 %v3603_v37, %v3575_v8 }
 0x31d   : > { %v3548_v3 = vpop.f32.mrf.mxu2  ;;  %v7454_v50 = vpop.permute.xlu1 %3760 }
 0x31e   : > { %v3549_v48 = vadd.f32 %v3548_v3, %v7395_v5 }
 0x31f   : > { %v3608_v33 = vpop.f32.mrf.mxu0 }
 0x320   : > { %v3577_v10 = vpop.f32.mrf.mxu3 }
 0x321   : > { %v3578_v18 = vadd.f32 %v3577_v10, %v3549_v48 }
 0x323   : > { %v7430_v42 = vadd.f32 %v3606_v55, %v3578_v18 }
 0x325   : > { %v3550_v61 = vpop.f32.mrf.mxu2 }
 0x326   : > { %v3551_v44 = vadd.f32 %v3550_v61, %v3522_v53 }
 0x327   : > { %v3611_v6 = vpop.f32.mrf.mxu0 }
 0x328   : > { %v3579_v26 = vpop.f32.mrf.mxu3 }
 0x329   : > { %v3580_v41 = vadd.f32 %v3579_v26, %v3551_v44 }
 0x32b   : > { %v7432_v13 = vadd.f32 %v3608_v33, %v3580_v41 }
 0x32d   : > { %v3553_v28 = vpop.f32.mrf.mxu2 }
 0x32e   : > { %v3554_v51 = vadd.f32 %v3553_v28, %v3525_v15  ;;  %v3632_v15 = vpop.f32.mrf.mxu1 }
 0x32f   : > { %v3613_v57 = vpop.f32.mrf.mxu0  ;;  %v3633_v45 = vadd.f32 %v3632_v15, %v3604_v7 }
 0x330   : > { %v3582_v52 = vpop.f32.mrf.mxu3 }
 0x331   : > { %v3583_v63 = vadd.f32 %v3582_v52, %v3554_v51 }
 0x333   : > { %v7434_v29 = vadd.f32 %v3611_v6, %v3583_v63 }
 0x335   : > { %v3555_v5 = vpop.f32.mrf.mxu2 }
 0x336   : > { %v3556_v39 = vadd.f32 %v3555_v5, %v3527_v58  ;;  %v3635_v12 = vpop.f32.mrf.mxu1 }
 0x337   : > { %v3616_v0 = vpop.f32.mrf.mxu0  ;;  %v3636_v26 = vadd.f32 %v3635_v12, %v7430_v42 }
 0x338   : > { %v3584_v54 = vpop.f32.mrf.mxu3 }
 0x339   : > { %v3585_v38 = vadd.f32 %v3584_v54, %v3556_v39  ;;  %v7466_v54 = vpop.permute.xlu0 %3770 }
 0x33b   : > { %v7436_v59 = vadd.f32 %v3613_v57, %v3585_v38 }
 0x33d   : > { %v3558_v53 = vpop.f32.mrf.mxu2 }
 0x33e   : > { %v3559_v19 = vadd.f32 %v3558_v53, %v3530_v35  ;;  %v7444_v35 = vpop.permute.xlu2 %3750  ;;  %v3637_v36 = vpop.f32.mrf.mxu1 }
 0x33f   : > { %v3618_v43 = vpop.f32.mrf.mxu0  ;;  %v3638_v52 = vadd.f32 %v3637_v36, %v7432_v13 }
 0x340   : > { %v3587_v34 = vpop.f32.mrf.mxu3 }
 0x341   : > { %v3588_v62 = vadd.f32 %v3587_v34, %v3559_v19  ;;  %v3786_v36 = vpop.permute.xlu0 %3785 }
 0x343   : > { %v7438_v27 = vadd.f32 %v3616_v0, %v3588_v62 }
 0x345   : > { %v3560_v14 = vpop.f32.mrf.mxu2 }
 0x346   : > { %v3561_v25 = vadd.f32 %v3560_v14, %v3532_v32  ;;  %v7460_v44 = vpop.permute.xlu2 %3765  ;;  %v3640_v41 = vpop.f32.mrf.mxu1 }
 0x347   : > { %v3830_v21 = vpop.f32.mrf.mxu0  ;;  %v7470_v14 = vpop.permute.xlu1 %3775 }
 0x348   : > { %v3589_v46 = vpop.f32.mrf.mxu3  ;;  %v3831_v30 = vadd.f32 %v3830_v21, %v7444_v35 }
 0x349   : > { %v3590_v58 = vadd.f32 %v3589_v46, %v3561_v25  ;;  %v3641_v25 = vadd.f32 %v3640_v41, %v7434_v29 }
 0x34a   : > { %v3879_v23 = vmax.f32 %v3831_v30, 0.0 }
 0x34b   : > { %v7440_v31 = vadd.f32 %v3618_v43, %v3590_v58 }
 0x34c   : > { %3895 = vst [vmem:[%s7450_s30] sm:$0xff] %v3879_v23 }
 0x34d   : > { %v3659_v20 = vpop.f32.mrf.mxu2 }
 0x34e   : > { %v3660_v60 = vadd.f32 %v3659_v20, %v3631_v40  ;;  %v3642_v43 = vpop.f32.mrf.mxu1 }
 0x34f   : > { %v3832_v9 = vpop.f32.mrf.mxu0  ;;  %v3643_v12 = vadd.f32 %v3642_v43, %v7436_v59 }
 0x350   : > { %v3688_v17 = vpop.f32.mrf.mxu3  ;;  %v3833_v2 = vadd.f32 %v3832_v9, %v7446_v1 }
 0x351   : > { %v3689_v11 = vadd.f32 %v3688_v17, %v3660_v60 }
 0x352   : > { %v3881_v37 = vmax.f32 %v3833_v2, 0.0  ;;  %v3781_v2 = vpop.permute.xlu2 %3780 }
 0x353   : > { %v3709_v3 = vmax.f32 %v3689_v11, 0.0 }
 0x354   : > { %3897 = vst [vmem:[%s7450_s30 + $0x10] sm:$0xff] %v3881_v37 }
 0x355   : > { %v3661_v47 = vpop.f32.mrf.mxu2 }
 0x356   : > { %v3662_v4 = vadd.f32 %v3661_v47, %v3633_v45  ;;  %v3645_v60 = vpop.f32.mrf.mxu1 }
 0x357   : > { %v3835_v56 = vpop.f32.mrf.mxu0 }
 0x358   : > { %v3690_v40 = vpop.f32.mrf.mxu3  ;;  %v3836_v8 = vadd.f32 %v3835_v56, %v7454_v50 }
 0x359   : > { %v3691_v55 = vadd.f32 %v3690_v40, %v3662_v4 }
 0x35a   : > { %v3883_v10 = vmax.f32 %v3836_v8, 0.0 }
 0x35b   : > { %v3711_v48 = vmax.f32 %v3691_v55, 0.0  ;;  %v3646_v55 = vadd.f32 %v3645_v60, %v7438_v27 }
 0x35c   : > { %3899 = vst [vmem:[%s7450_s30 + $0x20] sm:$0xff] %v3883_v10 }
 0x35d   : > { %v7457_v33 = vpack.c.bf16 %v3711_v48, %v3709_v3  ;;  %v3664_v18 = vpop.f32.mrf.mxu2 }
 0x35e   : > { %v3665_v28 = vadd.f32 %v3664_v18, %v3636_v26  ;;  %v3647_v3 = vpop.f32.mrf.mxu1 }
 0x35f   : > { %v3837_v61 = vpop.f32.mrf.mxu0  ;;  %v3648_v18 = vadd.f32 %v3647_v3, %v7440_v31 }
 0x360   : > { %v3693_v7 = vpop.f32.mrf.mxu3  ;;  %v3838_v6 = vadd.f32 %v3837_v61, %v7460_v44 }
 0x361   : > { %v3694_v63 = vadd.f32 %v3693_v7, %v3665_v28 }
 0x362   : > { %v3885_v51 = vmax.f32 %v3838_v6, 0.0 }
 0x363   : > { %v3713_v42 = vmax.f32 %v3694_v63, 0.0 }
 0x364   : > { %3901 = vst [vmem:[%s7450_s30 + $0x30] sm:$0xff] %v3885_v51 }
 0x365   : > { %v3666_v57 = vpop.f32.mrf.mxu2 }
 0x366   : > { %v3667_v5 = vadd.f32 %v3666_v57, %v3638_v52 }
 0x367   : > { %v3840_v0 = vpop.f32.mrf.mxu0 }
 0x368   : > { %v3695_v39 = vpop.f32.mrf.mxu3  ;;  %v3841_v53 = vadd.f32 %v3840_v0, %v7466_v54 }
 0x369   : > { %v3696_v38 = vadd.f32 %v3695_v39, %v3667_v5 }
 0x36a   : > { %v3887_v34 = vmax.f32 %v3841_v53, 0.0 }
 0x36b   : > { %v3715_v19 = vmax.f32 %v3696_v38, 0.0 }
 0x36c   : > { %3903 = vst [vmem:[%s7450_s30 + $0x40] sm:$0xff] %v3887_v34 }
 0x36d   : > { %v3735_v62 = vpack.c.bf16 %v3715_v19, %v3713_v42  ;;  %v3669_v15 = vpop.f32.mrf.mxu2 }
 0x36e   : > { %v3670_v21 = vadd.f32 %v3669_v15, %v3641_v25  ;;  %v3943_v25 = vld [vmem:[%s7450_s30 + $0x20] sm:$0xff] (%p5700_p6) }
 0x36f   : > { %v3842_v32 = vpop.f32.mrf.mxu0  ;;  %3944 = vst [vmem:[%s3922_s10 + $0x40] sm:$0xff] (%p5700_p6), %v3943_v25 }
 0x370   : > { %v3698_v13 = vpop.f32.mrf.mxu3  ;;  %v3843_v46 = vadd.f32 %v3842_v32, %v7470_v14  ;;  %v3939_v32 = vld [vmem:[%s7450_s30 + $0x10] sm:$0xff] (%p5700_p6) }
 0x371   : > { %v3699_v17 = vadd.f32 %v3698_v13, %v3670_v21  ;;  %3940 = vst [vmem:[%s3922_s10 + $0x20] sm:$0xff] (%p5700_p6), %v3939_v32  ;;  %v3947_v21 = vld [vmem:[%s7450_s30 + $0x30] sm:$0xff] (%p5700_p6) }
 0x372   : > { %v3889_v58 = vmax.f32 %v3843_v46, 0.0  ;;  %3948 = vst [vmem:[%s3922_s10 + $0x60] sm:$0xff] (%p5700_p6), %v3947_v21 }
 0x373   : > { %v3717_v45 = vmax.f32 %v3699_v17, 0.0 }
 0x374   : > { %3905 = vst [vmem:[%s7450_s30 + $0x50] sm:$0xff] %v3889_v58 }
 0x375   : > { %v3671_v20 = vpop.f32.mrf.mxu2 }
 0x376   : > { %v3672_v9 = vadd.f32 %v3671_v20, %v3643_v12  ;;  %v3951_v12 = vld [vmem:[%s7450_s30 + $0x40] sm:$0xff] (%p5700_p6) }
 0x377   : > { %v3845_v11 = vpop.f32.mrf.mxu0  ;;  %3952 = vst [vmem:[%s3922_s10 + $0x80] sm:$0xff] (%p5700_p6), %v3951_v12 }
 0x378   : > { %v3700_v30 = vpop.f32.mrf.mxu3  ;;  %v3846_v37 = vadd.f32 %v3845_v11, %v3781_v2 }
 0x379   : > { %v3701_v23 = vadd.f32 %v3700_v30, %v3672_v9 }
 0x37a   : > { %v3891_v47 = vmax.f32 %v3846_v37, 0.0 }
 0x37b   : > { %v3719_v29 = vmax.f32 %v3701_v23, 0.0  ;;  %v3955_v60 = vld [vmem:[%s7450_s30 + $0x50] sm:$0xff] (%p5700_p6) }
 0x37c   : > { %3907 = vst [vmem:[%s7450_s30 + $0x60] sm:$0xff] %v3891_v47 }
 0x37d   : > { %v3737_v4 = vpack.c.bf16 %v3719_v29, %v3717_v45  ;;  %v3674_v40 = vpop.f32.mrf.mxu2  ;;  %3956 = vst [vmem:[%s3922_s10 + $0xa0] sm:$0xff] (%p5700_p6), %v3955_v60 }
 0x37e   : > { %v3675_v48 = vadd.f32 %v3674_v40, %v3646_v55 }
 0x37f   : > { %v3847_v59 = vpop.f32.mrf.mxu0 }
 0x380   : > { %v3703_v56 = vpop.f32.mrf.mxu3  ;;  %v3848_v8 = vadd.f32 %v3847_v59, %v3786_v36 }
 0x381   : > { %v3704_v61 = vadd.f32 %v3703_v56, %v3675_v48 }
 0x382   : > { %v3893_v10 = vmax.f32 %v3848_v8, 0.0 }
 0x383   : > { %v3721_v28 = vmax.f32 %v3704_v61, 0.0  ;;  %v3959_v9 = vld [vmem:[%s7450_s30 + $0x60] sm:$0xff] (%p5700_p6) }
 0x384   : > { %3909 = vst [vmem:[%s7450_s30 + $0x70] sm:$0xff] %v3893_v10 }
 0x385   : > { %v3676_v7 = vpop.f32.mrf.mxu2  ;;  %3960 = vst [vmem:[%s3922_s10 + $0xc0] sm:$0xff] (%p5700_p6), %v3959_v9 }
 0x386   : > { %v3677_v26 = vadd.f32 %v3676_v7, %v3648_v18 }
 0x388   : > { %v3705_v6 = vpop.f32.mrf.mxu3 }
 0x389   : > { %v3706_v41 = vadd.f32 %v3705_v6, %v3677_v26 }
 0x38b   : > { %v3723_v51 = vmax.f32 %v3706_v41, 0.0  ;;  %v3963_v11 = vld [vmem:[%s7450_s30 + $0x70] sm:$0xff] (%p5700_p6) }
 0x38c   : > { %3964 = vst [vmem:[%s3922_s10 + $0xe0] sm:$0xff] (%p5700_p6), %v3963_v11 }
 0x38d   : > { %v3739_v52 = vpack.c.bf16 %v3723_v51, %v3721_v28 }
 0x38f   : > { %3854 = vmatpush.bf16.msrb.mxu1 %v3739_v52 }
 0x393   : > { %3855 = vmatpush.bf16.msrb.mxu1 %v3737_v4 }
 0x397   : > { %3856 = vmatpush.bf16.msrb.mxu1 %v3735_v62 }
 0x39b   : > { %3857 = vmatpush.bf16.msrb.mxu1 %v7457_v33 }
 0x39e   : > { %5192 = vmatmul.msk.bf16.vlgmr.msrb.gmra.mxu1 %vm3808_vm0, %v7353_v16 }
 0x3ae   : > { %5193 = vmatmul.msk.bf16.gmra.mxu1 %vm3808_vm0, %v7378_v24 }
 0x3be   : > { %5194 = vmatmul.msk.bf16.gmra.mxu1 %vm3808_vm0, %v7400_v49 }
 0x3ce   : > { %5195 = vmatmul.msk.bf16.gmra.mxu1 %vm3808_vm0, %v7418_v22 }
 0x41b   : > { %v3859_v27 = vpop.f32.mrf.mxu1 }
 0x41c   : > { %v3860_v31 = vadd.f32 %v3859_v27, %v7444_v35 }
 0x41e   : > { %v3880_v57 = vmax.f32 %v3860_v31, 0.0 }
 0x420   : > { %3896 = vst [vmem:[%s7450_s30 + $0x8] sm:$0xff] %v3880_v57 }
 0x423   : > { %v3861_v33 = vpop.f32.mrf.mxu1 }
 0x424   : > { %v3862_v63 = vadd.f32 %v3861_v33, %v7446_v1 }
 0x426   : > { %v3882_v16 = vmax.f32 %v3862_v63, 0.0 }
 0x427   : > { %v3937_v13 = vld [vmem:[%s7450_s30 + $0x8] sm:$0xff] (%p5700_p6) }
 0x428   : > { %3898 = vst [vmem:[%s7450_s30 + $0x18] sm:$0xff] %v3882_v16 }
 0x429   : > { %3938 = vst [vmem:[%s3922_s10 + $0x8] sm:$0xff] (%p5700_p6), %v3937_v13 }
 0x42b   : > { %v3864_v24 = vpop.f32.mrf.mxu1 }
 0x42c   : > { %v3865_v5 = vadd.f32 %v3864_v24, %v7454_v50 }
 0x42e   : > { %v3884_v49 = vmax.f32 %v3865_v5, 0.0 }
 0x430   : > { %3900 = vst [vmem:[%s7450_s30 + $0x28] sm:$0xff] %v3884_v49 }
 0x433   : > { %v3866_v22 = vpop.f32.mrf.mxu1 }
 0x434   : > { %v3867_v39 = vadd.f32 %v3866_v22, %v7460_v44 }
 0x436   : > { %v3886_v0 = vmax.f32 %v3867_v39, 0.0 }
 0x437   : > { %v3945_v46 = vld [vmem:[%s7450_s30 + $0x28] sm:$0xff] (%p5700_p6) }
 0x438   : > { %3902 = vst [vmem:[%s7450_s30 + $0x38] sm:$0xff] %v3886_v0 }
 0x439   : > { %3946 = vst [vmem:[%s3922_s10 + $0x48] sm:$0xff] (%p5700_p6), %v3945_v46 }
 0x43b   : > { %v3869_v35 = vpop.f32.mrf.mxu1 }
 0x43c   : > { %v3870_v38 = vadd.f32 %v3869_v35, %v7466_v54  ;;  %v3935_v54 = vld [vmem:[%s7450_s30] sm:$0xff] (%p5700_p6) }
 0x43d   : > { %3936 = vst [vmem:[%s3922_s10] sm:$0xff] (%p5700_p6), %v3935_v54 }
 0x43e   : > { %v3888_v53 = vmax.f32 %v3870_v38, 0.0 }
 0x43f   : > { %v3949_v58 = vld [vmem:[%s7450_s30 + $0x38] sm:$0xff] (%p5700_p6) }
 0x440   : > { %3904 = vst [vmem:[%s7450_s30 + $0x48] sm:$0xff] %v3888_v53 }
 0x441   : > { %3950 = vst [vmem:[%s3922_s10 + $0x68] sm:$0xff] (%p5700_p6), %v3949_v58 }
 0x443   : > { %v3871_v1 = vpop.f32.mrf.mxu1 }
 0x444   : > { %v3872_v42 = vadd.f32 %v3871_v1, %v7470_v14  ;;  %v3941_v14 = vld [vmem:[%s7450_s30 + $0x18] sm:$0xff] (%p5700_p6) }
 0x445   : > { %3942 = vst [vmem:[%s3922_s10 + $0x28] sm:$0xff] (%p5700_p6), %v3941_v14 }
 0x446   : > { %v3890_v19 = vmax.f32 %v3872_v42, 0.0 }
 0x447   : > { %v3953_v20 = vld [vmem:[%s7450_s30 + $0x48] sm:$0xff] (%p5700_p6) }
 0x448   : > { %3906 = vst [vmem:[%s7450_s30 + $0x58] sm:$0xff] %v3890_v19 }
 0x449   : > { %3954 = vst [vmem:[%s3922_s10 + $0x88] sm:$0xff] (%p5700_p6), %v3953_v20 }
 0x44b   : > { %v3874_v50 = vpop.f32.mrf.mxu1 }
 0x44c   : > { %v3875_v34 = vadd.f32 %v3874_v50, %v3781_v2 }
 0x44e   : > { %v3892_v43 = vmax.f32 %v3875_v34, 0.0 }
 0x44f   : > { %v3957_v17 = vld [vmem:[%s7450_s30 + $0x58] sm:$0xff] (%p5700_p6) }
 0x450   : > { %3908 = vst [vmem:[%s7450_s30 + $0x68] sm:$0xff] %v3892_v43 }
 0x451   : > { %3958 = vst [vmem:[%s3922_s10 + $0xa8] sm:$0xff] (%p5700_p6), %v3957_v17 }
 0x453   : > { %v3876_v62 = vpop.f32.mrf.mxu1 }
 0x454   : > { %v3877_v15 = vadd.f32 %v3876_v62, %v3786_v36  ;;  %3917 = sbr.rel (!%p5700_p6) target bundleno = 1121 (0x461), region = 82 }
 0x456   : > { %v3894_v44 = vmax.f32 %v3877_v15, 0.0 }
 0x457   : > { %v3961_v30 = vld [vmem:[%s7450_s30 + $0x68] sm:$0xff] (%p5700_p6) }
 0x458   : > { %3910 = vst [vmem:[%s7450_s30 + $0x78] sm:$0xff] %v3894_v44 }
 0x459   : > { %3962 = vst [vmem:[%s3922_s10 + $0xc8] sm:$0xff] %v3961_v30 }
 0x45f   : > { %v3965_v2 = vld [vmem:[%s7450_s30 + $0x78] sm:$0xff] }
 0x460   : > { %3966 = vst [vmem:[%s3922_s10 + $0xe8] sm:$0xff] %v3965_v2 }
 0x461 PF: > { %s15_s24 = sadd.s32 1, %s5619_s24   ;;  %s7635_s18 = smov %s5599_s19 }
 0x462   : > { %p12_p12 = scmp.ge.s32.totalorder %s15_s24, 6   ;;  %s7636_s19 = smov %s5708_s8 }
 0x463   : > { %s7637_s20 = smov %s5611_s22  ;;  %s7638_s21 = smov %s5615_s23 }
 0x464   : > { %s7639_s22 = smov %s7642_s25  ;;  %s7640_s23 = smov %s7646_s26 }
 0x465   :  { %14 = sbr.rel (!%p12_p12) target bundleno = 4 (0x4), region = 136 }

</bundles_post_ra>
